<compile_context>
chip_gen: v7x
topology: tpu7x:2x2x1
jax: 0.10.0
libtpu: 0.0.40
codegen_flags: <defaults>
</compile_context>

<pallas_src>
import functools

import jax
import jax.numpy as jnp
from jax.experimental import pallas as pl
from jax.experimental.pallas import tpu as pltpu

_EPS = 1e-5
_LANE = 128

# 32 MiB scoped VMEM: >= default on v6e/v7x, raises v5e's 16 MiB default, and
# stays well under v7x's 64 MiB physical VMEM per TensorCore.
_COMPILER_PARAMS = pltpu.CompilerParams(
    dimension_semantics=("parallel",),
    vmem_limit_bytes=32 * 1024 * 1024,
)


def _round_up(x, m):
    return (x + m - 1) // m * m


def _pick_row_tile(m):
    """Largest row tile (<=1024) dividing M, preferring >=2 grid steps.

    v6e: go big (512-1024 rows ~ 85% of HBM roofline); v7x: smaller tiles are
    fine given 3.2 TB/s HBM and half the VMEM; v5e: modest tiles.
    """
    for t in (1024, 512, 256, 128, 64, 32, 16, 8):
        if t < m and m % t == 0:
            return t
    return m


# ----------------------------------------------------------------------------
# Kernels
# ----------------------------------------------------------------------------
def _mm_stats_kernel(*refs, act, affine):
    """[optional fused BN scale/shift + ReLU] -> 1x1 conv (matmul) -> stats.

    Emits per-tile (sum, sum-of-squares) of the conv output in the same pass
    (single read of the activation for the next BN's statistics).
    """
    if affine:
        x_ref, scale_ref, shift_ref, w_ref, y_ref, stats_ref = refs
    else:
        x_ref, w_ref, y_ref, stats_ref = refs

    h = x_ref[...]                                   # f32 (TM, Cin_p)
    if affine:
        h = h * scale_ref[...] + shift_ref[...]      # fused BN (f32)
    if act:
        h = jnp.maximum(h, 0.0)

    y = jnp.dot(h.astype(jnp.bfloat16), w_ref[...],  # bf16 x bf16 -> f32 acc
                preferred_element_type=jnp.float32)
    y_ref[...] = y

    s = jnp.sum(y, axis=0, keepdims=True)
    ss = jnp.sum(y * y, axis=0, keepdims=True)
    stats_ref[...] = jnp.concatenate([s, ss], axis=0)[None]   # (1, 2, Cout_p)


def _conv3x3_kernel(y1_ref, scale_ref, shift_ref, w2_ref, y2_ref, stats_ref):
    """BN1(scale/shift) + ReLU + 3x3 conv (im2col, single MXU matmul) + stats.

    One grid step = one image: the 3x3 halo stays inside the block.
    """
    _, H, W, Wp = y1_ref.shape
    HW = H * W

    # BN1 + ReLU in f32.
    h = jnp.maximum(y1_ref[0] * scale_ref[...] + shift_ref[...], 0.0)

    # Zero-pad H by one row each side (leading-dim concat: no relayout), then
    # flatten spatial dims so a +-1 shift in W is a +-1 shift of flattened rows.
    zrow = jnp.zeros((1, W, Wp), jnp.float32)
    hp = jnp.concatenate([zrow, h, zrow], axis=0).reshape((H + 2) * W, Wp)

    zr = jnp.zeros((1, Wp), jnp.float32)
    # shifted[kx][j] == hp[j + (kx - 1)], zero-filled at the ends.
    shifted = (
        jnp.concatenate([zr, hp[:-1]], axis=0),   # dx = -1
        hp,                                       # dx =  0
        jnp.concatenate([hp[1:], zr], axis=0),    # dx = +1
    )

    # Output-column boundary masks for the dx = +-1 taps.
    widx = jax.lax.broadcasted_iota(jnp.int32, (H, W, Wp), 1).reshape(HW, Wp)
    wmask = (widx >= 1, None, widx < (W - 1))

    # im2col: 9 taps concatenated along the channel (lane) axis -> ONE matmul
    # with K = 9*Wp instead of 9 under-fed K=Wp matmuls + accumulator adds.
    taps = []
    for ky in range(3):
        for kx in range(3):
            t = shifted[kx][ky * W:ky * W + HW]    # 8-aligned row offset (W % 8 == 0)
            if wmask[kx] is not None:
                t = jnp.where(wmask[kx], t, 0.0)
            taps.append(t.astype(jnp.bfloat16))
    im2col = jnp.concatenate(taps, axis=1)         # (HW, 9*Wp) bf16
    y2 = jnp.dot(im2col, w2_ref[...], preferred_element_type=jnp.float32)

    y2_ref[...] = y2.reshape(1, H, W, Wp)
    s = jnp.sum(y2, axis=0, keepdims=True)
    ss = jnp.sum(y2 * y2, axis=0, keepdims=True)
    stats_ref[...] = jnp.concatenate([s, ss], axis=0)[None]   # (1, 2, Wp)


def _residual_kernel(y_ref, x_ref, scale_ref, shift_ref, o_ref):
    """BN3(scale/shift) + identity residual + final ReLU (all f32, lane-dense)."""
    o_ref[...] = jnp.maximum(
        y_ref[...] * scale_ref[...] + shift_ref[...] + x_ref[...], 0.0)


# ----------------------------------------------------------------------------
# pallas_call wrappers
# ----------------------------------------------------------------------------
def _matmul_stats(x2d, w, scale=None, shift=None, *, act, tm):
    m, cin_p = x2d.shape
    cout_p = w.shape[1]
    grid_m = m // tm
    affine = scale is not None

    in_specs = [pl.BlockSpec((tm, cin_p), lambda i: (i, 0))]
    args = [x2d]
    if affine:
        in_specs += [pl.BlockSpec((1, cin_p), lambda i: (0, 0)),
                     pl.BlockSpec((1, cin_p), lambda i: (0, 0))]
        args += [scale, shift]
    in_specs.append(pl.BlockSpec((cin_p, cout_p), lambda i: (0, 0)))
    args.append(w)

    y, stats = pl.pallas_call(
        functools.partial(_mm_stats_kernel, act=act, affine=affine),
        grid=(grid_m,),
        in_specs=in_specs,
        out_specs=[pl.BlockSpec((tm, cout_p), lambda i: (i, 0)),
                   pl.BlockSpec((1, 2, cout_p), lambda i: (i, 0, 0))],
        out_shape=[jax.ShapeDtypeStruct((m, cout_p), jnp.float32),
                   jax.ShapeDtypeStruct((grid_m, 2, cout_p), jnp.float32)],
        compiler_params=_COMPILER_PARAMS,
    )(*args)
    return y, stats


def _conv3x3_bn_relu(y1_4d, scale1, shift1, w2p):
    n, h, w, wp = y1_4d.shape
    return pl.pallas_call(
        _conv3x3_kernel,
        grid=(n,),
        in_specs=[pl.BlockSpec((1, h, w, wp), lambda i: (i, 0, 0, 0)),
                  pl.BlockSpec((1, wp), lambda i: (0, 0)),
                  pl.BlockSpec((1, wp), lambda i: (0, 0)),
                  pl.BlockSpec((9 * wp, wp), lambda i: (0, 0))],
        out_specs=[pl.BlockSpec((1, h, w, wp), lambda i: (i, 0, 0, 0)),
                   pl.BlockSpec((1, 2, wp), lambda i: (i, 0, 0))],
        out_shape=[jax.ShapeDtypeStruct((n, h, w, wp), jnp.float32),
                   jax.ShapeDtypeStruct((n, 2, wp), jnp.float32)],
        compiler_params=_COMPILER_PARAMS,
    )(y1_4d, scale1, shift1, w2p)


def _residual(y3, x2d, scale, shift, *, tm):
    m, cop = y3.shape
    grid_m = m // tm
    return pl.pallas_call(
        _residual_kernel,
        grid=(grid_m,),
        in_specs=[pl.BlockSpec((tm, cop), lambda i: (i, 0)),
                  pl.BlockSpec((tm, cop), lambda i: (i, 0)),
                  pl.BlockSpec((1, cop), lambda i: (0, 0)),
                  pl.BlockSpec((1, cop), lambda i: (0, 0))],
        out_specs=pl.BlockSpec((tm, cop), lambda i: (i, 0)),
        out_shape=jax.ShapeDtypeStruct((m, cop), jnp.float32),
        compiler_params=_COMPILER_PARAMS,
    )(y3, x2d, scale, shift)


def _bn_scale_shift(stats, gamma_p, beta_p, count):
    """Finalize BN: per-tile (sum, sumsq) partials -> fused scale/shift.

    O(C) work done in plain JAX between pallas_calls.  E[x^2]-E[x]^2 with a
    max(var, 0) guard against cancellation; all f32.
    """
    s = jnp.sum(stats[:, 0, :], axis=0)
    ss = jnp.sum(stats[:, 1, :], axis=0)
    mean = s / count
    var = jnp.maximum(ss / count - mean * mean, 0.0)
    inv = jax.lax.rsqrt(var + _EPS)
    scale = gamma_p.reshape(-1) * inv
    shift = beta_p.reshape(-1) - mean * scale
    return scale.reshape(1, -1), shift.reshape(1, -1)


# ----------------------------------------------------------------------------
# Full Bottleneck forward
# ----------------------------------------------------------------------------
@jax.jit
def bottleneck_forward(x_nchw, w1, w2_flat, w3, g1, b1, g2, b2, g3, b3):
    n, cin, h, w = x_nchw.shape
    wd = w1.shape[1]
    cout = w3.shape[1]
    assert cin == cout, "identity residual (downsample=None) needs inplanes == planes*expansion"

    cp = _round_up(cin, _LANE)
    wp = _round_up(wd, _LANE)
    cop = _round_up(cout, _LANE)          # == cp since cin == cout

    # --- one-time layout prep (XLA side): NHWC, lane-dense channel pad, bf16 weights.
    x_nhwc = jnp.transpose(x_nchw, (0, 2, 3, 1)).astype(jnp.float32)
    x2d = jnp.pad(x_nhwc, ((0, 0), (0, 0), (0, 0), (0, cp - cin))).reshape(n * h * w, cp)

    w1p = jnp.pad(w1, ((0, cp - cin), (0, wp - wd))).astype(jnp.bfloat16)
    w2p = jnp.pad(w2_flat.reshape(9, wd, wd),
                  ((0, 0), (0, wp - wd), (0, wp - wd))).reshape(9 * wp, wp).astype(jnp.bfloat16)
    w3p = jnp.pad(w3, ((0, wp - wd), (0, cop - cout))).astype(jnp.bfloat16)

    def padc(v, c, cpad):
        return jnp.pad(v.reshape(1, c).astype(jnp.float32), ((0, 0), (0, cpad - c)))

    g1p, b1p = padc(g1, wd, wp), padc(b1, wd, wp)
    g2p, b2p = padc(g2, wd, wp), padc(b2, wd, wp)
    g3p, b3p = padc(g3, cout, cop), padc(b3, cout, cop)

    m = n * h * w
    tm = _pick_row_tile(m)
    cnt = float(m)

    # K1: conv1 (1x1) + BN1 batch statistics.
    y1, st1 = _matmul_stats(x2d, w1p, act=False, tm=tm)
    s1, t1 = _bn_scale_shift(st1, g1p, b1p, cnt)

    # K2: BN1+ReLU + conv2 (3x3 via im2col, one MXU matmul) + BN2 statistics.
    y2, st2 = _conv3x3_bn_relu(y1.reshape(n, h, w, wp), s1, t1, w2p)
    s2, t2 = _bn_scale_shift(st2, g2p, b2p, cnt)

    # K3: BN2+ReLU + conv3 (1x1) + BN3 statistics.
    y3, st3 = _matmul_stats(y2.reshape(m, wp), w3p, s2, t2, act=True, tm=tm)
    s3, t3 = _bn_scale_shift(st3, g3p, b3p, cnt)

    # K4: BN3 + identity residual + final ReLU.
    out2d = _residual(y3, x2d, s3, t3, tm=tm)

    out = out2d.reshape(n, h, w, cop)[..., :cout]
    return jnp.transpose(out, (0, 3, 1, 2))


# ----------------------------------------------------------------------------
# Pure-JAX reference (same bf16-operand / f32-accumulate numerics as the kernels)
# ----------------------------------------------------------------------------
def _reference(x_nchw, w1, w2_flat, w3, g1, b1, g2, b2, g3, b3):
    x = jnp.transpose(x_nchw, (0, 2, 3, 1)).astype(jnp.float32)
    cin, wd = w1.shape
    cout = w3.shape[1]
    dn = ("NHWC", "HWIO", "NHWC")

    def bn(y, g, b, relu):
        mean = jnp.mean(y, axis=(0, 1, 2), keepdims=True)
        var = jnp.mean((y - mean) ** 2, axis=(0, 1, 2), keepdims=True)
        yn = (y - mean) * jax.lax.rsqrt(var + _EPS) * g.reshape(1, 1, 1, -1) \
             + b.reshape(1, 1, 1, -1)
        return jnp.maximum(yn, 0.0) if relu else yn

    def conv(a, k, padding):
        return jax.lax.conv_general_dilated(
            a.astype(jnp.bfloat16), k.astype(jnp.bfloat16), (1, 1), padding,
            dimension_numbers=dn, preferred_element_type=jnp.float32)

    y = conv(x, w1.reshape(1, 1, cin, wd), "VALID")
    y = bn(y, g1, b1, True)
    y = conv(y, w2_flat.reshape(3, 3, wd, wd), "SAME")
    y = bn(y, g2, b2, True)
    y = conv(y, w3.reshape(1, 1, wd, cout), "VALID")
    y = bn(y, g3, b3, False)
    y = jnp.maximum(y + x, 0.0)
    return jnp.transpose(y, (0, 3, 1, 2))


if __name__ == "__main__":
    # Bottleneck(inplanes=16, planes=4): width=4, out_channels=planes*4=16.
    N, inplanes, planes, Hs, Ws = 2, 16, 4, 16, 16
    width = planes          # base_width=64, groups=1
    out_ch = planes * 4     # expansion = 4

    key = jax.random.PRNGKey(0)
    kx, k1, k2, k3 = jax.random.split(key, 4)

    x = jax.random.normal(kx, (N, inplanes, Hs, Ws), dtype=jnp.float32)
    w1 = 0.1 * jax.random.normal(k1, (inplanes, width), dtype=jnp.float32)
    w2_flat = 0.1 * jax.random.normal(k2, (9 * width, width), dtype=jnp.float32)
    w3 = 0.1 * jax.random.normal(k3, (width, out_ch), dtype=jnp.float32)

    # BatchNorm2d parameters at init: gamma=1, beta=0 (stored as (1, C) rows).
    g1 = jnp.ones((1, width), jnp.float32);  b1 = jnp.zeros((1, width), jnp.float32)
    g2 = jnp.ones((1, width), jnp.float32);  b2 = jnp.zeros((1, width), jnp.float32)
    g3 = jnp.ones((1, out_ch), jnp.float32); b3 = jnp.zeros((1, out_ch), jnp.float32)

    out = bottleneck_forward(x, w1, w2_flat, w3, g1, b1, g2, b2, g3, b3)
    out = jax.block_until_ready(out)

    ref = _reference(x, w1, w2_flat, w3, g1, b1, g2, b2, g3, b3)
    assert out.shape == (N, out_ch, Hs, Ws), out.shape
    # bf16 matmul operands on both sides; tolerance covers accumulation-order
    # and occasional one-ulp bf16 re-rounding differences.
    err = float(jnp.max(jnp.abs(out - ref)))
    assert jnp.allclose(out, ref, atol=1e-2, rtol=1e-2), err

    print("KERNEL_OK")
</pallas_src>

<mosaic_0001>
module attributes {stable_mosaic.version = 11 : i64} {
  func.func @_mm_stats_kernel(%arg0: i32, %arg1: memref<256x128xf32, #tpu.memory_space<vmem>>, %arg2: memref<128x128xbf16, #tpu.memory_space<vmem>>, %arg3: memref<256x128xf32, #tpu.memory_space<vmem>>, %arg4: memref<1x2x128xf32, #tpu.memory_space<vmem>>) attributes {dimension_semantics = [#tpu.dimension_semantics<parallel>], iteration_bounds = array<i64: 2>, scalar_prefetch = 0 : i64, scratch_operands = 0 : i64, tpu.core_type = #tpu.core_type<tc>, window_params = [{transform_indices = @transform_0, window_bounds = array<i64: 256, 128>}, {pipeline_mode = #tpu.pipeline_mode<synchronous>, transform_indices = @transform_1, window_bounds = array<i64: 128, 128>}, {transform_indices = @transform_2, window_bounds = array<i64: 256, 128>}, {transform_indices = @transform_3, window_bounds = array<i64: 1, 2, 128>}]} {
    %c0 = arith.constant 0 : index
    %c0_0 = arith.constant 0 : index
    %0 = vector.load %arg1[%c0, %c0_0] : memref<256x128xf32, #tpu.memory_space<vmem>>, vector<256x128xf32>
    %1 = arith.truncf %0 : vector<256x128xf32> to vector<256x128xbf16>
    %c0_1 = arith.constant 0 : index
    %c0_2 = arith.constant 0 : index
    %2 = vector.load %arg2[%c0_1, %c0_2] : memref<128x128xbf16, #tpu.memory_space<vmem>>, vector<128x128xbf16>
    %cst = arith.constant dense<0.000000e+00> : vector<256x128xf32>
    %3 = tpu.matmul %1, %2, %cst {dimension_numbers = #tpu.dot_dimension_numbers<[1], [0], [0], [1], [0, 0, 1, 1], [], []>} : vector<256x128xbf16>, vector<128x128xbf16>, vector<256x128xf32> -> vector<256x128xf32>
    %c0_3 = arith.constant 0 : index
    %c0_4 = arith.constant 0 : index
    %4 = vector.load %arg3[%c0_3, %c0_4] : memref<256x128xf32, #tpu.memory_space<vmem>>, vector<256x128xf32>
    tpu.vector_store %arg3[%c0_3, %c0_4], %3 {strides = array<i32>} : memref<256x128xf32, #tpu.memory_space<vmem>>, vector<256x128xf32>,
    %cst_5 = arith.constant dense<0.000000e+00> : vector<128xf32>
    %5 = vector.multi_reduction <add>, %3, %cst_5 [0] : vector<256x128xf32> to vector<128xf32>
    %6 = vector.shape_cast %5 : vector<128xf32> to vector<1x128xf32>
    %7 = arith.mulf %3, %3 : vector<256x128xf32>
    %cst_6 = arith.constant dense<0.000000e+00> : vector<128xf32>
    %8 = vector.multi_reduction <add>, %7, %cst_6 [0] : vector<256x128xf32> to vector<128xf32>
    %9 = vector.shape_cast %8 : vector<128xf32> to vector<1x128xf32>
    %10 = tpu.concatenate %6, %9 in 0 : vector<1x128xf32>, vector<1x128xf32> -> vector<2x128xf32>
    %11 = vector.shape_cast %10 : vector<2x128xf32> to vector<1x2x128xf32>
    %c0_7 = arith.constant 0 : index
    %c0_8 = arith.constant 0 : index
    %c0_9 = arith.constant 0 : index
    %12 = vector.load %arg4[%c0_7, %c0_8, %c0_9] : memref<1x2x128xf32, #tpu.memory_space<vmem>>, vector<1x2x128xf32>
    tpu.vector_store %arg4[%c0_7, %c0_8, %c0_9], %11 {strides = array<i32>} : memref<1x2x128xf32, #tpu.memory_space<vmem>>, vector<1x2x128xf32>,
    return
  }
  func.func @transform_0(%arg0: i32) -> (i32, i32) {
    %c0_i32 = arith.constant 0 : i32
    %c0_i32_0 = arith.constant 0 : i32
    return %arg0, %c0_i32 : i32, i32
  }
  func.func @transform_1(%arg0: i32) -> (i32, i32) {
    %c0_i32 = arith.constant 0 : i32
    %c0_i32_0 = arith.constant 0 : i32
    %c0_i32_1 = arith.constant 0 : i32
    return %c0_i32, %c0_i32_0 : i32, i32
  }
  func.func @transform_2(%arg0: i32) -> (i32, i32) {
    %c0_i32 = arith.constant 0 : i32
    %c0_i32_0 = arith.constant 0 : i32
    return %arg0, %c0_i32 : i32, i32
  }
  func.func @transform_3(%arg0: i32) -> (i32, i32, i32) {
    %c0_i32 = arith.constant 0 : i32
    %c0_i32_0 = arith.constant 0 : i32
    %c0_i32_1 = arith.constant 0 : i32
    return %arg0, %c0_i32, %c0_i32_0 : i32, i32, i32
  }
}

module attributes {stable_mosaic.version = 11 : i64} {
  func.func @_conv3x3_kernel(%arg0: i32, %arg1: memref<1x16x16x128xf32, #tpu.memory_space<vmem>>, %arg2: memref<1x128xf32, #tpu.memory_space<vmem>>, %arg3: memref<1x128xf32, #tpu.memory_space<vmem>>, %arg4: memref<1152x128xbf16, #tpu.memory_space<vmem>>, %arg5: memref<1x16x16x128xf32, #tpu.memory_space<vmem>>, %arg6: memref<1x2x128xf32, #tpu.memory_space<vmem>>) attributes {dimension_semantics = [#tpu.dimension_semantics<parallel>], iteration_bounds = array<i64: 2>, scalar_prefetch = 0 : i64, scratch_operands = 0 : i64, tpu.core_type = #tpu.core_type<tc>, window_params = [{transform_indices = @transform_0, window_bounds = array<i64: 1, 16, 16, 128>}, {pipeline_mode = #tpu.pipeline_mode<synchronous>, transform_indices = @transform_1, window_bounds = array<i64: 1, 128>}, {pipeline_mode = #tpu.pipeline_mode<synchronous>, transform_indices = @transform_2, window_bounds = array<i64: 1, 128>}, {pipeline_mode = #tpu.pipeline_mode<synchronous>, transform_indices = @transform_3, window_bounds = array<i64: 1152, 128>}, {transform_indices = @transform_4, window_bounds = array<i64: 1, 16, 16, 128>}, {transform_indices = @transform_5, window_bounds = array<i64: 1, 2, 128>}]} {
    %c0 = arith.constant 0 : index
    %c0_0 = arith.constant 0 : index
    %c0_1 = arith.constant 0 : index
    %c0_2 = arith.constant 0 : index
    %0 = vector.load %arg1[%c0, %c0_0, %c0_1, %c0_2] : memref<1x16x16x128xf32, #tpu.memory_space<vmem>>, vector<1x16x16x128xf32>
    %1 = vector.shape_cast %0 : vector<1x16x16x128xf32> to vector<16x16x128xf32>
    %c0_3 = arith.constant 0 : index
    %c0_4 = arith.constant 0 : index
    %2 = vector.load %arg2[%c0_3, %c0_4] : memref<1x128xf32, #tpu.memory_space<vmem>>, vector<1x128xf32>
    %3 = vector.shape_cast %2 : vector<1x128xf32> to vector<1x1x128xf32>
    %4 = vector.broadcast %3 : vector<1x1x128xf32> to vector<16x16x128xf32>
    %5 = arith.mulf %1, %4 : vector<16x16x128xf32>
    %c0_5 = arith.constant 0 : index
    %c0_6 = arith.constant 0 : index
    %6 = vector.load %arg3[%c0_5, %c0_6] : memref<1x128xf32, #tpu.memory_space<vmem>>, vector<1x128xf32>
    %7 = vector.shape_cast %6 : vector<1x128xf32> to vector<1x1x128xf32>
    %8 = vector.broadcast %7 : vector<1x1x128xf32> to vector<16x16x128xf32>
    %9 = arith.addf %5, %8 : vector<16x16x128xf32>
    %cst = arith.constant 0.000000e+00 : f32
    %10 = vector.broadcast %cst : f32 to vector<16x16x128xf32>
    %11 = arith.maximumf %9, %10 : vector<16x16x128xf32>
    %cst_7 = arith.constant 0.000000e+00 : f32
    %12 = vector.broadcast %cst_7 : f32 to vector<1x16x128xf32>
    %13 = tpu.concatenate %12, %11, %12 in 0 : vector<1x16x128xf32>, vector<16x16x128xf32>, vector<1x16x128xf32> -> vector<18x16x128xf32>
    %14 = vector.shape_cast %13 : vector<18x16x128xf32> to vector<288x128xf32>
    %cst_8 = arith.constant 0.000000e+00 : f32
    %15 = vector.broadcast %cst_8 : f32 to vector<1x128xf32>
    %16 = vector.extract_strided_slice %14 {offsets = [0, 0], sizes = [287, 128], strides = [1, 1]} : vector<288x128xf32> to vector<287x128xf32>
    %17 = tpu.concatenate %15, %16 in 0 : vector<1x128xf32>, vector<287x128xf32> -> vector<288x128xf32>
    %18 = vector.extract_strided_slice %14 {offsets = [1, 0], sizes = [287, 128], strides = [1, 1]} : vector<288x128xf32> to vector<287x128xf32>
    %19 = tpu.concatenate %18, %15 in 0 : vector<287x128xf32>, vector<1x128xf32> -> vector<288x128xf32>
    %20 = tpu.iota {dimensions = array<i32: 1>} : vector<16x16x128xi32>
    %21 = vector.shape_cast %20 : vector<16x16x128xi32> to vector<256x128xi32>
    %c1_i32 = arith.constant 1 : i32
    %22 = vector.broadcast %c1_i32 : i32 to vector<256x128xi32>
    %23 = arith.cmpi sge, %21, %22 : vector<256x128xi32>
    %c15_i32 = arith.constant 15 : i32
    %24 = vector.broadcast %c15_i32 : i32 to vector<256x128xi32>
    %25 = arith.cmpi slt, %21, %24 : vector<256x128xi32>
    %26 = vector.extract_strided_slice %17 {offsets = [0, 0], sizes = [256, 128], strides = [1, 1]} : vector<288x128xf32> to vector<256x128xf32>
    %cst_9 = arith.constant 0.000000e+00 : f32
    %27 = vector.broadcast %cst_9 : f32 to vector<256x128xf32>
    %28 = arith.select %23, %26, %27 : vector<256x128xi1>, vector<256x128xf32>
    %29 = arith.truncf %28 : vector<256x128xf32> to vector<256x128xbf16>
    %30 = vector.extract_strided_slice %14 {offsets = [0, 0], sizes = [256, 128], strides = [1, 1]} : vector<288x128xf32> to vector<256x128xf32>
    %31 = arith.truncf %30 : vector<256x128xf32> to vector<256x128xbf16>
    %32 = vector.extract_strided_slice %19 {offsets = [0, 0], sizes = [256, 128], strides = [1, 1]} : vector<288x128xf32> to vector<256x128xf32>
    %cst_10 = arith.constant 0.000000e+00 : f32
    %33 = vector.broadcast %cst_10 : f32 to vector<256x128xf32>
    %34 = arith.select %25, %32, %33 : vector<256x128xi1>, vector<256x128xf32>
    %35 = arith.truncf %34 : vector<256x128xf32> to vector<256x128xbf16>
    %36 = vector.extract_strided_slice %17 {offsets = [16, 0], sizes = [256, 128], strides = [1, 1]} : vector<288x128xf32> to vector<256x128xf32>
    %cst_11 = arith.constant 0.000000e+00 : f32
    %37 = vector.broadcast %cst_11 : f32 to vector<256x128xf32>
    %38 = arith.select %23, %36, %37 : vector<256x128xi1>, vector<256x128xf32>
    %39 = arith.truncf %38 : vector<256x128xf32> to vector<256x128xbf16>
    %40 = vector.extract_strided_slice %14 {offsets = [16, 0], sizes = [256, 128], strides = [1, 1]} : vector<288x128xf32> to vector<256x128xf32>
    %41 = arith.truncf %40 : vector<256x128xf32> to vector<256x128xbf16>
    %42 = vector.extract_strided_slice %19 {offsets = [16, 0], sizes = [256, 128], strides = [1, 1]} : vector<288x128xf32> to vector<256x128xf32>
    %cst_12 = arith.constant 0.000000e+00 : f32
    %43 = vector.broadcast %cst_12 : f32 to vector<256x128xf32>
    %44 = arith.select %25, %42, %43 : vector<256x128xi1>, vector<256x128xf32>
    %45 = arith.truncf %44 : vector<256x128xf32> to vector<256x128xbf16>
    %46 = vector.extract_strided_slice %17 {offsets = [32, 0], sizes = [256, 128], strides = [1, 1]} : vector<288x128xf32> to vector<256x128xf32>
    %cst_13 = arith.constant 0.000000e+00 : f32
    %47 = vector.broadcast %cst_13 : f32 to vector<256x128xf32>
    %48 = arith.select %23, %46, %47 : vector<256x128xi1>, vector<256x128xf32>
    %49 = arith.truncf %48 : vector<256x128xf32> to vector<256x128xbf16>
    %50 = vector.extract_strided_slice %14 {offsets = [32, 0], sizes = [256, 128], strides = [1, 1]} : vector<288x128xf32> to vector<256x128xf32>
    %51 = arith.truncf %50 : vector<256x128xf32> to vector<256x128xbf16>
    %52 = vector.extract_strided_slice %19 {offsets = [32, 0], sizes = [256, 128], strides = [1, 1]} : vector<288x128xf32> to vector<256x128xf32>
    %cst_14 = arith.constant 0.000000e+00 : f32
    %53 = vector.broadcast %cst_14 : f32 to vector<256x128xf32>
    %54 = arith.select %25, %52, %53 : vector<256x128xi1>, vector<256x128xf32>
    %55 = arith.truncf %54 : vector<256x128xf32> to vector<256x128xbf16>
    %56 = tpu.concatenate %29, %31, %35, %39, %41, %45, %49, %51, %55 in 1 : vector<256x128xbf16>, vector<256x128xbf16>, vector<256x128xbf16>, vector<256x128xbf16>, vector<256x128xbf16>, vector<256x128xbf16>, vector<256x128xbf16>, vector<256x128xbf16>, vector<256x128xbf16> -> vector<256x1152xbf16>
    %c0_15 = arith.constant 0 : index
    %c0_16 = arith.constant 0 : index
    %57 = vector.load %arg4[%c0_15, %c0_16] : memref<1152x128xbf16, #tpu.memory_space<vmem>>, vector<1152x128xbf16>
    %cst_17 = arith.constant dense<0.000000e+00> : vector<256x128xf32>
    %58 = tpu.matmul %56, %57, %cst_17 {dimension_numbers = #tpu.dot_dimension_numbers<[1], [0], [0], [1], [0, 0, 1, 1], [], []>} : vector<256x1152xbf16>, vector<1152x128xbf16>, vector<256x128xf32> -> vector<256x128xf32>
    %59 = vector.shape_cast %58 : vector<256x128xf32> to vector<1x16x16x128xf32>
    %c0_18 = arith.constant 0 : index
    %c0_19 = arith.constant 0 : index
    %c0_20 = arith.constant 0 : index
    %c0_21 = arith.constant 0 : index
    %60 = vector.load %arg5[%c0_18, %c0_19, %c0_20, %c0_21] : memref<1x16x16x128xf32, #tpu.memory_space<vmem>>, vector<1x16x16x128xf32>
    tpu.vector_store %arg5[%c0_18, %c0_19, %c0_20, %c0_21], %59 {strides = array<i32>} : memref<1x16x16x128xf32, #tpu.memory_space<vmem>>, vector<1x16x16x128xf32>,
    %cst_22 = arith.constant dense<0.000000e+00> : vector<128xf32>
    %61 = vector.multi_reduction <add>, %58, %cst_22 [0] : vector<256x128xf32> to vector<128xf32>
    %62 = vector.shape_cast %61 : vector<128xf32> to vector<1x128xf32>
    %63 = arith.mulf %58, %58 : vector<256x128xf32>
    %cst_23 = arith.constant dense<0.000000e+00> : vector<128xf32>
    %64 = vector.multi_reduction <add>, %63, %cst_23 [0] : vector<256x128xf32> to vector<128xf32>
    %65 = vector.shape_cast %64 : vector<128xf32> to vector<1x128xf32>
    %66 = tpu.concatenate %62, %65 in 0 : vector<1x128xf32>, vector<1x128xf32> -> vector<2x128xf32>
    %67 = vector.shape_cast %66 : vector<2x128xf32> to vector<1x2x128xf32>
    %c0_24 = arith.constant 0 : index
    %c0_25 = arith.constant 0 : index
    %c0_26 = arith.constant 0 : index
    %68 = vector.load %arg6[%c0_24, %c0_25, %c0_26] : memref<1x2x128xf32, #tpu.memory_space<vmem>>, vector<1x2x128xf32>
    tpu.vector_store %arg6[%c0_24, %c0_25, %c0_26], %67 {strides = array<i32>} : memref<1x2x128xf32, #tpu.memory_space<vmem>>, vector<1x2x128xf32>,
    return
  }
  func.func @transform_0(%arg0: i32) -> (i32, i32, i32, i32) {
    %c0_i32 = arith.constant 0 : i32
    %c0_i32_0 = arith.constant 0 : i32
    %c0_i32_1 = arith.constant 0 : i32
    %c0_i32_2 = arith.constant 0 : i32
    return %arg0, %c0_i32, %c0_i32_0, %c0_i32_1 : i32, i32, i32, i32
  }
  func.func @transform_1(%arg0: i32) -> (i32, i32) {
    %c0_i32 = arith.constant 0 : i32
    %c0_i32_0 = arith.constant 0 : i32
    %c0_i32_1 = arith.constant 0 : i32
    return %c0_i32, %c0_i32_0 : i32, i32
  }
  func.func @transform_2(%arg0: i32) -> (i32, i32) {
    %c0_i32 = arith.constant 0 : i32
    %c0_i32_0 = arith.constant 0 : i32
    %c0_i32_1 = arith.constant 0 : i32
    return %c0_i32, %c0_i32_0 : i32, i32
  }
  func.func @transform_3(%arg0: i32) -> (i32, i32) {
    %c0_i32 = arith.constant 0 : i32
    %c0_i32_0 = arith.constant 0 : i32
    %c0_i32_1 = arith.constant 0 : i32
    return %c0_i32, %c0_i32_0 : i32, i32
  }
  func.func @transform_4(%arg0: i32) -> (i32, i32, i32, i32) {
    %c0_i32 = arith.constant 0 : i32
    %c0_i32_0 = arith.constant 0 : i32
    %c0_i32_1 = arith.constant 0 : i32
    %c0_i32_2 = arith.constant 0 : i32
    return %arg0, %c0_i32, %c0_i32_0, %c0_i32_1 : i32, i32, i32, i32
  }
  func.func @transform_5(%arg0: i32) -> (i32, i32, i32) {
    %c0_i32 = arith.constant 0 : i32
    %c0_i32_0 = arith.constant 0 : i32
    %c0_i32_1 = arith.constant 0 : i32
    return %arg0, %c0_i32, %c0_i32_0 : i32, i32, i32
  }
}

module attributes {stable_mosaic.version = 11 : i64} {
  func.func @_residual_kernel(%arg0: i32, %arg1: memref<256x128xf32, #tpu.memory_space<vmem>>, %arg2: memref<256x128xf32, #tpu.memory_space<vmem>>, %arg3: memref<1x128xf32, #tpu.memory_space<vmem>>, %arg4: memref<1x128xf32, #tpu.memory_space<vmem>>, %arg5: memref<256x128xf32, #tpu.memory_space<vmem>>) attributes {dimension_semantics = [#tpu.dimension_semantics<parallel>], iteration_bounds = array<i64: 2>, scalar_prefetch = 0 : i64, scratch_operands = 0 : i64, tpu.core_type = #tpu.core_type<tc>, window_params = [{transform_indices = @transform_0, window_bounds = array<i64: 256, 128>}, {transform_indices = @transform_1, window_bounds = array<i64: 256, 128>}, {pipeline_mode = #tpu.pipeline_mode<synchronous>, transform_indices = @transform_2, window_bounds = array<i64: 1, 128>}, {pipeline_mode = #tpu.pipeline_mode<synchronous>, transform_indices = @transform_3, window_bounds = array<i64: 1, 128>}, {transform_indices = @transform_4, window_bounds = array<i64: 256, 128>}]} {
    %c0 = arith.constant 0 : index
    %c0_0 = arith.constant 0 : index
    %0 = vector.load %arg1[%c0, %c0_0] : memref<256x128xf32, #tpu.memory_space<vmem>>, vector<256x128xf32>
    %c0_1 = arith.constant 0 : index
    %c0_2 = arith.constant 0 : index
    %1 = vector.load %arg3[%c0_1, %c0_2] : memref<1x128xf32, #tpu.memory_space<vmem>>, vector<1x128xf32>
    %2 = vector.broadcast %1 : vector<1x128xf32> to vector<256x128xf32>
    %3 = arith.mulf %0, %2 : vector<256x128xf32>
    %c0_3 = arith.constant 0 : index
    %c0_4 = arith.constant 0 : index
    %4 = vector.load %arg4[%c0_3, %c0_4] : memref<1x128xf32, #tpu.memory_space<vmem>>, vector<1x128xf32>
    %5 = vector.broadcast %4 : vector<1x128xf32> to vector<256x128xf32>
    %6 = arith.addf %3, %5 : vector<256x128xf32>
    %c0_5 = arith.constant 0 : index
    %c0_6 = arith.constant 0 : index
    %7 = vector.load %arg2[%c0_5, %c0_6] : memref<256x128xf32, #tpu.memory_space<vmem>>, vector<256x128xf32>
    %8 = arith.addf %6, %7 : vector<256x128xf32>
    %cst = arith.constant 0.000000e+00 : f32
    %9 = vector.broadcast %cst : f32 to vector<256x128xf32>
    %10 = arith.maximumf %8, %9 : vector<256x128xf32>
    %c0_7 = arith.constant 0 : index
    %c0_8 = arith.constant 0 : index
    %11 = vector.load %arg5[%c0_7, %c0_8] : memref<256x128xf32, #tpu.memory_space<vmem>>, vector<256x128xf32>
    tpu.vector_store %arg5[%c0_7, %c0_8], %10 {strides = array<i32>} : memref<256x128xf32, #tpu.memory_space<vmem>>, vector<256x128xf32>,
    return
  }
  func.func @transform_0(%arg0: i32) -> (i32, i32) {
    %c0_i32 = arith.constant 0 : i32
    %c0_i32_0 = arith.constant 0 : i32
    return %arg0, %c0_i32 : i32, i32
  }
  func.func @transform_1(%arg0: i32) -> (i32, i32) {
    %c0_i32 = arith.constant 0 : i32
    %c0_i32_0 = arith.constant 0 : i32
    return %arg0, %c0_i32 : i32, i32
  }
  func.func @transform_2(%arg0: i32) -> (i32, i32) {
    %c0_i32 = arith.constant 0 : i32
    %c0_i32_0 = arith.constant 0 : i32
    %c0_i32_1 = arith.constant 0 : i32
    return %c0_i32, %c0_i32_0 : i32, i32
  }
  func.func @transform_3(%arg0: i32) -> (i32, i32) {
    %c0_i32 = arith.constant 0 : i32
    %c0_i32_0 = arith.constant 0 : i32
    %c0_i32_1 = arith.constant 0 : i32
    return %c0_i32, %c0_i32_0 : i32, i32
  }
  func.func @transform_4(%arg0: i32) -> (i32, i32) {
    %c0_i32 = arith.constant 0 : i32
    %c0_i32_0 = arith.constant 0 : i32
    return %arg0, %c0_i32 : i32, i32
  }
}

module attributes {stable_mosaic.version = 11 : i64} {
  func.func @_mm_stats_kernel(%arg0: i32, %arg1: memref<256x128xf32, #tpu.memory_space<vmem>>, %arg2: memref<1x128xf32, #tpu.memory_space<vmem>>, %arg3: memref<1x128xf32, #tpu.memory_space<vmem>>, %arg4: memref<128x128xbf16, #tpu.memory_space<vmem>>, %arg5: memref<256x128xf32, #tpu.memory_space<vmem>>, %arg6: memref<1x2x128xf32, #tpu.memory_space<vmem>>) attributes {dimension_semantics = [#tpu.dimension_semantics<parallel>], iteration_bounds = array<i64: 2>, scalar_prefetch = 0 : i64, scratch_operands = 0 : i64, tpu.core_type = #tpu.core_type<tc>, window_params = [{transform_indices = @transform_0, window_bounds = array<i64: 256, 128>}, {pipeline_mode = #tpu.pipeline_mode<synchronous>, transform_indices = @transform_1, window_bounds = array<i64: 1, 128>}, {pipeline_mode = #tpu.pipeline_mode<synchronous>, transform_indices = @transform_2, window_bounds = array<i64: 1, 128>}, {pipeline_mode = #tpu.pipeline_mode<synchronous>, transform_indices = @transform_3, window_bounds = array<i64: 128, 128>}, {transform_indices = @transform_4, window_bounds = array<i64: 256, 128>}, {transform_indices = @transform_5, window_bounds = array<i64: 1, 2, 128>}]} {
    %c0 = arith.constant 0 : index
    %c0_0 = arith.constant 0 : index
    %0 = vector.load %arg1[%c0, %c0_0] : memref<256x128xf32, #tpu.memory_space<vmem>>, vector<256x128xf32>
    %c0_1 = arith.constant 0 : index
    %c0_2 = arith.constant 0 : index
    %1 = vector.load %arg2[%c0_1, %c0_2] : memref<1x128xf32, #tpu.memory_space<vmem>>, vector<1x128xf32>
    %2 = vector.broadcast %1 : vector<1x128xf32> to vector<256x128xf32>
    %3 = arith.mulf %0, %2 : vector<256x128xf32>
    %c0_3 = arith.constant 0 : index
    %c0_4 = arith.constant 0 : index
    %4 = vector.load %arg3[%c0_3, %c0_4] : memref<1x128xf32, #tpu.memory_space<vmem>>, vector<1x128xf32>
    %5 = vector.broadcast %4 : vector<1x128xf32> to vector<256x128xf32>
    %6 = arith.addf %3, %5 : vector<256x128xf32>
    %cst = arith.constant 0.000000e+00 : f32
    %7 = vector.broadcast %cst : f32 to vector<256x128xf32>
    %8 = arith.maximumf %6, %7 : vector<256x128xf32>
    %9 = arith.truncf %8 : vector<256x128xf32> to vector<256x128xbf16>
    %c0_5 = arith.constant 0 : index
    %c0_6 = arith.constant 0 : index
    %10 = vector.load %arg4[%c0_5, %c0_6] : memref<128x128xbf16, #tpu.memory_space<vmem>>, vector<128x128xbf16>
    %cst_7 = arith.constant dense<0.000000e+00> : vector<256x128xf32>
    %11 = tpu.matmul %9, %10, %cst_7 {dimension_numbers = #tpu.dot_dimension_numbers<[1], [0], [0], [1], [0, 0, 1, 1], [], []>} : vector<256x128xbf16>, vector<128x128xbf16>, vector<256x128xf32> -> vector<256x128xf32>
    %c0_8 = arith.constant 0 : index
    %c0_9 = arith.constant 0 : index
    %12 = vector.load %arg5[%c0_8, %c0_9] : memref<256x128xf32, #tpu.memory_space<vmem>>, vector<256x128xf32>
    tpu.vector_store %arg5[%c0_8, %c0_9], %11 {strides = array<i32>} : memref<256x128xf32, #tpu.memory_space<vmem>>, vector<256x128xf32>,
    %cst_10 = arith.constant dense<0.000000e+00> : vector<128xf32>
    %13 = vector.multi_reduction <add>, %11, %cst_10 [0] : vector<256x128xf32> to vector<128xf32>
    %14 = vector.shape_cast %13 : vector<128xf32> to vector<1x128xf32>
    %15 = arith.mulf %11, %11 : vector<256x128xf32>
    %cst_11 = arith.constant dense<0.000000e+00> : vector<128xf32>
    %16 = vector.multi_reduction <add>, %15, %cst_11 [0] : vector<256x128xf32> to vector<128xf32>
    %17 = vector.shape_cast %16 : vector<128xf32> to vector<1x128xf32>
    %18 = tpu.concatenate %14, %17 in 0 : vector<1x128xf32>, vector<1x128xf32> -> vector<2x128xf32>
    %19 = vector.shape_cast %18 : vector<2x128xf32> to vector<1x2x128xf32>
    %c0_12 = arith.constant 0 : index
    %c0_13 = arith.constant 0 : index
    %c0_14 = arith.constant 0 : index
    %20 = vector.load %arg6[%c0_12, %c0_13, %c0_14] : memref<1x2x128xf32, #tpu.memory_space<vmem>>, vector<1x2x128xf32>
    tpu.vector_store %arg6[%c0_12, %c0_13, %c0_14], %19 {strides = array<i32>} : memref<1x2x128xf32, #tpu.memory_space<vmem>>, vector<1x2x128xf32>,
    return
  }
  func.func @transform_0(%arg0: i32) -> (i32, i32) {
    %c0_i32 = arith.constant 0 : i32
    %c0_i32_0 = arith.constant 0 : i32
    return %arg0, %c0_i32 : i32, i32
  }
  func.func @transform_1(%arg0: i32) -> (i32, i32) {
    %c0_i32 = arith.constant 0 : i32
    %c0_i32_0 = arith.constant 0 : i32
    %c0_i32_1 = arith.constant 0 : i32
    return %c0_i32, %c0_i32_0 : i32, i32
  }
  func.func @transform_2(%arg0: i32) -> (i32, i32) {
    %c0_i32 = arith.constant 0 : i32
    %c0_i32_0 = arith.constant 0 : i32
    %c0_i32_1 = arith.constant 0 : i32
    return %c0_i32, %c0_i32_0 : i32, i32
  }
  func.func @transform_3(%arg0: i32) -> (i32, i32) {
    %c0_i32 = arith.constant 0 : i32
    %c0_i32_0 = arith.constant 0 : i32
    %c0_i32_1 = arith.constant 0 : i32
    return %c0_i32, %c0_i32_0 : i32, i32
  }
  func.func @transform_4(%arg0: i32) -> (i32, i32) {
    %c0_i32 = arith.constant 0 : i32
    %c0_i32_0 = arith.constant 0 : i32
    return %arg0, %c0_i32 : i32, i32
  }
  func.func @transform_5(%arg0: i32) -> (i32, i32, i32) {
    %c0_i32 = arith.constant 0 : i32
    %c0_i32_0 = arith.constant 0 : i32
    %c0_i32_1 = arith.constant 0 : i32
    return %arg0, %c0_i32, %c0_i32_0 : i32, i32, i32
  }
}

</mosaic_0001>

<bundles_post_ra>
// kernel: bottleneck_forward.4
= control target key start
LH: loop header
LB: loop body
LE: loop exit
PB: predicated region body
PF: predicated region fallthrough
CT: control target
= control target key end

     0   :  { %s839_s12 = smov 0   ;;  %s1041_s0 = inlined_call_operand.vmem [shape: f32[512,128], index: 0, kind: input, shape index: {}]   ;;  %s1042_s1 = inlined_call_operand.vmem [shape: bf16[128,128], index: 1, kind: input, shape index: {}]   ;;  %s1043_s2 = inlined_call_operand.vmem [shape: f32[512,128], index: 2, kind: output, shape index: {0}]   ;;  %s1044_s3 = inlined_call_operand.vmem [shape: f32[2,2,128], index: 3, kind: output, shape index: {1}]  }
   0x1 LB: > { %s845_s13 = sadd.s32 4294967295, %s817_s12   ;;  %p691_p0 = scmp.ge.s32.totalorder %s817_s12, 1  ;;  %s817_s12 = sphi %s839_s12, %s14_s12  }
   0x2   : > { %p141_p1 = scmp.lt.s32.totalorder %s817_s12, 3 }
   0x4   : > { %p142_p2 = pnand %p691_p0, %p141_p1 }
   0x5   : > { %v803_v0 = vld [vmem:[%s1042_s1] sm:$0xff] (!%p142_p2)   ;;  %s692_s16 = sshll.u32 (!%p142_p2), %s845_s13, 5  ;;  %v804_v1 = vld [vmem:[%s1042_s1 + $0x8] sm:$0xff] (!%p142_p2)   ;;  %v805_v2 = vld [vmem:[%s1042_s1 + $0x10] sm:$0xff] (!%p142_p2)   ;;  %p181_p4 = scmp.lt.s32.totalorder (!%p142_p2), %s845_s13, 1  ;;  %vm597_vm0 = vcmask (!%p142_p2), 1040384  }
   0x6   : > { %145 = sbr.rel (%p142_p2) target bundleno = 331 (0x14b), region = 28  ;;  %p170_p3 = scmp.lt.s32.totalorder (!%p142_p2), %s692_s16, 63  ;;  %731 = vmatprep.subr.bf16.mxu0 (!%p142_p2), %v803_v0  ;;  %779 = vmatprep.subr.bf16.mxu1 (!%p142_p2), %v803_v0  ;;  %v806_v3 = vld [vmem:[%s1042_s1 + $0x18] sm:$0xff] (!%p142_p2)   ;;  %v807_v7 = vld [vmem:[%s1042_s1 + $0x20] sm:$0xff] (!%p142_p2)   ;;  %v808_v11 = vld [vmem:[%s1042_s1 + $0x28] sm:$0xff] (!%p142_p2)  }
   0x7   : > { %732 = vmatpush3.bf16.msra.mxu0 (!%p142_p2), %v803_v0  ;;  %787 = vmatpush3.bf16.msra.mxu1 (!%p142_p2), %v803_v0  ;;  %v809_v12 = vld [vmem:[%s1042_s1 + $0x30] sm:$0xff] (!%p142_p2)   ;;  %v810_v13 = vld [vmem:[%s1042_s1 + $0x38] sm:$0xff] (!%p142_p2)  }
   0x8   : > { %733 = vmatprep.subr.bf16.mxu0 (!%p142_p2), %v804_v1  ;;  %780 = vmatprep.subr.bf16.mxu1 (!%p142_p2), %v804_v1 }
   0xb   : > { %734 = vmatpush3.bf16.msra.mxu0 (!%p142_p2), %v804_v1  ;;  %788 = vmatpush3.bf16.msra.mxu1 (!%p142_p2), %v804_v1 }
   0xc   : > { %735 = vmatprep.subr.bf16.mxu0 (!%p142_p2), %v805_v2  ;;  %781 = vmatprep.subr.bf16.mxu1 (!%p142_p2), %v805_v2 }
   0xd   : > { %s1046_s16 = smov (!%p170_p3, %s692_s16), 63  ;;  %s1048_s13 = smov (!%p181_p4, %s845_s13), 1 }
   0xe   : > { %s693_s21 = sshll.u32 %s1046_s16, 3  ;;  %s696_s11 = sshll.u32 %s1048_s13, 1 }
   0xf   : > { %s867_s24 = scalar_lea.vmem %s1041_s0, %s693_s21  ;;  %736 = vmatpush3.bf16.msra.mxu0 %v805_v2  ;;  %789 = vmatpush3.bf16.msra.mxu1 %v805_v2  ;;  %s921_s10 = scalar_lea.vmem %s1043_s2, %s693_s21 }
  0x10   : > { %v186_v4 = vld [vmem:[%s867_s24] sm:$0xff]  ;;  %v187_v5 = vld [vmem:[%s867_s24 + $0x8] sm:$0xff]  ;;  %737 = vmatprep.subr.bf16.mxu0 %v806_v3  ;;  %782 = vmatprep.subr.bf16.mxu1 %v806_v3  ;;  %v188_v14 = vld [vmem:[%s867_s24 + $0x10] sm:$0xff]  ;;  %s184_s16 = scalar_lea.vmem %s1044_s3, %s696_s11 }
  0x11   : > { %v218_v6 = vpack.c.bf16 %v187_v5, %v186_v4  ;;  %v202_v8 = vld [vmem:[%s867_s24 + $0x80] sm:$0xff]  ;;  %v203_v9 = vld [vmem:[%s867_s24 + $0x88] sm:$0xff]  ;;  %v189_v15 = vld [vmem:[%s867_s24 + $0x18] sm:$0xff] }
  0x12   : > { %v226_v10 = vpack.c.bf16 %v203_v9, %v202_v8  ;;  %v190_v16 = vld [vmem:[%s867_s24 + $0x20] sm:$0xff]  ;;  %v191_v17 = vld [vmem:[%s867_s24 + $0x28] sm:$0xff]  ;;  %v204_v18 = vld [vmem:[%s867_s24 + $0x90] sm:$0xff]  ;;  %v219_v22 = vpack.c.bf16 %v189_v15, %v188_v14 }
  0x13   : > { %747 = vmatprep.mubr.bf16.mxu0 %v218_v6  ;;  %738 = vmatpush3.bf16.msra.mxu0 %v806_v3  ;;  %v205_v19 = vld [vmem:[%s867_s24 + $0x98] sm:$0xff]  ;;  %v206_v20 = vld [vmem:[%s867_s24 + $0xa0] sm:$0xff]  ;;  %v207_v21 = vld [vmem:[%s867_s24 + $0xa8] sm:$0xff]  ;;  %v220_v23 = vpack.c.bf16 %v191_v17, %v190_v16 }
  0x14   : > { %739 = vmatprep.subr.bf16.mxu0 %v807_v7  ;;  %790 = vmatpush3.bf16.msra.mxu1 %v806_v3  ;;  %v227_v24 = vpack.c.bf16 %v205_v19, %v204_v18  ;;  %v228_v25 = vpack.c.bf16 %v207_v21, %v206_v20  ;;  %v192_v26 = vld [vmem:[%s867_s24 + $0x30] sm:$0xff]  ;;  %v193_v27 = vld [vmem:[%s867_s24 + $0x38] sm:$0xff]  ;;  %v194_v28 = vld [vmem:[%s867_s24 + $0x40] sm:$0xff] }
  0x15   : > { %783 = vmatprep.subr.bf16.mxu1 %v807_v7  ;;  %763 = vmatprep.mubr.bf16.mxu1 %v226_v10  ;;  %v195_v29 = vld [vmem:[%s867_s24 + $0x48] sm:$0xff]  ;;  %v208_v30 = vld [vmem:[%s867_s24 + $0xb0] sm:$0xff]  ;;  %v209_v31 = vld [vmem:[%s867_s24 + $0xb8] sm:$0xff]  ;;  %v221_v34 = vpack.c.bf16 %v193_v27, %v192_v26 }
  0x16   : > { %v210_v32 = vld [vmem:[%s867_s24 + $0xc0] sm:$0xff]  ;;  %v211_v33 = vld [vmem:[%s867_s24 + $0xc8] sm:$0xff]  ;;  %v222_v35 = vpack.c.bf16 %v195_v29, %v194_v28  ;;  %v229_v36 = vpack.c.bf16 %v209_v31, %v208_v30  ;;  %v196_v38 = vld [vmem:[%s867_s24 + $0x50] sm:$0xff] }
  0x17   : > { %740 = vmatpush3.bf16.msra.mxu0 %v807_v7  ;;  %v230_v37 = vpack.c.bf16 %v211_v33, %v210_v32  ;;  %v197_v39 = vld [vmem:[%s867_s24 + $0x58] sm:$0xff]  ;;  %v198_v40 = vld [vmem:[%s867_s24 + $0x60] sm:$0xff]  ;;  %v199_v41 = vld [vmem:[%s867_s24 + $0x68] sm:$0xff] }
  0x18   : > { %741 = vmatprep.subr.bf16.mxu0 %v808_v11  ;;  %791 = vmatpush3.bf16.msra.mxu1 %v807_v7  ;;  %v212_v42 = vld [vmem:[%s867_s24 + $0xd0] sm:$0xff]  ;;  %v213_v43 = vld [vmem:[%s867_s24 + $0xd8] sm:$0xff]  ;;  %v214_v44 = vld [vmem:[%s867_s24 + $0xe0] sm:$0xff]  ;;  %v223_v46 = vpack.c.bf16 %v197_v39, %v196_v38  ;;  %v224_v47 = vpack.c.bf16 %v199_v41, %v198_v40 }
  0x19   : > { %784 = vmatprep.subr.bf16.mxu1 %v808_v11  ;;  %v215_v45 = vld [vmem:[%s867_s24 + $0xe8] sm:$0xff]  ;;  %v231_v48 = vpack.c.bf16 %v213_v43, %v212_v42  ;;  %v200_v50 = vld [vmem:[%s867_s24 + $0x70] sm:$0xff]  ;;  %v201_v51 = vld [vmem:[%s867_s24 + $0x78] sm:$0xff] }
  0x1a   : > { %v232_v49 = vpack.c.bf16 %v215_v45, %v214_v44  ;;  %v216_v52 = vld [vmem:[%s867_s24 + $0xf0] sm:$0xff]  ;;  %v217_v53 = vld [vmem:[%s867_s24 + $0xf8] sm:$0xff]  ;;  %v225_v54 = vpack.c.bf16 %v201_v51, %v200_v50 }
  0x1b   : > { %742 = vmatpush3.bf16.msra.mxu0 %v808_v11  ;;  %v233_v55 = vpack.c.bf16 %v217_v53, %v216_v52 }
  0x1c   : > { %743 = vmatprep.subr.bf16.mxu0 %v809_v12  ;;  %792 = vmatpush3.bf16.msra.mxu1 %v808_v11 }
  0x1d   : > { %785 = vmatprep.subr.bf16.mxu1 %v809_v12 }
  0x1f   : > { %744 = vmatpush3.bf16.msra.mxu0 %v809_v12 }
  0x20   : > { %745 = vmatprep.subr.bf16.mxu0 %v810_v13  ;;  %793 = vmatpush3.bf16.msra.mxu1 %v809_v12 }
  0x21   : > { %786 = vmatprep.subr.bf16.mxu1 %v810_v13 }
  0x23   : > { %746 = vmatpush3.bf16.msra.mxu0 %v810_v13 }
  0x24   : > { %794 = vmatpush3.bf16.msra.mxu1 %v810_v13 }
  0x26   : > { %748 = vmatmul.mubr.bf16.vlgmr.msra.gmra.mrb[0].mxu0 %v219_v22 }
  0x27   : > { %751 = vmatprep.mubr.bf16.mxu0 %v220_v23  ;;  %764 = vmatmul.mubr.bf16.vlgmr.msra.gmra.mrb[0].mxu1 %v227_v24 }
  0x28   : > { %767 = vmatprep.mubr.bf16.mxu1 %v228_v25 }
  0x2e   : > { %752 = vmatmul.mubr.bf16.gmra.mrb[4].mxu0 %v221_v34 }
  0x2f   : > { %755 = vmatprep.mubr.bf16.mxu0 %v222_v35  ;;  %768 = vmatmul.mubr.bf16.gmra.mrb[4].mxu1 %v229_v36 }
  0x30   : > { %771 = vmatprep.mubr.bf16.mxu1 %v230_v37 }
  0x36   : > { %756 = vmatmul.mubr.bf16.gmra.mrb[8].mxu0 %v223_v46 }
  0x37   : > { %759 = vmatprep.mubr.bf16.mxu0 %v224_v47  ;;  %772 = vmatmul.mubr.bf16.gmra.mrb[8].mxu1 %v231_v48 }
  0x38   : > { %775 = vmatprep.mubr.bf16.mxu1 %v232_v49 }
  0x3e   : > { %760 = vmatmul.mubr.bf16.gmra.mrb[12].mxu0 %v225_v54 }
  0x3f   : > { %776 = vmatmul.mubr.bf16.gmra.mrb[12].mxu1 %v233_v55 }
  0xf9   : > { %v749_v56 = vpop.f32.mrb[0].mxu0 }
  0xfa   : > { %461 = vst [vmem:[%s921_s10 + $0x10] sm:$0xff] %v749_v56  ;;  %v332_v57 = vpop.f32.mrb[1].mxu0  ;;  %v924_v58 = vpop.f32.mrb[0].mxu1  ;;  %v530_v3 = vmul.f32 %v749_v56, %v749_v56 }
  0xfb   : > { %459 = vst [vmem:[%s921_s10] sm:$0xff] %v332_v57  ;;  %v750_v59 = vpop.f32.mrb[2].mxu0  ;;  %477 = vst [vmem:[%s921_s10 + $0x90] sm:$0xff] %v924_v58  ;;  %v929_v60 = vpop.f32.mrb[1].mxu1  ;;  %v528_v63 = vmul.f32 %v332_v57, %v332_v57 }
  0xfc   : > { %462 = vst [vmem:[%s921_s10 + $0x18] sm:$0xff] %v750_v59  ;;  %v335_v61 = vpop.f32.mrb[3].mxu0  ;;  %475 = vst [vmem:[%s921_s10 + $0x80] sm:$0xff] %v929_v60  ;;  %v934_v62 = vpop.f32.mrb[2].mxu1  ;;  %v531_v6 = vmul.f32 %v750_v59, %v750_v59 }
  0xfd   : > { %460 = vst [vmem:[%s921_s10 + $0x8] sm:$0xff] %v335_v61  ;;  %v491_v0 = vadd.f32 %v335_v61, %v332_v57  ;;  %v529_v1 = vmul.f32 %v335_v61, %v335_v61  ;;  %478 = vst [vmem:[%s921_s10 + $0x98] sm:$0xff] %v934_v62  ;;  %v939_v2 = vpop.f32.mrb[3].mxu1 }
  0xfe   : > { %476 = vst [vmem:[%s921_s10 + $0x88] sm:$0xff] %v939_v2 }
  0xff   : > { %v492_v4 = vadd.f32 %v749_v56, %v491_v0  ;;  %v560_v5 = vadd.f32 %v529_v1, %v528_v63 }
 0x101   : > { %v561_v7 = vadd.f32 %v560_v5, %v530_v3  ;;  %v753_v8 = vpop.f32.mrb[4].mxu0  ;;  %v493_v9 = vadd.f32 %v750_v59, %v492_v4 }
 0x102   : > { %465 = vst [vmem:[%s921_s10 + $0x30] sm:$0xff] %v753_v8  ;;  %v348_v10 = vpop.f32.mrb[5].mxu0  ;;  %v944_v11 = vpop.f32.mrb[4].mxu1  ;;  %v534_v23 = vmul.f32 %v753_v8, %v753_v8 }
 0x103   : > { %463 = vst [vmem:[%s921_s10 + $0x20] sm:$0xff] %v348_v10  ;;  %v494_v12 = vadd.f32 %v493_v9, %v348_v10  ;;  %v532_v13 = vmul.f32 %v348_v10, %v348_v10  ;;  %v562_v14 = vadd.f32 %v561_v7, %v531_v6  ;;  %v754_v15 = vpop.f32.mrb[6].mxu0  ;;  %481 = vst [vmem:[%s921_s10 + $0xb0] sm:$0xff] %v944_v11  ;;  %v949_v16 = vpop.f32.mrb[5].mxu1 }
 0x104   : > { %466 = vst [vmem:[%s921_s10 + $0x38] sm:$0xff] %v754_v15  ;;  %v351_v17 = vpop.f32.mrb[7].mxu0  ;;  %479 = vst [vmem:[%s921_s10 + $0xa0] sm:$0xff] %v949_v16  ;;  %v954_v18 = vpop.f32.mrb[6].mxu1  ;;  %v535_v26 = vmul.f32 %v754_v15, %v754_v15  ;;  %v544_v9 = vmul.f32 %v929_v60, %v929_v60 }
 0x105   : > { %v563_v19 = vadd.f32 %v562_v14, %v532_v13  ;;  %464 = vst [vmem:[%s921_s10 + $0x28] sm:$0xff] %v351_v17  ;;  %v495_v20 = vadd.f32 %v494_v12, %v351_v17  ;;  %v533_v21 = vmul.f32 %v351_v17, %v351_v17  ;;  %482 = vst [vmem:[%s921_s10 + $0xb8] sm:$0xff] %v954_v18  ;;  %v959_v22 = vpop.f32.mrb[7].mxu1 }
 0x106   : > { %480 = vst [vmem:[%s921_s10 + $0xa8] sm:$0xff] %v959_v22  ;;  %v546_v17 = vmul.f32 %v924_v58, %v924_v58 }
 0x107   : > { %v496_v24 = vadd.f32 %v753_v8, %v495_v20  ;;  %v564_v25 = vadd.f32 %v563_v19, %v533_v21  ;;  %v547_v21 = vmul.f32 %v934_v62, %v934_v62 }
 0x109   : > { %v565_v27 = vadd.f32 %v564_v25, %v534_v23  ;;  %v757_v28 = vpop.f32.mrb[8].mxu0  ;;  %v497_v29 = vadd.f32 %v754_v15, %v496_v24  ;;  %v545_v15 = vmul.f32 %v939_v2, %v939_v2 }
 0x10a   : > { %469 = vst [vmem:[%s921_s10 + $0x50] sm:$0xff] %v757_v28  ;;  %v364_v30 = vpop.f32.mrb[9].mxu0  ;;  %v964_v31 = vpop.f32.mrb[8].mxu1  ;;  %v538_v43 = vmul.f32 %v757_v28, %v757_v28 }
 0x10b   : > { %467 = vst [vmem:[%s921_s10 + $0x40] sm:$0xff] %v364_v30  ;;  %v498_v32 = vadd.f32 %v497_v29, %v364_v30  ;;  %v536_v33 = vmul.f32 %v364_v30, %v364_v30  ;;  %v566_v34 = vadd.f32 %v565_v27, %v535_v26  ;;  %v758_v35 = vpop.f32.mrb[10].mxu0  ;;  %485 = vst [vmem:[%s921_s10 + $0xd0] sm:$0xff] %v964_v31  ;;  %v969_v36 = vpop.f32.mrb[9].mxu1 }
 0x10c   : > { %470 = vst [vmem:[%s921_s10 + $0x58] sm:$0xff] %v758_v35  ;;  %v367_v37 = vpop.f32.mrb[11].mxu0  ;;  %483 = vst [vmem:[%s921_s10 + $0xc0] sm:$0xff] %v969_v36  ;;  %v974_v38 = vpop.f32.mrb[10].mxu1  ;;  %v539_v46 = vmul.f32 %v758_v35, %v758_v35 }
 0x10d   : > { %v567_v39 = vadd.f32 %v566_v34, %v536_v33  ;;  %468 = vst [vmem:[%s921_s10 + $0x48] sm:$0xff] %v367_v37  ;;  %v499_v40 = vadd.f32 %v498_v32, %v367_v37  ;;  %v537_v41 = vmul.f32 %v367_v37, %v367_v37  ;;  %486 = vst [vmem:[%s921_s10 + $0xd8] sm:$0xff] %v974_v38  ;;  %v979_v42 = vpop.f32.mrb[11].mxu1 }
 0x10e   : > { %484 = vst [vmem:[%s921_s10 + $0xc8] sm:$0xff] %v979_v42 }
 0x10f   : > { %v500_v44 = vadd.f32 %v757_v28, %v499_v40  ;;  %v568_v45 = vadd.f32 %v567_v39, %v537_v41  ;;  %v549_v28 = vmul.f32 %v959_v22, %v959_v22  ;;  %v553_v39 = vmul.f32 %v979_v42, %v979_v42 }
 0x111   : > { %v569_v47 = vadd.f32 %v568_v45, %v538_v43  ;;  %v761_v48 = vpop.f32.mrb[12].mxu0  ;;  %v501_v49 = vadd.f32 %v758_v35, %v500_v44 }
 0x112   : > { %473 = vst [vmem:[%s921_s10 + $0x70] sm:$0xff] %v761_v48  ;;  %v380_v50 = vpop.f32.mrb[13].mxu0  ;;  %v984_v51 = vpop.f32.mrb[12].mxu1  ;;  %v542_v3 = vmul.f32 %v761_v48, %v761_v48 }
 0x113   : > { %471 = vst [vmem:[%s921_s10 + $0x60] sm:$0xff] %v380_v50  ;;  %v502_v52 = vadd.f32 %v501_v49, %v380_v50  ;;  %v540_v53 = vmul.f32 %v380_v50, %v380_v50  ;;  %v570_v54 = vadd.f32 %v569_v47, %v539_v46  ;;  %v762_v55 = vpop.f32.mrb[14].mxu0  ;;  %489 = vst [vmem:[%s921_s10 + $0xf0] sm:$0xff] %v984_v51  ;;  %v444_v56 = vpop.f32.mrb[13].mxu1 }
 0x114   : > { %474 = vst [vmem:[%s921_s10 + $0x78] sm:$0xff] %v762_v55  ;;  %v383_v57 = vpop.f32.mrb[15].mxu0  ;;  %487 = vst [vmem:[%s921_s10 + $0xe0] sm:$0xff] %v444_v56  ;;  %v778_v59 = vpop.f32.mrb[14].mxu1  ;;  %v543_v6 = vmul.f32 %v762_v55, %v762_v55  ;;  %v556_v44 = vmul.f32 %v444_v56, %v444_v56  ;;  %v558_v49 = vmul.f32 %v984_v51, %v984_v51 }
 0x115   : > { %v571_v61 = vadd.f32 %v570_v54, %v540_v53  ;;  %472 = vst [vmem:[%s921_s10 + $0x68] sm:$0xff] %v383_v57  ;;  %v503_v63 = vadd.f32 %v502_v52, %v383_v57  ;;  %v541_v0 = vmul.f32 %v383_v57, %v383_v57  ;;  %490 = vst [vmem:[%s921_s10 + $0xf8] sm:$0xff] %v778_v59  ;;  %v447_v1 = vpop.f32.mrb[15].mxu1 }
 0x116   : > { %488 = vst [vmem:[%s921_s10 + $0xe8] sm:$0xff] %v447_v1  ;;  %v559_v52 = vmul.f32 %v778_v59, %v778_v59 }
 0x117   : > { %v504_v4 = vadd.f32 %v761_v48, %v503_v63  ;;  %v572_v5 = vadd.f32 %v571_v61, %v541_v0 }
 0x119   : > { %v573_v7 = vadd.f32 %v572_v5, %v542_v3  ;;  %v505_v8 = vadd.f32 %v762_v55, %v504_v4 }
 0x11b   : > { %v506_v10 = vadd.f32 %v505_v8, %v929_v60  ;;  %v574_v12 = vadd.f32 %v573_v7, %v543_v6  ;;  %v548_v60 = vmul.f32 %v949_v16, %v949_v16 }
 0x11d   : > { %v575_v13 = vadd.f32 %v574_v12, %v544_v9  ;;  %v507_v14 = vadd.f32 %v506_v10, %v939_v2 }
 0x11f   : > { %v508_v19 = vadd.f32 %v924_v58, %v507_v14  ;;  %v576_v20 = vadd.f32 %v575_v13, %v545_v15  ;;  %v550_v58 = vmul.f32 %v944_v11, %v944_v11 }
 0x121   : > { %v577_v23 = vadd.f32 %v576_v20, %v546_v17  ;;  %v509_v24 = vadd.f32 %v934_v62, %v508_v19  ;;  %v551_v62 = vmul.f32 %v954_v18, %v954_v18 }
 0x123   : > { %v510_v25 = vadd.f32 %v509_v24, %v949_v16  ;;  %v578_v26 = vadd.f32 %v577_v23, %v547_v21  ;;  %v552_v16 = vmul.f32 %v969_v36, %v969_v36 }
 0x125   : > { %v579_v27 = vadd.f32 %v578_v26, %v548_v60  ;;  %v511_v2 = vadd.f32 %v510_v25, %v959_v22 }
 0x127   : > { %v512_v29 = vadd.f32 %v944_v11, %v511_v2  ;;  %v580_v30 = vadd.f32 %v579_v27, %v549_v28  ;;  %v554_v11 = vmul.f32 %v964_v31, %v964_v31 }
 0x129   : > { %v581_v32 = vadd.f32 %v580_v30, %v550_v58  ;;  %v513_v33 = vadd.f32 %v954_v18, %v512_v29  ;;  %v555_v18 = vmul.f32 %v974_v38, %v974_v38 }
 0x12b   : > { %v514_v34 = vadd.f32 %v513_v33, %v969_v36  ;;  %v582_v35 = vadd.f32 %v581_v32, %v551_v62 }
 0x12d   : > { %v583_v37 = vadd.f32 %v582_v35, %v552_v16  ;;  %v515_v22 = vadd.f32 %v514_v34, %v979_v42  ;;  %v557_v42 = vmul.f32 %v447_v1, %v447_v1 }
 0x12f   : > { %v516_v40 = vadd.f32 %v964_v31, %v515_v22  ;;  %v584_v41 = vadd.f32 %v583_v37, %v553_v39 }
 0x131   : > { %v585_v43 = vadd.f32 %v584_v41, %v554_v11  ;;  %v517_v36 = vadd.f32 %v974_v38, %v516_v40 }
 0x133   : > { %v518_v45 = vadd.f32 %v517_v36, %v444_v56  ;;  %v586_v46 = vadd.f32 %v585_v43, %v555_v18 }
 0x135   : > { %v587_v47 = vadd.f32 %v586_v46, %v556_v44  ;;  %v519_v48 = vadd.f32 %v518_v45, %v447_v1 }
 0x137   : > { %v520_v31 = vadd.f32 %v984_v51, %v519_v48  ;;  %v588_v50 = vadd.f32 %v587_v47, %v557_v42 }
 0x139   : > { %v521_v53 = vadd.f32 %v778_v59, %v520_v31  ;;  %v589_v54 = vadd.f32 %v588_v50, %v558_v49 }
 0x13b   : > { %v522_v55 = vrot.slane %v521_v53, 4  ;;  %v590_v57 = vadd.f32 %v589_v54, %v559_v52 }
 0x13d   : > { %v523_v38 = vadd.f32 %v522_v55, %v521_v53  ;;  %v591_v61 = vrot.slane %v590_v57, 4 }
 0x13f   : > { %v524_v56 = vrot.slane %v523_v38, 2  ;;  %v592_v63 = vadd.f32 %v591_v61, %v590_v57 }
 0x141   : > { %v525_v0 = vadd.f32 %v524_v56, %v523_v38  ;;  %v593_v3 = vrot.slane %v592_v63, 2 }
 0x143   : > { %v526_v1 = vrot.slane %v525_v0, 1  ;;  %v594_v4 = vadd.f32 %v593_v3, %v592_v63 }
 0x145   : > { %v595_v5 = vrot.slane %v594_v4, 1  ;;  %v527_v51 = vadd.f32 %v526_v1, %v525_v0 }
 0x147   : > { %v596_v59 = vadd.f32 %v595_v5, %v594_v4 }
 0x149   : > { %v598_v6 = vsel %vm597_vm0, %v527_v51, %v596_v59 }
 0x14a   : > { %599 = vst [vmem:[%s184_s16] sm:$0x3] %v598_v6 }
 0x14b PF: > { %s14_s12 = sadd.s32 1, %s817_s12  }
 0x14c   : > { %p11_p5 = scmp.ge.s32.totalorder %s14_s12, 4  }
 0x14e   :  { %13 = sbr.rel (!%p11_p5) target bundleno = 1 (0x1), region = 70 }

// kernel: bottleneck_forward.7
= control target key start
LH: loop header
LB: loop body
LE: loop exit
PB: predicated region body
PF: predicated region fallthrough
CT: control target
= control target key end

     0   :  { %s585_s15 = smov 0   ;;  %s786_s0 = inlined_call_operand.vmem [shape: f32[512,128], index: 0, kind: input, shape index: {}]   ;;  %s787_s1 = inlined_call_operand.vmem [shape: f32[512,128], index: 1, kind: input, shape index: {}]   ;;  %s788_s2 = inlined_call_operand.vmem [shape: f32[1,128], index: 2, kind: input, shape index: {}]   ;;  %s789_s3 = inlined_call_operand.vmem [shape: f32[1,128], index: 3, kind: input, shape index: {}]   ;;  %s790_s4 = inlined_call_operand.vmem [shape: f32[512,128], index: 4, kind: output, shape index: {}]  }
   0x1 LB: > { %s529_s16 = sadd.s32 4294967295, %s558_s15   ;;  %p533_p0 = scmp.ge.s32.totalorder %s558_s15, 1  ;;  %s558_s15 = sphi %s585_s15, %s14_s15  }
   0x2   : > { %p174_p1 = scmp.lt.s32.totalorder %s558_s15, 3 }
   0x4   : > { %p175_p2 = pnand %p533_p0, %p174_p1 }
   0x5   : > { %s534_s17 = sshll.u32 (!%p175_p2), %s529_s16, 5  ;;  %v598_v0 = vld [vmem:[%s788_s2] ss:$0 sm:$0xff] (!%p175_p2) }
   0x6   : > { %178 = sbr.rel (%p175_p2) target bundleno = 55 (0x37), region = 36  ;;  %p206_p3 = scmp.lt.s32.totalorder (!%p175_p2), %s534_s17, 63  ;;  %v616_v2 = vld [vmem:[%s789_s3] ss:$0 sm:$0xff] (!%p175_p2) }
   0xd   : > { %s792_s17 = smov (!%p206_p3, %s534_s17), 63 }
   0xe   : > { %s593_s18 = sshll.u32 %s792_s17, 3 }
   0xf   : > { %s604_s23 = scalar_lea.vmem %s786_s0, %s593_s18  ;;  %s610_s26 = scalar_lea.vmem %s787_s1, %s593_s18 }
  0x10   : > { %v223_v1 = vld [vmem:[%s604_s23] sm:$0xff]  ;;  %v224_v3 = vld [vmem:[%s604_s23 + $0x8] sm:$0xff]  ;;  %v225_v7 = vld [vmem:[%s604_s23 + $0x10] sm:$0xff]  ;;  %s646_s5 = scalar_lea.vmem %s790_s4, %s593_s18 }
  0x11   : > { %v262_v4 = vmul.f32 %v598_v0, %v223_v1  ;;  %v333_v5 = vld [vmem:[%s610_s26] sm:$0xff]  ;;  %v263_v6 = vmul.f32 %v598_v0, %v224_v3  ;;  %v334_v8 = vld [vmem:[%s610_s26 + $0x8] sm:$0xff]  ;;  %v264_v9 = vmul.f32 %v598_v0, %v225_v7  ;;  %v226_v10 = vld [vmem:[%s604_s23 + $0x18] sm:$0xff] }
  0x12   : > { %v227_v11 = vld [vmem:[%s604_s23 + $0x20] sm:$0xff]  ;;  %v335_v14 = vld [vmem:[%s610_s26 + $0x10] sm:$0xff]  ;;  %v265_v15 = vmul.f32 %v598_v0, %v226_v10  ;;  %v336_v16 = vld [vmem:[%s610_s26 + $0x18] sm:$0xff] }
  0x13   : > { %v301_v12 = vadd.f32 %v616_v2, %v262_v4  ;;  %v302_v13 = vadd.f32 %v616_v2, %v263_v6  ;;  %v266_v17 = vmul.f32 %v598_v0, %v227_v11  ;;  %v228_v18 = vld [vmem:[%s604_s23 + $0x28] sm:$0xff]  ;;  %v303_v19 = vadd.f32 %v616_v2, %v264_v9  ;;  %v337_v20 = vld [vmem:[%s610_s26 + $0x20] sm:$0xff]  ;;  %v229_v22 = vld [vmem:[%s604_s23 + $0x30] sm:$0xff] }
  0x14   : > { %v267_v21 = vmul.f32 %v598_v0, %v228_v18  ;;  %v230_v23 = vld [vmem:[%s604_s23 + $0x38] sm:$0xff]  ;;  %v304_v26 = vadd.f32 %v616_v2, %v265_v15  ;;  %v338_v28 = vld [vmem:[%s610_s26 + $0x28] sm:$0xff]  ;;  %v268_v31 = vmul.f32 %v598_v0, %v229_v22  ;;  %v231_v33 = vld [vmem:[%s604_s23 + $0x40] sm:$0xff] }
  0x15   : > { %v365_v24 = vadd.f32 %v333_v5, %v301_v12  ;;  %v366_v25 = vadd.f32 %v334_v8, %v302_v13  ;;  %v305_v27 = vadd.f32 %v616_v2, %v266_v17  ;;  %v367_v29 = vadd.f32 %v335_v14, %v303_v19  ;;  %v232_v34 = vld [vmem:[%s604_s23 + $0x48] sm:$0xff]  ;;  %v339_v39 = vld [vmem:[%s610_s26 + $0x30] sm:$0xff]  ;;  %v340_v40 = vld [vmem:[%s610_s26 + $0x38] sm:$0xff] }
  0x16   : > { %v306_v30 = vadd.f32 %v616_v2, %v267_v21  ;;  %v269_v32 = vmul.f32 %v598_v0, %v230_v23  ;;  %v368_v37 = vadd.f32 %v336_v16, %v304_v26  ;;  %v233_v41 = vld [vmem:[%s604_s23 + $0x50] sm:$0xff]  ;;  %v307_v44 = vadd.f32 %v616_v2, %v268_v31  ;;  %v234_v46 = vld [vmem:[%s604_s23 + $0x58] sm:$0xff]  ;;  %v235_v47 = vld [vmem:[%s604_s23 + $0x60] sm:$0xff] }
  0x17   : > { %v397_v35 = vmax.f32 %v365_v24, 0.0  ;;  %v398_v36 = vmax.f32 %v366_v25, 0.0  ;;  %v369_v38 = vadd.f32 %v337_v20, %v305_v27  ;;  %v399_v42 = vmax.f32 %v367_v29, 0.0  ;;  %v236_v52 = vld [vmem:[%s604_s23 + $0x68] sm:$0xff]  ;;  %v341_v56 = vld [vmem:[%s610_s26 + $0x40] sm:$0xff]  ;;  %v343_v61 = vld [vmem:[%s610_s26 + $0x50] sm:$0xff] }
  0x18   : > { %v370_v43 = vadd.f32 %v338_v28, %v306_v30  ;;  %v308_v45 = vadd.f32 %v616_v2, %v269_v32  ;;  %v400_v48 = vmax.f32 %v368_v37, 0.0  ;;  %v270_v50 = vmul.f32 %v598_v0, %v231_v33  ;;  %v342_v57 = vld [vmem:[%s610_s26 + $0x48] sm:$0xff]  ;;  %v237_v1 = vld [vmem:[%s604_s23 + $0x70] sm:$0xff]  ;;  %v238_v3 = vld [vmem:[%s604_s23 + $0x78] sm:$0xff] }
  0x19   : > { %429 = vst [vmem:[%s646_s5] sm:$0xff] %v397_v35  ;;  %430 = vst [vmem:[%s646_s5 + $0x8] sm:$0xff] %v398_v36  ;;  %v401_v49 = vmax.f32 %v369_v38, 0.0  ;;  %v271_v51 = vmul.f32 %v598_v0, %v232_v34  ;;  %v371_v54 = vadd.f32 %v339_v39, %v307_v44  ;;  %v272_v58 = vmul.f32 %v598_v0, %v233_v41  ;;  %v344_v7 = vld [vmem:[%s610_s26 + $0x58] sm:$0xff]  ;;  %v345_v8 = vld [vmem:[%s610_s26 + $0x60] sm:$0xff] }
  0x1a   : > { %431 = vst [vmem:[%s646_s5 + $0x10] sm:$0xff] %v399_v42  ;;  %v402_v53 = vmax.f32 %v370_v43, 0.0  ;;  %v372_v55 = vadd.f32 %v340_v40, %v308_v45  ;;  %432 = vst [vmem:[%s646_s5 + $0x18] sm:$0xff] %v400_v48  ;;  %v309_v59 = vadd.f32 %v616_v2, %v270_v50  ;;  %v273_v62 = vmul.f32 %v598_v0, %v234_v46  ;;  %v346_v14 = vld [vmem:[%s610_s26 + $0x68] sm:$0xff]  ;;  %v239_v19 = vld [vmem:[%s604_s23 + $0x80] sm:$0xff] }
  0x1b   : > { %433 = vst [vmem:[%s646_s5 + $0x20] sm:$0xff] %v401_v49  ;;  %v310_v60 = vadd.f32 %v616_v2, %v271_v51  ;;  %v274_v63 = vmul.f32 %v598_v0, %v235_v47  ;;  %v403_v4 = vmax.f32 %v371_v54, 0.0  ;;  %v311_v6 = vadd.f32 %v616_v2, %v272_v58  ;;  %v240_v20 = vld [vmem:[%s604_s23 + $0x88] sm:$0xff]  ;;  %v347_v25 = vld [vmem:[%s610_s26 + $0x70] sm:$0xff]  ;;  %v348_v26 = vld [vmem:[%s610_s26 + $0x78] sm:$0xff] }
  0x1c   : > { %434 = vst [vmem:[%s646_s5 + $0x28] sm:$0xff] %v402_v53  ;;  %v404_v5 = vmax.f32 %v372_v55, 0.0  ;;  %v275_v9 = vmul.f32 %v598_v0, %v236_v52  ;;  %v373_v10 = vadd.f32 %v341_v56, %v309_v59  ;;  %v312_v12 = vadd.f32 %v616_v2, %v273_v62  ;;  %v241_v27 = vld [vmem:[%s604_s23 + $0x90] sm:$0xff]  ;;  %v242_v32 = vld [vmem:[%s604_s23 + $0x98] sm:$0xff]  ;;  %v243_v33 = vld [vmem:[%s604_s23 + $0xa0] sm:$0xff] }
  0x1d   : > { %v374_v11 = vadd.f32 %v342_v57, %v310_v60  ;;  %v313_v13 = vadd.f32 %v616_v2, %v274_v63  ;;  %435 = vst [vmem:[%s646_s5 + $0x30] sm:$0xff] %v403_v4  ;;  %v375_v15 = vadd.f32 %v343_v61, %v311_v6  ;;  %v276_v17 = vmul.f32 %v598_v0, %v237_v1  ;;  %v244_v38 = vld [vmem:[%s604_s23 + $0xa8] sm:$0xff]  ;;  %v349_v42 = vld [vmem:[%s610_s26 + $0x80] sm:$0xff]  ;;  %v351_v47 = vld [vmem:[%s610_s26 + $0x90] sm:$0xff] }
  0x1e   : > { %436 = vst [vmem:[%s646_s5 + $0x38] sm:$0xff] %v404_v5  ;;  %v314_v16 = vadd.f32 %v616_v2, %v275_v9  ;;  %v277_v18 = vmul.f32 %v598_v0, %v238_v3  ;;  %v405_v21 = vmax.f32 %v373_v10, 0.0  ;;  %v376_v23 = vadd.f32 %v344_v7, %v312_v12  ;;  %v350_v43 = vld [vmem:[%s610_s26 + $0x88] sm:$0xff]  ;;  %v245_v50 = vld [vmem:[%s604_s23 + $0xb0] sm:$0xff]  ;;  %v246_v51 = vld [vmem:[%s604_s23 + $0xb8] sm:$0xff] }
  0x1f   : > { %v406_v22 = vmax.f32 %v374_v11, 0.0  ;;  %v377_v24 = vadd.f32 %v345_v8, %v313_v13  ;;  %v407_v28 = vmax.f32 %v375_v15, 0.0  ;;  %v315_v30 = vadd.f32 %v616_v2, %v276_v17  ;;  %v352_v55 = vld [vmem:[%s610_s26 + $0x98] sm:$0xff]  ;;  %v353_v56 = vld [vmem:[%s610_s26 + $0xa0] sm:$0xff]  ;;  %v354_v62 = vld [vmem:[%s610_s26 + $0xa8] sm:$0xff] }
  0x20   : > { %v378_v29 = vadd.f32 %v346_v14, %v314_v16  ;;  %v316_v31 = vadd.f32 %v616_v2, %v277_v18  ;;  %437 = vst [vmem:[%s646_s5 + $0x40] sm:$0xff] %v405_v21  ;;  %v408_v34 = vmax.f32 %v376_v23, 0.0  ;;  %v278_v36 = vmul.f32 %v598_v0, %v239_v19  ;;  %v247_v5 = vld [vmem:[%s604_s23 + $0xc0] sm:$0xff]  ;;  %v248_v6 = vld [vmem:[%s604_s23 + $0xc8] sm:$0xff]  ;;  %v355_v11 = vld [vmem:[%s610_s26 + $0xb0] sm:$0xff] }
  0x21   : > { %438 = vst [vmem:[%s646_s5 + $0x48] sm:$0xff] %v406_v22  ;;  %v409_v35 = vmax.f32 %v377_v24, 0.0  ;;  %v279_v37 = vmul.f32 %v598_v0, %v240_v20  ;;  %439 = vst [vmem:[%s646_s5 + $0x50] sm:$0xff] %v407_v28  ;;  %v379_v40 = vadd.f32 %v347_v25, %v315_v30  ;;  %v280_v44 = vmul.f32 %v598_v0, %v241_v27  ;;  %v356_v12 = vld [vmem:[%s610_s26 + $0xb8] sm:$0xff]  ;;  %v249_v13 = vld [vmem:[%s604_s23 + $0xd0] sm:$0xff] }
  0x22   : > { %v410_v39 = vmax.f32 %v378_v29, 0.0  ;;  %v380_v41 = vadd.f32 %v348_v26, %v316_v31  ;;  %440 = vst [vmem:[%s646_s5 + $0x58] sm:$0xff] %v408_v34  ;;  %v317_v45 = vadd.f32 %v616_v2, %v278_v36  ;;  %v281_v48 = vmul.f32 %v598_v0, %v242_v32  ;;  %v250_v18 = vld [vmem:[%s604_s23 + $0xd8] sm:$0xff]  ;;  %v251_v19 = vld [vmem:[%s604_s23 + $0xe0] sm:$0xff]  ;;  %v252_v24 = vld [vmem:[%s604_s23 + $0xe8] sm:$0xff] }
  0x23   : > { %441 = vst [vmem:[%s646_s5 + $0x60] sm:$0xff] %v409_v35  ;;  %v318_v46 = vadd.f32 %v616_v2, %v279_v37  ;;  %v282_v49 = vmul.f32 %v598_v0, %v243_v33  ;;  %v411_v52 = vmax.f32 %v379_v40, 0.0  ;;  %v319_v54 = vadd.f32 %v616_v2, %v280_v44  ;;  %v357_v28 = vld [vmem:[%s610_s26 + $0xc0] sm:$0xff]  ;;  %v358_v29 = vld [vmem:[%s610_s26 + $0xc8] sm:$0xff]  ;;  %v359_v33 = vld [vmem:[%s610_s26 + $0xd0] sm:$0xff] }
  0x24   : > { %442 = vst [vmem:[%s646_s5 + $0x68] sm:$0xff] %v410_v39  ;;  %v412_v53 = vmax.f32 %v380_v41, 0.0  ;;  %v283_v57 = vmul.f32 %v598_v0, %v244_v38  ;;  %v381_v58 = vadd.f32 %v349_v42, %v317_v45  ;;  %v320_v60 = vadd.f32 %v616_v2, %v281_v48  ;;  %v253_v36 = vld [vmem:[%s604_s23 + $0xf0] sm:$0xff]  ;;  %v254_v37 = vld [vmem:[%s604_s23 + $0xf8] sm:$0xff]  ;;  %v361_v42 = vld [vmem:[%s610_s26 + $0xe0] sm:$0xff] }
  0x25   : > { %v382_v59 = vadd.f32 %v350_v43, %v318_v46  ;;  %v321_v61 = vadd.f32 %v616_v2, %v282_v49  ;;  %443 = vst [vmem:[%s646_s5 + $0x70] sm:$0xff] %v411_v52  ;;  %v383_v63 = vadd.f32 %v351_v47, %v319_v54  ;;  %v284_v3 = vmul.f32 %v598_v0, %v245_v50  ;;  %v360_v41 = vld [vmem:[%s610_s26 + $0xd8] sm:$0xff]  ;;  %v362_v48 = vld [vmem:[%s610_s26 + $0xe8] sm:$0xff] }
  0x26   : > { %444 = vst [vmem:[%s646_s5 + $0x78] sm:$0xff] %v412_v53  ;;  %v322_v1 = vadd.f32 %v616_v2, %v283_v57  ;;  %v285_v4 = vmul.f32 %v598_v0, %v246_v51  ;;  %v413_v7 = vmax.f32 %v381_v58, 0.0  ;;  %v384_v9 = vadd.f32 %v352_v55, %v320_v60  ;;  %v363_v57 = vld [vmem:[%s610_s26 + $0xf0] sm:$0xff]  ;;  %v364_v58 = vld [vmem:[%s610_s26 + $0xf8] sm:$0xff] }
  0x27   : > { %v414_v8 = vmax.f32 %v382_v59, 0.0  ;;  %v385_v10 = vadd.f32 %v353_v56, %v321_v61  ;;  %v415_v14 = vmax.f32 %v383_v63, 0.0  ;;  %v323_v16 = vadd.f32 %v616_v2, %v284_v3 }
  0x28   : > { %v386_v15 = vadd.f32 %v354_v62, %v322_v1  ;;  %v324_v17 = vadd.f32 %v616_v2, %v285_v4  ;;  %445 = vst [vmem:[%s646_s5 + $0x80] sm:$0xff] %v413_v7  ;;  %v416_v20 = vmax.f32 %v384_v9, 0.0  ;;  %v286_v22 = vmul.f32 %v598_v0, %v247_v5 }
  0x29   : > { %446 = vst [vmem:[%s646_s5 + $0x88] sm:$0xff] %v414_v8  ;;  %v417_v21 = vmax.f32 %v385_v10, 0.0  ;;  %v287_v23 = vmul.f32 %v598_v0, %v248_v6  ;;  %447 = vst [vmem:[%s646_s5 + $0x90] sm:$0xff] %v415_v14  ;;  %v387_v26 = vadd.f32 %v355_v11, %v323_v16  ;;  %v288_v30 = vmul.f32 %v598_v0, %v249_v13 }
  0x2a   : > { %v418_v25 = vmax.f32 %v386_v15, 0.0  ;;  %v388_v27 = vadd.f32 %v356_v12, %v324_v17  ;;  %448 = vst [vmem:[%s646_s5 + $0x98] sm:$0xff] %v416_v20  ;;  %v325_v31 = vadd.f32 %v616_v2, %v286_v22  ;;  %v289_v34 = vmul.f32 %v598_v0, %v250_v18 }
  0x2b   : > { %449 = vst [vmem:[%s646_s5 + $0xa0] sm:$0xff] %v417_v21  ;;  %v326_v32 = vadd.f32 %v616_v2, %v287_v23  ;;  %v290_v35 = vmul.f32 %v598_v0, %v251_v19  ;;  %v419_v38 = vmax.f32 %v387_v26, 0.0  ;;  %v327_v40 = vadd.f32 %v616_v2, %v288_v30 }
  0x2c   : > { %450 = vst [vmem:[%s646_s5 + $0xa8] sm:$0xff] %v418_v25  ;;  %v420_v39 = vmax.f32 %v388_v27, 0.0  ;;  %v291_v43 = vmul.f32 %v598_v0, %v252_v24  ;;  %v389_v44 = vadd.f32 %v357_v28, %v325_v31  ;;  %v328_v46 = vadd.f32 %v616_v2, %v289_v34 }
  0x2d   : > { %v390_v45 = vadd.f32 %v358_v29, %v326_v32  ;;  %v329_v47 = vadd.f32 %v616_v2, %v290_v35  ;;  %451 = vst [vmem:[%s646_s5 + $0xb0] sm:$0xff] %v419_v38  ;;  %v391_v49 = vadd.f32 %v359_v33, %v327_v40  ;;  %v292_v51 = vmul.f32 %v598_v0, %v253_v36 }
  0x2e   : > { %452 = vst [vmem:[%s646_s5 + $0xb8] sm:$0xff] %v420_v39  ;;  %v330_v50 = vadd.f32 %v616_v2, %v291_v43  ;;  %v293_v52 = vmul.f32 %v598_v0, %v254_v37  ;;  %v421_v53 = vmax.f32 %v389_v44, 0.0  ;;  %v392_v55 = vadd.f32 %v360_v41, %v328_v46 }
  0x2f   : > { %v422_v54 = vmax.f32 %v390_v45, 0.0  ;;  %v393_v56 = vadd.f32 %v361_v42, %v329_v47  ;;  %v423_v59 = vmax.f32 %v391_v49, 0.0  ;;  %v331_v61 = vadd.f32 %v616_v2, %v292_v51 }
  0x30   : > { %v394_v60 = vadd.f32 %v362_v48, %v330_v50  ;;  %v332_v62 = vadd.f32 %v616_v2, %v293_v52  ;;  %453 = vst [vmem:[%s646_s5 + $0xc0] sm:$0xff] %v421_v53  ;;  %v424_v0 = vmax.f32 %v392_v55, 0.0 }
  0x31   : > { %454 = vst [vmem:[%s646_s5 + $0xc8] sm:$0xff] %v422_v54  ;;  %v425_v63 = vmax.f32 %v393_v56, 0.0  ;;  %455 = vst [vmem:[%s646_s5 + $0xd0] sm:$0xff] %v423_v59  ;;  %v395_v3 = vadd.f32 %v363_v57, %v331_v61 }
  0x32   : > { %v426_v1 = vmax.f32 %v394_v60, 0.0  ;;  %v396_v4 = vadd.f32 %v364_v58, %v332_v62  ;;  %456 = vst [vmem:[%s646_s5 + $0xd8] sm:$0xff] %v424_v0 }
  0x33   : > { %457 = vst [vmem:[%s646_s5 + $0xe0] sm:$0xff] %v425_v63  ;;  %v427_v5 = vmax.f32 %v395_v3, 0.0 }
  0x34   : > { %458 = vst [vmem:[%s646_s5 + $0xe8] sm:$0xff] %v426_v1  ;;  %v428_v6 = vmax.f32 %v396_v4, 0.0 }
  0x35   : > { %459 = vst [vmem:[%s646_s5 + $0xf0] sm:$0xff] %v427_v5 }
  0x36   : > { %460 = vst [vmem:[%s646_s5 + $0xf8] sm:$0xff] %v428_v6 }
  0x37 PF: > { %s14_s15 = sadd.s32 1, %s558_s15  }
  0x38   : > { %p11_p4 = scmp.ge.s32.totalorder %s14_s15, 4  }
  0x3a   :  { %13 = sbr.rel (!%p11_p4) target bundleno = 1 (0x1), region = 69 }

// kernel: bottleneck_forward.6
= control target key start
LH: loop header
LB: loop body
LE: loop exit
PB: predicated region body
PF: predicated region fallthrough
CT: control target
= control target key end

     0   :  { %s1015_s18 = smov 0   ;;  %s1311_s0 = inlined_call_operand.vmem [shape: f32[512,128], index: 0, kind: input, shape index: {}]   ;;  %s1312_s1 = inlined_call_operand.vmem [shape: f32[1,128], index: 1, kind: input, shape index: {}]   ;;  %s1313_s2 = inlined_call_operand.vmem [shape: f32[1,128], index: 2, kind: input, shape index: {}]   ;;  %s1314_s3 = inlined_call_operand.vmem [shape: bf16[128,128], index: 3, kind: input, shape index: {}]   ;;  %s1315_s4 = inlined_call_operand.vmem [shape: f32[512,128], index: 4, kind: output, shape index: {0}]   ;;  %s1316_s5 = inlined_call_operand.vmem [shape: f32[2,2,128], index: 5, kind: output, shape index: {1}]  }
   0x1 LB: > { %s1021_s19 = sadd.s32 4294967295, %s983_s18   ;;  %p855_p0 = scmp.ge.s32.totalorder %s983_s18, 1  ;;  %s983_s18 = sphi %s1015_s18, %s16_s18  }
   0x2   : > { %p191_p1 = scmp.lt.s32.totalorder %s983_s18, 3 }
   0x4   : > { %p192_p2 = pnand %p855_p0, %p191_p1 }
   0x5   : > { %v969_v0 = vld [vmem:[%s1314_s3] sm:$0xff] (!%p192_p2)   ;;  %s856_s22 = sshll.u32 (!%p192_p2), %s1021_s19, 5  ;;  %v970_v1 = vld [vmem:[%s1314_s3 + $0x8] sm:$0xff] (!%p192_p2)   ;;  %v971_v2 = vld [vmem:[%s1314_s3 + $0x10] sm:$0xff] (!%p192_p2)   ;;  %p235_p4 = scmp.lt.s32.totalorder (!%p192_p2), %s1021_s19, 1  ;;  %vm761_vm0 = vcmask (!%p192_p2), 1040384  }
   0x6   : > { %195 = sbr.rel (%p192_p2) target bundleno = 331 (0x14b), region = 36  ;;  %p224_p3 = scmp.lt.s32.totalorder (!%p192_p2), %s856_s22, 63  ;;  %897 = vmatprep.subr.bf16.mxu0 (!%p192_p2), %v969_v0  ;;  %945 = vmatprep.subr.bf16.mxu1 (!%p192_p2), %v969_v0  ;;  %v972_v3 = vld [vmem:[%s1314_s3 + $0x18] sm:$0xff] (!%p192_p2)   ;;  %v1053_v6 = vld [vmem:[%s1312_s1] ss:$0 sm:$0xff] (!%p192_p2)  ;;  %v974_v27 = vld [vmem:[%s1314_s3 + $0x28] sm:$0xff] (!%p192_p2)  }
   0x7   : > { %898 = vmatpush3.bf16.msra.mxu0 (!%p192_p2), %v969_v0  ;;  %953 = vmatpush3.bf16.msra.mxu1 (!%p192_p2), %v969_v0  ;;  %v1060_v9 = vld [vmem:[%s1313_s2] ss:$0 sm:$0xff] (!%p192_p2)  ;;  %v975_v35 = vld [vmem:[%s1314_s3 + $0x30] sm:$0xff] (!%p192_p2)   ;;  %v976_v52 = vld [vmem:[%s1314_s3 + $0x38] sm:$0xff] (!%p192_p2)  }
   0x8   : > { %899 = vmatprep.subr.bf16.mxu0 (!%p192_p2), %v970_v1  ;;  %946 = vmatprep.subr.bf16.mxu1 (!%p192_p2), %v970_v1  ;;  %v973_v17 = vld [vmem:[%s1314_s3 + $0x20] sm:$0xff] (!%p192_p2)  }
   0xb   : > { %900 = vmatpush3.bf16.msra.mxu0 (!%p192_p2), %v970_v1  ;;  %954 = vmatpush3.bf16.msra.mxu1 (!%p192_p2), %v970_v1 }
   0xc   : > { %901 = vmatprep.subr.bf16.mxu0 (!%p192_p2), %v971_v2  ;;  %947 = vmatprep.subr.bf16.mxu1 (!%p192_p2), %v971_v2 }
   0xd   : > { %s1318_s22 = smov (!%p224_p3, %s856_s22), 63  ;;  %s1320_s19 = smov (!%p235_p4, %s1021_s19), 1 }
   0xe   : > { %s857_s27 = sshll.u32 %s1318_s22, 3  ;;  %s860_s22 = sshll.u32 %s1320_s19, 1 }
   0xf   : > { %s1043_s30 = scalar_lea.vmem %s1311_s0, %s857_s27  ;;  %902 = vmatpush3.bf16.msra.mxu0 %v971_v2  ;;  %955 = vmatpush3.bf16.msra.mxu1 %v971_v2  ;;  %s1191_s25 = scalar_lea.vmem %s1315_s4, %s857_s27 }
  0x10   : > { %v240_v4 = vld [vmem:[%s1043_s30] sm:$0xff]  ;;  %v241_v5 = vld [vmem:[%s1043_s30 + $0x8] sm:$0xff]  ;;  %v242_v10 = vld [vmem:[%s1043_s30 + $0x10] sm:$0xff]  ;;  %903 = vmatprep.subr.bf16.mxu0 %v972_v3  ;;  %948 = vmatprep.subr.bf16.mxu1 %v972_v3  ;;  %s238_s28 = scalar_lea.vmem %s1316_s5, %s860_s22 }
  0x11   : > { %v279_v7 = vmul.f32 %v1053_v6, %v240_v4  ;;  %v280_v8 = vmul.f32 %v1053_v6, %v241_v5  ;;  %v243_v11 = vld [vmem:[%s1043_s30 + $0x18] sm:$0xff]  ;;  %v281_v12 = vmul.f32 %v1053_v6, %v242_v10  ;;  %v244_v16 = vld [vmem:[%s1043_s30 + $0x20] sm:$0xff]  ;;  %v245_v20 = vld [vmem:[%s1043_s30 + $0x28] sm:$0xff] }
  0x12   : > { %v282_v15 = vmul.f32 %v1053_v6, %v243_v11  ;;  %v283_v21 = vmul.f32 %v1053_v6, %v244_v16  ;;  %v246_v22 = vld [vmem:[%s1043_s30 + $0x30] sm:$0xff]  ;;  %v247_v26 = vld [vmem:[%s1043_s30 + $0x38] sm:$0xff]  ;;  %v284_v28 = vmul.f32 %v1053_v6, %v245_v20  ;;  %v256_v31 = vld [vmem:[%s1043_s30 + $0x80] sm:$0xff] }
  0x13   : > { %v318_v13 = vadd.f32 %v1060_v9, %v279_v7  ;;  %v319_v14 = vadd.f32 %v1060_v9, %v280_v8  ;;  %904 = vmatpush3.bf16.msra.mxu0 %v972_v3  ;;  %v320_v24 = vadd.f32 %v1060_v9, %v281_v12  ;;  %956 = vmatpush3.bf16.msra.mxu1 %v972_v3  ;;  %v248_v37 = vld [vmem:[%s1043_s30 + $0x40] sm:$0xff]  ;;  %v257_v38 = vld [vmem:[%s1043_s30 + $0x88] sm:$0xff]  ;;  %v258_v42 = vld [vmem:[%s1043_s30 + $0x90] sm:$0xff] }
  0x14   : > { %v321_v25 = vadd.f32 %v1060_v9, %v282_v15  ;;  %905 = vmatprep.subr.bf16.mxu0 %v973_v17  ;;  %949 = vmatprep.subr.bf16.mxu1 %v973_v17  ;;  %v285_v29 = vmul.f32 %v1053_v6, %v246_v22  ;;  %v286_v30 = vmul.f32 %v1053_v6, %v247_v26  ;;  %v249_v40 = vld [vmem:[%s1043_s30 + $0x48] sm:$0xff]  ;;  %v259_v44 = vld [vmem:[%s1043_s30 + $0x98] sm:$0xff]  ;;  %v260_v45 = vld [vmem:[%s1043_s30 + $0xa0] sm:$0xff] }
  0x15   : > { %v350_v18 = vmax.f32 %v318_v13, 0.0  ;;  %v351_v19 = vmax.f32 %v319_v14, 0.0  ;;  %v352_v32 = vmax.f32 %v320_v24, 0.0  ;;  %v1086_v34 = vadd.f32 %v1060_v9, %v283_v21  ;;  %v261_v50 = vld [vmem:[%s1043_s30 + $0xa8] sm:$0xff]  ;;  %v262_v51 = vld [vmem:[%s1043_s30 + $0xb0] sm:$0xff]  ;;  %v263_v61 = vld [vmem:[%s1043_s30 + $0xb8] sm:$0xff] }
  0x16   : > { %v353_v33 = vmax.f32 %v321_v25, 0.0  ;;  %v1092_v36 = vadd.f32 %v1060_v9, %v284_v28  ;;  %v1097_v39 = vadd.f32 %v1060_v9, %v285_v29  ;;  %v295_v41 = vmul.f32 %v1053_v6, %v256_v31  ;;  %v264_v2 = vld [vmem:[%s1043_s30 + $0xc0] sm:$0xff]  ;;  %v265_v8 = vld [vmem:[%s1043_s30 + $0xc8] sm:$0xff]  ;;  %v250_v14 = vld [vmem:[%s1043_s30 + $0x50] sm:$0xff] }
  0x17   : > { %v382_v23 = vpack.c.bf16 %v351_v19, %v350_v18  ;;  %906 = vmatpush3.bf16.msra.mxu0 %v973_v17  ;;  %957 = vmatpush3.bf16.msra.mxu1 %v973_v17  ;;  %v1103_v43 = vadd.f32 %v1060_v9, %v286_v30  ;;  %v354_v47 = vmax.f32 %v1086_v34, 0.0  ;;  %v287_v48 = vmul.f32 %v1053_v6, %v248_v37  ;;  %v251_v15 = vld [vmem:[%s1043_s30 + $0x58] sm:$0xff]  ;;  %v252_v20 = vld [vmem:[%s1043_s30 + $0x60] sm:$0xff]  ;;  %v253_v21 = vld [vmem:[%s1043_s30 + $0x68] sm:$0xff] }
  0x18   : > { %907 = vmatprep.subr.bf16.mxu0 %v974_v27  ;;  %950 = vmatprep.subr.bf16.mxu1 %v974_v27  ;;  %v1107_v46 = vpack.c.bf16 %v353_v33, %v352_v32  ;;  %v296_v49 = vmul.f32 %v1053_v6, %v257_v38  ;;  %v355_v53 = vmax.f32 %v1092_v36, 0.0  ;;  %v288_v54 = vmul.f32 %v1053_v6, %v249_v40  ;;  %v266_v30 = vld [vmem:[%s1043_s30 + $0xd0] sm:$0xff]  ;;  %v267_v31 = vld [vmem:[%s1043_s30 + $0xd8] sm:$0xff]  ;;  %v268_v36 = vld [vmem:[%s1043_s30 + $0xe0] sm:$0xff] }
  0x19   : > { %913 = vmatprep.mubr.bf16.mxu0 %v382_v23  ;;  %v334_v55 = vadd.f32 %v1060_v9, %v295_v41  ;;  %v297_v56 = vmul.f32 %v1053_v6, %v258_v42  ;;  %v356_v57 = vmax.f32 %v1097_v39, 0.0  ;;  %v298_v59 = vmul.f32 %v1053_v6, %v259_v44  ;;  %v269_v37 = vld [vmem:[%s1043_s30 + $0xe8] sm:$0xff] }
  0x1a   : > { %v335_v58 = vadd.f32 %v1060_v9, %v296_v49  ;;  %v299_v60 = vmul.f32 %v1053_v6, %v260_v45  ;;  %v300_v0 = vmul.f32 %v1053_v6, %v261_v50  ;;  %v301_v1 = vmul.f32 %v1053_v6, %v262_v51 }
  0x1b   : > { %908 = vmatpush3.bf16.msra.mxu0 %v974_v27  ;;  %958 = vmatpush3.bf16.msra.mxu1 %v974_v27  ;;  %v366_v62 = vmax.f32 %v334_v55, 0.0  ;;  %v336_v63 = vadd.f32 %v1060_v9, %v297_v56  ;;  %v1131_v3 = vadd.f32 %v1060_v9, %v287_v48  ;;  %v337_v5 = vadd.f32 %v1060_v9, %v298_v59  ;;  %v254_v56 = vld [vmem:[%s1043_s30 + $0x70] sm:$0xff] }
  0x1c   : > { %909 = vmatprep.subr.bf16.mxu0 %v975_v35  ;;  %951 = vmatprep.subr.bf16.mxu1 %v975_v35  ;;  %v367_v4 = vmax.f32 %v335_v58, 0.0  ;;  %v338_v7 = vadd.f32 %v1060_v9, %v299_v60  ;;  %v327_v10 = vadd.f32 %v1060_v9, %v288_v54  ;;  %v339_v12 = vadd.f32 %v1060_v9, %v300_v0  ;;  %v255_v58 = vld [vmem:[%s1043_s30 + $0x78] sm:$0xff]  ;;  %v270_v0 = vld [vmem:[%s1043_s30 + $0xf0] sm:$0xff] }
  0x1d   : > { %v368_v11 = vmax.f32 %v336_v63, 0.0  ;;  %v302_v13 = vmul.f32 %v1053_v6, %v263_v61  ;;  %v369_v17 = vmax.f32 %v337_v5, 0.0  ;;  %v303_v19 = vmul.f32 %v1053_v6, %v264_v2 }
  0x1e   : > { %v390_v16 = vpack.c.bf16 %v367_v4, %v366_v62  ;;  %v370_v18 = vmax.f32 %v338_v7, 0.0  ;;  %v371_v22 = vmax.f32 %v339_v12, 0.0  ;;  %v340_v23 = vadd.f32 %v1060_v9, %v301_v1  ;;  %v271_v1 = vld [vmem:[%s1043_s30 + $0xf8] sm:$0xff] }
  0x1f   : > { %910 = vmatpush3.bf16.msra.mxu0 %v975_v35  ;;  %959 = vmatpush3.bf16.msra.mxu1 %v975_v35  ;;  %v341_v24 = vadd.f32 %v1060_v9, %v302_v13  ;;  %v304_v25 = vmul.f32 %v1053_v6, %v265_v8  ;;  %v384_v26 = vpack.c.bf16 %v355_v53, %v354_v47  ;;  %v357_v27 = vmax.f32 %v1103_v43, 0.0 }
  0x20   : > { %911 = vmatprep.subr.bf16.mxu0 %v976_v52  ;;  %952 = vmatprep.subr.bf16.mxu1 %v976_v52  ;;  %v391_v28 = vpack.c.bf16 %v369_v17, %v368_v11  ;;  %v342_v29 = vadd.f32 %v1060_v9, %v303_v19  ;;  %v289_v32 = vmul.f32 %v1053_v6, %v250_v14  ;;  %v358_v38 = vmax.f32 %v1131_v3, 0.0 }
  0x21   : > { %v290_v33 = vmul.f32 %v1053_v6, %v251_v15  ;;  %929 = vmatprep.mubr.bf16.mxu1 %v390_v16  ;;  %v392_v34 = vpack.c.bf16 %v371_v22, %v370_v18  ;;  %v343_v35 = vadd.f32 %v1060_v9, %v304_v25  ;;  %v359_v40 = vmax.f32 %v327_v10, 0.0 }
  0x22   : > { %v291_v41 = vmul.f32 %v1053_v6, %v252_v20  ;;  %v292_v42 = vmul.f32 %v1053_v6, %v253_v21  ;;  %v372_v43 = vmax.f32 %v340_v23, 0.0  ;;  %v373_v44 = vmax.f32 %v341_v24, 0.0 }
  0x23   : > { %912 = vmatpush3.bf16.msra.mxu0 %v976_v52  ;;  %960 = vmatpush3.bf16.msra.mxu1 %v976_v52  ;;  %v305_v45 = vmul.f32 %v1053_v6, %v266_v30  ;;  %v306_v47 = vmul.f32 %v1053_v6, %v267_v31  ;;  %v374_v48 = vmax.f32 %v342_v29, 0.0  ;;  %v375_v49 = vmax.f32 %v343_v35, 0.0 }
  0x24   : > { %v307_v50 = vmul.f32 %v1053_v6, %v268_v36  ;;  %v308_v51 = vmul.f32 %v1053_v6, %v269_v37  ;;  %v328_v52 = vadd.f32 %v1060_v9, %v289_v32  ;;  %v329_v53 = vadd.f32 %v1060_v9, %v290_v33 }
  0x25   : > { %v330_v54 = vadd.f32 %v1060_v9, %v291_v41  ;;  %v331_v55 = vadd.f32 %v1060_v9, %v292_v42  ;;  %v393_v59 = vpack.c.bf16 %v373_v44, %v372_v43  ;;  %v344_v60 = vadd.f32 %v1060_v9, %v305_v45 }
  0x26   : > { %914 = vmatmul.mubr.bf16.vlgmr.msra.gmra.mrb[0].mxu0 %v1107_v46  ;;  %930 = vmatmul.mubr.bf16.vlgmr.msra.gmra.mrb[0].mxu1 %v391_v28  ;;  %v385_v46 = vpack.c.bf16 %v357_v27, %v356_v57  ;;  %v345_v61 = vadd.f32 %v1060_v9, %v306_v47  ;;  %v386_v62 = vpack.c.bf16 %v359_v40, %v358_v38  ;;  %v360_v2 = vmax.f32 %v328_v52, 0.0 }
  0x27   : > { %917 = vmatprep.mubr.bf16.mxu0 %v384_v26  ;;  %933 = vmatprep.mubr.bf16.mxu1 %v392_v34  ;;  %v394_v63 = vpack.c.bf16 %v375_v49, %v374_v48  ;;  %v346_v39 = vadd.f32 %v1060_v9, %v307_v50  ;;  %v347_v57 = vadd.f32 %v1060_v9, %v308_v51  ;;  %v361_v3 = vmax.f32 %v329_v53, 0.0 }
  0x28   : > { %v293_v4 = vmul.f32 %v1053_v6, %v254_v56  ;;  %v294_v5 = vmul.f32 %v1053_v6, %v255_v58  ;;  %v376_v7 = vmax.f32 %v344_v60, 0.0  ;;  %v377_v8 = vmax.f32 %v345_v61, 0.0 }
  0x29   : > { %v309_v10 = vmul.f32 %v1053_v6, %v270_v0  ;;  %v310_v11 = vmul.f32 %v1053_v6, %v271_v1  ;;  %v362_v12 = vmax.f32 %v330_v54, 0.0  ;;  %v363_v13 = vmax.f32 %v331_v55, 0.0 }
  0x2a   : > { %v378_v14 = vmax.f32 %v346_v39, 0.0  ;;  %v379_v15 = vmax.f32 %v347_v57, 0.0  ;;  %v387_v16 = vpack.c.bf16 %v361_v3, %v360_v2  ;;  %v332_v17 = vadd.f32 %v1060_v9, %v293_v4 }
  0x2b   : > { %v333_v18 = vadd.f32 %v1060_v9, %v294_v5  ;;  %v395_v19 = vpack.c.bf16 %v377_v8, %v376_v7  ;;  %v348_v20 = vadd.f32 %v1060_v9, %v309_v10  ;;  %v349_v21 = vadd.f32 %v1060_v9, %v310_v11 }
  0x2c   : > { %v388_v22 = vpack.c.bf16 %v363_v13, %v362_v12  ;;  %v396_v23 = vpack.c.bf16 %v379_v15, %v378_v14  ;;  %v364_v6 = vmax.f32 %v332_v17, 0.0 }
  0x2d   : > { %v365_v24 = vmax.f32 %v333_v18, 0.0  ;;  %v380_v25 = vmax.f32 %v348_v20, 0.0  ;;  %v381_v26 = vmax.f32 %v349_v21, 0.0 }
  0x2e   : > { %918 = vmatmul.mubr.bf16.gmra.mrb[4].mxu0 %v385_v46  ;;  %934 = vmatmul.mubr.bf16.gmra.mrb[4].mxu1 %v393_v59 }
  0x2f   : > { %921 = vmatprep.mubr.bf16.mxu0 %v386_v62  ;;  %937 = vmatprep.mubr.bf16.mxu1 %v394_v63  ;;  %v389_v27 = vpack.c.bf16 %v365_v24, %v364_v6  ;;  %v397_v28 = vpack.c.bf16 %v381_v26, %v380_v25 }
  0x36   : > { %922 = vmatmul.mubr.bf16.gmra.mrb[8].mxu0 %v387_v16  ;;  %938 = vmatmul.mubr.bf16.gmra.mrb[8].mxu1 %v395_v19 }
  0x37   : > { %925 = vmatprep.mubr.bf16.mxu0 %v388_v22  ;;  %941 = vmatprep.mubr.bf16.mxu1 %v396_v23 }
  0x3e   : > { %926 = vmatmul.mubr.bf16.gmra.mrb[12].mxu0 %v389_v27  ;;  %942 = vmatmul.mubr.bf16.gmra.mrb[12].mxu1 %v397_v28 }
  0xf9   : > { %v915_v9 = vpop.f32.mrb[0].mxu0  ;;  %v1193_v29 = vpop.f32.mrb[0].mxu1 }
  0xfa   : > { %625 = vst [vmem:[%s1191_s25 + $0x10] sm:$0xff] %v915_v9  ;;  %v496_v30 = vpop.f32.mrb[1].mxu0  ;;  %641 = vst [vmem:[%s1191_s25 + $0x90] sm:$0xff] %v1193_v29  ;;  %v1198_v31 = vpop.f32.mrb[1].mxu1  ;;  %v694_v40 = vmul.f32 %v915_v9, %v915_v9 }
  0xfb   : > { %623 = vst [vmem:[%s1191_s25] sm:$0xff] %v496_v30  ;;  %v916_v32 = vpop.f32.mrb[2].mxu0  ;;  %639 = vst [vmem:[%s1191_s25 + $0x80] sm:$0xff] %v1198_v31  ;;  %v1203_v33 = vpop.f32.mrb[2].mxu1  ;;  %v692_v36 = vmul.f32 %v496_v30, %v496_v30 }
  0xfc   : > { %626 = vst [vmem:[%s1191_s25 + $0x18] sm:$0xff] %v916_v32  ;;  %v499_v34 = vpop.f32.mrb[3].mxu0  ;;  %642 = vst [vmem:[%s1191_s25 + $0x98] sm:$0xff] %v1203_v33  ;;  %v1208_v35 = vpop.f32.mrb[3].mxu1  ;;  %v695_v43 = vmul.f32 %v916_v32, %v916_v32 }
  0xfd   : > { %624 = vst [vmem:[%s1191_s25 + $0x8] sm:$0xff] %v499_v34  ;;  %v655_v37 = vadd.f32 %v499_v34, %v496_v30  ;;  %v693_v38 = vmul.f32 %v499_v34, %v499_v34  ;;  %640 = vst [vmem:[%s1191_s25 + $0x88] sm:$0xff] %v1208_v35 }
  0xff   : > { %v656_v41 = vadd.f32 %v915_v9, %v655_v37  ;;  %v724_v42 = vadd.f32 %v693_v38, %v692_v36 }
 0x101   : > { %v725_v44 = vadd.f32 %v724_v42, %v694_v40  ;;  %v919_v45 = vpop.f32.mrb[4].mxu0  ;;  %v657_v47 = vadd.f32 %v916_v32, %v656_v41  ;;  %v1213_v48 = vpop.f32.mrb[4].mxu1 }
 0x102   : > { %629 = vst [vmem:[%s1191_s25 + $0x30] sm:$0xff] %v919_v45  ;;  %v512_v49 = vpop.f32.mrb[5].mxu0  ;;  %645 = vst [vmem:[%s1191_s25 + $0xb0] sm:$0xff] %v1213_v48  ;;  %v1218_v50 = vpop.f32.mrb[5].mxu1  ;;  %v698_v61 = vmul.f32 %v919_v45, %v919_v45 }
 0x103   : > { %627 = vst [vmem:[%s1191_s25 + $0x20] sm:$0xff] %v512_v49  ;;  %v658_v51 = vadd.f32 %v657_v47, %v512_v49  ;;  %v696_v46 = vmul.f32 %v512_v49, %v512_v49  ;;  %v726_v52 = vadd.f32 %v725_v44, %v695_v43  ;;  %v920_v53 = vpop.f32.mrb[6].mxu0  ;;  %643 = vst [vmem:[%s1191_s25 + $0xa0] sm:$0xff] %v1218_v50  ;;  %v1223_v54 = vpop.f32.mrb[6].mxu1 }
 0x104   : > { %630 = vst [vmem:[%s1191_s25 + $0x38] sm:$0xff] %v920_v53  ;;  %v515_v55 = vpop.f32.mrb[7].mxu0  ;;  %646 = vst [vmem:[%s1191_s25 + $0xb8] sm:$0xff] %v1223_v54  ;;  %v1228_v56 = vpop.f32.mrb[7].mxu1  ;;  %v699_v39 = vmul.f32 %v920_v53, %v920_v53  ;;  %v708_v47 = vmul.f32 %v1198_v31, %v1198_v31 }
 0x105   : > { %v727_v58 = vadd.f32 %v726_v52, %v696_v46  ;;  %628 = vst [vmem:[%s1191_s25 + $0x28] sm:$0xff] %v515_v55  ;;  %v659_v59 = vadd.f32 %v658_v51, %v515_v55  ;;  %v697_v60 = vmul.f32 %v515_v55, %v515_v55  ;;  %644 = vst [vmem:[%s1191_s25 + $0xa8] sm:$0xff] %v1228_v56 }
 0x106   : > { %v710_v55 = vmul.f32 %v1193_v29, %v1193_v29 }
 0x107   : > { %v660_v62 = vadd.f32 %v919_v45, %v659_v59  ;;  %v728_v63 = vadd.f32 %v727_v58, %v697_v60  ;;  %v711_v60 = vmul.f32 %v1203_v33, %v1203_v33 }
 0x109   : > { %v729_v57 = vadd.f32 %v728_v63, %v698_v61  ;;  %v923_v0 = vpop.f32.mrb[8].mxu0  ;;  %v661_v1 = vadd.f32 %v920_v53, %v660_v62  ;;  %v1233_v2 = vpop.f32.mrb[8].mxu1  ;;  %v709_v53 = vmul.f32 %v1208_v35, %v1208_v35 }
 0x10a   : > { %633 = vst [vmem:[%s1191_s25 + $0x50] sm:$0xff] %v923_v0  ;;  %v528_v3 = vpop.f32.mrb[9].mxu0  ;;  %649 = vst [vmem:[%s1191_s25 + $0xd0] sm:$0xff] %v1233_v2  ;;  %v1238_v4 = vpop.f32.mrb[9].mxu1  ;;  %v702_v17 = vmul.f32 %v923_v0, %v923_v0 }
 0x10b   : > { %631 = vst [vmem:[%s1191_s25 + $0x40] sm:$0xff] %v528_v3  ;;  %v662_v5 = vadd.f32 %v661_v1, %v528_v3  ;;  %v700_v7 = vmul.f32 %v528_v3, %v528_v3  ;;  %v730_v8 = vadd.f32 %v729_v57, %v699_v39  ;;  %v924_v10 = vpop.f32.mrb[10].mxu0  ;;  %647 = vst [vmem:[%s1191_s25 + $0xc0] sm:$0xff] %v1238_v4  ;;  %v1243_v11 = vpop.f32.mrb[10].mxu1 }
 0x10c   : > { %634 = vst [vmem:[%s1191_s25 + $0x58] sm:$0xff] %v924_v10  ;;  %v531_v12 = vpop.f32.mrb[11].mxu0  ;;  %650 = vst [vmem:[%s1191_s25 + $0xd8] sm:$0xff] %v1243_v11  ;;  %v1248_v13 = vpop.f32.mrb[11].mxu1  ;;  %v703_v20 = vmul.f32 %v924_v10, %v924_v10 }
 0x10d   : > { %v731_v14 = vadd.f32 %v730_v8, %v700_v7  ;;  %632 = vst [vmem:[%s1191_s25 + $0x48] sm:$0xff] %v531_v12  ;;  %v663_v15 = vadd.f32 %v662_v5, %v531_v12  ;;  %v701_v16 = vmul.f32 %v531_v12, %v531_v12  ;;  %648 = vst [vmem:[%s1191_s25 + $0xc8] sm:$0xff] %v1248_v13 }
 0x10f   : > { %v664_v18 = vadd.f32 %v923_v0, %v663_v15  ;;  %v732_v19 = vadd.f32 %v731_v14, %v701_v16  ;;  %v713_v0 = vmul.f32 %v1228_v56, %v1228_v56  ;;  %v717_v14 = vmul.f32 %v1248_v13, %v1248_v13 }
 0x111   : > { %v733_v21 = vadd.f32 %v732_v19, %v702_v17  ;;  %v927_v22 = vpop.f32.mrb[12].mxu0  ;;  %v665_v23 = vadd.f32 %v924_v10, %v664_v18  ;;  %v1253_v6 = vpop.f32.mrb[12].mxu1 }
 0x112   : > { %637 = vst [vmem:[%s1191_s25 + $0x70] sm:$0xff] %v927_v22  ;;  %v544_v24 = vpop.f32.mrb[13].mxu0  ;;  %653 = vst [vmem:[%s1191_s25 + $0xf0] sm:$0xff] %v1253_v6  ;;  %v608_v25 = vpop.f32.mrb[13].mxu1  ;;  %v706_v40 = vmul.f32 %v927_v22, %v927_v22 }
 0x113   : > { %635 = vst [vmem:[%s1191_s25 + $0x60] sm:$0xff] %v544_v24  ;;  %v666_v26 = vadd.f32 %v665_v23, %v544_v24  ;;  %v704_v27 = vmul.f32 %v544_v24, %v544_v24  ;;  %v734_v28 = vadd.f32 %v733_v21, %v703_v20  ;;  %v928_v9 = vpop.f32.mrb[14].mxu0  ;;  %651 = vst [vmem:[%s1191_s25 + $0xe0] sm:$0xff] %v608_v25  ;;  %v944_v30 = vpop.f32.mrb[14].mxu1 }
 0x114   : > { %638 = vst [vmem:[%s1191_s25 + $0x78] sm:$0xff] %v928_v9  ;;  %v547_v32 = vpop.f32.mrb[15].mxu0  ;;  %654 = vst [vmem:[%s1191_s25 + $0xf8] sm:$0xff] %v944_v30  ;;  %v611_v34 = vpop.f32.mrb[15].mxu1  ;;  %v707_v43 = vmul.f32 %v928_v9, %v928_v9  ;;  %v720_v18 = vmul.f32 %v608_v25, %v608_v25  ;;  %v722_v23 = vmul.f32 %v1253_v6, %v1253_v6 }
 0x115   : > { %v735_v36 = vadd.f32 %v734_v28, %v704_v27  ;;  %636 = vst [vmem:[%s1191_s25 + $0x68] sm:$0xff] %v547_v32  ;;  %v667_v37 = vadd.f32 %v666_v26, %v547_v32  ;;  %v705_v38 = vmul.f32 %v547_v32, %v547_v32  ;;  %652 = vst [vmem:[%s1191_s25 + $0xe8] sm:$0xff] %v611_v34 }
 0x116   : > { %v723_v26 = vmul.f32 %v944_v30, %v944_v30 }
 0x117   : > { %v668_v41 = vadd.f32 %v927_v22, %v667_v37  ;;  %v736_v42 = vadd.f32 %v735_v36, %v705_v38 }
 0x119   : > { %v737_v44 = vadd.f32 %v736_v42, %v706_v40  ;;  %v669_v45 = vadd.f32 %v928_v9, %v668_v41 }
 0x11b   : > { %v670_v49 = vadd.f32 %v669_v45, %v1198_v31  ;;  %v738_v51 = vadd.f32 %v737_v44, %v707_v43  ;;  %v712_v31 = vmul.f32 %v1218_v50, %v1218_v50 }
 0x11d   : > { %v739_v46 = vadd.f32 %v738_v51, %v708_v47  ;;  %v671_v52 = vadd.f32 %v670_v49, %v1208_v35 }
 0x11f   : > { %v672_v58 = vadd.f32 %v1193_v29, %v671_v52  ;;  %v740_v59 = vadd.f32 %v739_v46, %v709_v53  ;;  %v714_v29 = vmul.f32 %v1213_v48, %v1213_v48 }
 0x121   : > { %v741_v61 = vadd.f32 %v740_v59, %v710_v55  ;;  %v673_v62 = vadd.f32 %v1203_v33, %v672_v58  ;;  %v715_v33 = vmul.f32 %v1223_v54, %v1223_v54 }
 0x123   : > { %v674_v63 = vadd.f32 %v673_v62, %v1218_v50  ;;  %v742_v39 = vadd.f32 %v741_v61, %v711_v60  ;;  %v716_v50 = vmul.f32 %v1238_v4, %v1238_v4 }
 0x125   : > { %v743_v57 = vadd.f32 %v742_v39, %v712_v31  ;;  %v675_v35 = vadd.f32 %v674_v63, %v1228_v56 }
 0x127   : > { %v676_v1 = vadd.f32 %v1213_v48, %v675_v35  ;;  %v744_v3 = vadd.f32 %v743_v57, %v713_v0  ;;  %v718_v48 = vmul.f32 %v1233_v2, %v1233_v2 }
 0x129   : > { %v745_v5 = vadd.f32 %v744_v3, %v714_v29  ;;  %v677_v7 = vadd.f32 %v1223_v54, %v676_v1  ;;  %v719_v54 = vmul.f32 %v1243_v11, %v1243_v11 }
 0x12b   : > { %v678_v8 = vadd.f32 %v677_v7, %v1238_v4  ;;  %v746_v10 = vadd.f32 %v745_v5, %v715_v33 }
 0x12d   : > { %v747_v12 = vadd.f32 %v746_v10, %v716_v50  ;;  %v679_v56 = vadd.f32 %v678_v8, %v1248_v13  ;;  %v721_v13 = vmul.f32 %v611_v34, %v611_v34 }
 0x12f   : > { %v680_v15 = vadd.f32 %v1233_v2, %v679_v56  ;;  %v748_v16 = vadd.f32 %v747_v12, %v717_v14 }
 0x131   : > { %v749_v17 = vadd.f32 %v748_v16, %v718_v48  ;;  %v681_v4 = vadd.f32 %v1243_v11, %v680_v15 }
 0x133   : > { %v682_v19 = vadd.f32 %v681_v4, %v608_v25  ;;  %v750_v20 = vadd.f32 %v749_v17, %v719_v54 }
 0x135   : > { %v751_v21 = vadd.f32 %v750_v20, %v720_v18  ;;  %v683_v22 = vadd.f32 %v682_v19, %v611_v34 }
 0x137   : > { %v684_v2 = vadd.f32 %v1253_v6, %v683_v22  ;;  %v752_v24 = vadd.f32 %v751_v21, %v721_v13 }
 0x139   : > { %v685_v27 = vadd.f32 %v944_v30, %v684_v2  ;;  %v753_v28 = vadd.f32 %v752_v24, %v722_v23 }
 0x13b   : > { %v686_v9 = vrot.slane %v685_v27, 4  ;;  %v754_v32 = vadd.f32 %v753_v28, %v723_v26 }
 0x13d   : > { %v687_v11 = vadd.f32 %v686_v9, %v685_v27  ;;  %v755_v36 = vrot.slane %v754_v32, 4 }
 0x13f   : > { %v688_v25 = vrot.slane %v687_v11, 2  ;;  %v756_v37 = vadd.f32 %v755_v36, %v754_v32 }
 0x141   : > { %v689_v38 = vadd.f32 %v688_v25, %v687_v11  ;;  %v757_v40 = vrot.slane %v756_v37, 2 }
 0x143   : > { %v690_v34 = vrot.slane %v689_v38, 1  ;;  %v758_v41 = vadd.f32 %v757_v40, %v756_v37 }
 0x145   : > { %v759_v42 = vrot.slane %v758_v41, 1  ;;  %v691_v6 = vadd.f32 %v690_v34, %v689_v38 }
 0x147   : > { %v760_v30 = vadd.f32 %v759_v42, %v758_v41 }
 0x149   : > { %v762_v43 = vsel %vm761_vm0, %v691_v6, %v760_v30 }
 0x14a   : > { %763 = vst [vmem:[%s238_s28] sm:$0x3] %v762_v43 }
 0x14b PF: > { %s16_s18 = sadd.s32 1, %s983_s18  }
 0x14c   : > { %p13_p5 = scmp.ge.s32.totalorder %s16_s18, 4  }
 0x14e   :  { %15 = sbr.rel (!%p13_p5) target bundleno = 1 (0x1), region = 78 }

// kernel: bottleneck_forward.5
= control target key start
LH: loop header
LB: loop body
LE: loop exit
PB: predicated region body
PF: predicated region fallthrough
CT: control target
= control target key end

     0   :  { %s3395_s18 = smov 0   ;;  %s4888_s0 = inlined_call_operand.vmem [shape: f32[2,16,16,128], index: 0, kind: input, shape index: {}]   ;;  %s4889_s1 = inlined_call_operand.vmem [shape: f32[1,128], index: 1, kind: input, shape index: {}]   ;;  %s4890_s2 = inlined_call_operand.vmem [shape: f32[1,128], index: 2, kind: input, shape index: {}]   ;;  %s4891_s3 = inlined_call_operand.vmem [shape: bf16[1152,128], index: 3, kind: input, shape index: {}]   ;;  %s4892_s4 = inlined_call_operand.vmem [shape: f32[2,16,16,128], index: 4, kind: output, shape index: {0}]   ;;  %s4893_s5 = inlined_call_operand.vmem [shape: f32[2,2,128], index: 5, kind: output, shape index: {1}]  }
   0x1 LB: > { %s2357_s19 = sadd.s32 4294967295, %s3360_s18   ;;  %p2361_p0 = scmp.ge.s32.totalorder %s3360_s18, 1  ;;  %s3360_s18 = sphi %s3395_s18, %s16_s18  }
   0x2   : > { %p190_p1 = scmp.lt.s32.totalorder %s3360_s18, 3 }
   0x4   : > { %p191_p2 = pnand %p2361_p0, %p190_p1 }
   0x6   : > { %194 = sbr.rel (%p191_p2) target bundleno = 566 (0x236), region = 36 }
   0xd   : > { %v3280_v0 = vld [vmem:[%s4891_s3 + $0x40] sm:$0xff]   ;;  %v4894_v2 = vmov 0.0|0.0   ;;  %v3282_v3 = vld [vmem:[%s4891_s3 + $0x48] sm:$0xff]   ;;  %p222_p3 = scmp.lt.s32.totalorder %s2357_s19, 1  ;;  %v3284_v5 = vld [vmem:[%s4891_s3 + $0x50] sm:$0xff]   ;;  %v3363_v12 = vmov 0.0   ;;  %v620_v17 = vlaneseq }
   0xe   : > { %v3281_v1 = vld [vmem:[%s4891_s3] sm:$0xff]   ;;  %1358 = vmatprep.mubr.bf16.mxu0 %v4894_v2  ;;  %2733 = vmatprep.subr.bf16.mxu0 %v3280_v0  ;;  %v3283_v4 = vld [vmem:[%s4891_s3 + $0x8] sm:$0xff]   ;;  %v3285_v6 = vld [vmem:[%s4891_s3 + $0x10] sm:$0xff]   ;;  %v3448_v13 = vrot.slane %v3363_v12, 7  ;;  %vm412_vm0 = vcmask 1040384   ;;  %vm516_vm2 = vcmask 1046528  }
   0xf   : > { %3253 = vmatprep.subr.bf16.mxu1 %v3280_v0  ;;  %2734 = vmatpush3.bf16.msra.mxu0 %v3281_v1  ;;  %s4939_s19 = smov (!%p222_p3, %s2357_s19), 1  ;;  %v3286_v7 = vld [vmem:[%s4891_s3 + $0x58] sm:$0xff]   ;;  %v3288_v9 = vld [vmem:[%s4891_s3 + $0x60] sm:$0xff]   ;;  %v3290_v11 = vld [vmem:[%s4891_s3 + $0x68] sm:$0xff]   ;;  %v3478_v28 = vshrl.u32 %v620_v17, 7  ;;  %vm3364_vm3 = vmmov 1  }
  0x10   : > { %3261 = vmatpush3.bf16.msra.mxu1 %v3281_v1  ;;  %2735 = vmatprep.subr.bf16.mxu0 %v3282_v3  ;;  %s2731_s9 = sshll.u32 %s4939_s19, 8  ;;  %v3287_v8 = vld [vmem:[%s4891_s3 + $0x18] sm:$0xff]   ;;  %v3289_v10 = vld [vmem:[%s4891_s3 + $0x20] sm:$0xff]   ;;  %4911 = vst [vmem:[#allocation2_spill] sm:$0xff] %v3448_v13  ;;  %v3291_v23 = vld [vmem:[%s4891_s3 + $0x28] sm:$0xff]   ;;  %v3473_v26 = vsel %vm412_vm0, 0.0, %v3448_v13 }
  0x11   : > { %3254 = vmatprep.subr.bf16.mxu1 %v3282_v3  ;;  %s3439_s16 = scalar_lea.vmem %s4888_s0, %s2731_s9  ;;  %v3455_v16 = vld [vmem:[%s4889_s1] ss:$0 sm:$0xff]  ;;  %v3292_v27 = vld [vmem:[%s4891_s3 + $0x70] sm:$0xff]   ;;  %v3294_v34 = vld [vmem:[%s4891_s3 + $0x78] sm:$0xff]   ;;  %vm623_vm1 = vcmp.ge.s32.totalorder %v3478_v28, 1  ;;  %v2442_v3 = vpack.c.bf16 %v3448_v13, %v3473_v26  ;;  %s4796_s28 = scalar_lea.vmem %s4892_s4, %s2731_s9 }
  0x12   : > { %v259_v14 = vld [vmem:[%s3439_s16 + $0xb0] sm:$0xff]  ;;  %v260_v15 = vld [vmem:[%s3439_s16 + $0xb8] sm:$0xff]  ;;  %v3462_v20 = vld [vmem:[%s4890_s2] ss:$0 sm:$0xff]  ;;  %s2366_s9 = sshll.u32 %s4939_s19, 1 }
  0x13   : > { %2736 = vmatpush3.bf16.msra.mxu0 %v3283_v4  ;;  %v298_v18 = vmul.f32 %v3455_v16, %v259_v14  ;;  %v299_v19 = vmul.f32 %v3455_v16, %v260_v15  ;;  %v258_v21 = vld [vmem:[%s3439_s16 + $0xa8] sm:$0xff]  ;;  %v3293_v33 = vld [vmem:[%s4891_s3 + $0x30] sm:$0xff]   ;;  %v237_v39 = vld [vmem:[%s3439_s16] sm:$0xff]  ;;  %s235_s6 = scalar_lea.vmem %s4893_s5, %s2366_s9 }
  0x14   : > { %3262 = vmatpush3.bf16.msra.mxu1 %v3283_v4  ;;  %2737 = vmatprep.subr.bf16.mxu0 %v3284_v5  ;;  %v297_v22 = vmul.f32 %v3455_v16, %v258_v21  ;;  %v238_v40 = vld [vmem:[%s3439_s16 + $0x8] sm:$0xff]  ;;  %v276_v42 = vmul.f32 %v3455_v16, %v237_v39  ;;  %v261_v44 = vld [vmem:[%s3439_s16 + $0xc0] sm:$0xff]  ;;  %v3295_v47 = vld [vmem:[%s4891_s3 + $0x38] sm:$0xff]  }
  0x15   : > { %3255 = vmatprep.subr.bf16.mxu1 %v3284_v5  ;;  %v337_v24 = vadd.f32 %v3462_v20, %v298_v18  ;;  %v338_v25 = vadd.f32 %v3462_v20, %v299_v19  ;;  %v277_v43 = vmul.f32 %v3455_v16, %v238_v40  ;;  %v262_v45 = vld [vmem:[%s3439_s16 + $0xc8] sm:$0xff]  ;;  %v300_v49 = vmul.f32 %v3455_v16, %v261_v44  ;;  %v3296_v52 = vld [vmem:[%s4891_s3 + $0xc0] sm:$0xff]   ;;  %vm3546_vm4 = vmpackc.low %vm3364_vm3, %vm623_vm1 }
  0x16   : > { %v336_v29 = vadd.f32 %v3462_v20, %v297_v22  ;;  %v301_v50 = vmul.f32 %v3455_v16, %v262_v45  ;;  %v315_v53 = vadd.f32 %v3462_v20, %v276_v42  ;;  %v3297_v56 = vld [vmem:[%s4891_s3 + $0x140] sm:$0xff]   ;;  %v239_v17 = vld [vmem:[%s3439_s16 + $0x10] sm:$0xff]  ;;  %v240_v18 = vld [vmem:[%s3439_s16 + $0x18] sm:$0xff] }
  0x17   : > { %2738 = vmatpush3.bf16.msra.mxu0 %v3285_v6  ;;  %v369_v30 = vmax.f32 %v337_v24, 0.0  ;;  %v3481_v31 = vmax.f32 %v338_v25, 0.0  ;;  %v316_v54 = vadd.f32 %v3462_v20, %v277_v43  ;;  %v339_v57 = vadd.f32 %v3462_v20, %v300_v49  ;;  %v3298_v60 = vld [vmem:[%s4891_s3 + $0x80] sm:$0xff]   ;;  %v263_v24 = vld [vmem:[%s3439_s16 + $0xd0] sm:$0xff]  ;;  %v264_v25 = vld [vmem:[%s3439_s16 + $0xd8] sm:$0xff] }
  0x18   : > { %3263 = vmatpush3.bf16.msra.mxu1 %v3285_v6  ;;  %2739 = vmatprep.subr.bf16.mxu0 %v3286_v7  ;;  %v3483_v32 = vmax.f32 %v336_v29, 0.0  ;;  %v340_v58 = vadd.f32 %v3462_v20, %v301_v50  ;;  %v3299_v61 = vld [vmem:[%s4891_s3 + $0x100] sm:$0xff]   ;;  %v3538_v62 = vmax.f32 %v315_v53, 0.0  ;;  %v3301_v26 = vld [vmem:[%s4891_s3 + $0x88] sm:$0xff]   ;;  %v3302_v39 = vld [vmem:[%s4891_s3 + $0xd0] sm:$0xff]   ;;  %v302_v40 = vmul.f32 %v3455_v16, %v263_v24 }
  0x19   : > { %3256 = vmatprep.subr.bf16.mxu1 %v3286_v7  ;;  %v3492_v35 = vpack.c.bf16 %v3481_v31, %v369_v30  ;;  %v459_v36 = vrot.slane %v369_v30, 7  ;;  %v461_v37 = vrot.slane %v3481_v31, 7  ;;  %v563_v46 = vrot.slane %v369_v30, 1  ;;  %v3300_v7 = vld [vmem:[%s4891_s3 + $0xc8] sm:$0xff]   ;;  %v3303_v43 = vld [vmem:[%s4891_s3 + $0x90] sm:$0xff]   ;;  %v265_v53 = vld [vmem:[%s3439_s16 + $0xe0] sm:$0xff] }
  0x1a   : > { %v4896_v38 = vrot.slane %v3483_v32, 7  ;;  %v4898_v41 = vrot.slane %v3483_v32, 1  ;;  %v565_v55 = vrot.slane %v3481_v31, 1  ;;  %v3540_v63 = vmax.f32 %v316_v54, 0.0  ;;  %v266_v54 = vld [vmem:[%s3439_s16 + $0xe8] sm:$0xff] }
  0x1b   : > { %2740 = vmatpush3.bf16.msra.mxu0 %v3287_v8  ;;  %1454 = vmatprep.mubr.bf16.mxu1 %v3492_v35  ;;  %v462_v48 = vsel %vm412_vm0, %v459_v36, %v461_v37  ;;  %v3554_v5 = vmax.f32 %v339_v57, 0.0  ;;  %v3556_v6 = vmax.f32 %v340_v58, 0.0  ;;  %v303_v42 = vmul.f32 %v3455_v16, %v264_v25  ;;  %v3315_v25 = vld [vmem:[%s4891_s3 + $0x110] sm:$0xff]  }
  0x1c   : > { %3264 = vmatpush3.bf16.msra.mxu1 %v3287_v8  ;;  %2741 = vmatprep.subr.bf16.mxu0 %v3288_v9  ;;  %v460_v51 = vsel %vm412_vm0, %v4896_v38, %v459_v36  ;;  %v3530_v59 = vsel %vm516_vm2, %v4898_v41, %v563_v46  ;;  %v566_v0 = vsel %vm516_vm2, %v563_v46, %v565_v55  ;;  %v415_v8 = vrot.slane %v3538_v62, 7  ;;  %v241_v46 = vld [vmem:[%s3439_s16 + $0x20] sm:$0xff] }
  0x1d   : > { %3257 = vmatprep.subr.bf16.mxu1 %v3288_v9  ;;  %v3552_v4 = vpack.c.bf16 %v462_v48, %v460_v51  ;;  %v417_v9 = vrot.slane %v3540_v63, 7  ;;  %v463_v14 = vrot.slane %v3554_v5, 7  ;;  %v465_v15 = vrot.slane %v3556_v6, 7  ;;  %v242_v51 = vld [vmem:[%s3439_s16 + $0x28] sm:$0xff] }
  0x1e   : > { %v3576_v19 = vpack.c.bf16 %v3556_v6, %v3554_v5  ;;  %v416_v21 = vsel %vm412_vm0, %v3448_v13, %v415_v8  ;;  %v567_v31 = vrot.slane %v3554_v5, 1  ;;  %v4897_v48 = vrot.slane %v3556_v6, 1  ;;  %v254_v13 = vld [vmem:[%s3439_s16 + $0x88] sm:$0xff] }
  0x1f   : > { %2742 = vmatpush3.bf16.msra.mxu0 %v3289_v10  ;;  %v418_v22 = vsel %vm412_vm0, %v415_v8, %v417_v9  ;;  %v466_v29 = vsel %vm412_vm0, %v463_v14, %v465_v15  ;;  %v341_v49 = vadd.f32 %v3462_v20, %v302_v40  ;;  %v342_v50 = vadd.f32 %v3462_v20, %v303_v42  ;;  %v3308_v40 = vld [vmem:[%s4891_s3 + $0xe0] sm:$0xff]  }
  0x20   : > { %3265 = vmatpush3.bf16.msra.mxu1 %v3289_v10  ;;  %2743 = vmatprep.subr.bf16.mxu0 %v3290_v11  ;;  %v3305_v10 = vld [vmem:[%s4891_s3 + $0x148] sm:$0xff]   ;;  %4914 = vst [vmem:[#allocation3_spill] sm:$0xff] %v3576_v19  ;;  %v3598_v30 = vpack.c.bf16 %v418_v22, %v416_v21  ;;  %v305_v8 = vmul.f32 %v3455_v16, %v266_v54  ;;  %v3313_v21 = vld [vmem:[%s4891_s3 + $0x150] sm:$0xff]  }
  0x21   : > { %3258 = vmatprep.subr.bf16.mxu1 %v3290_v11  ;;  %v3568_v11 = vpack.c.bf16 %v3540_v63, %v3538_v62 }
  0x23   : > { %2744 = vmatpush3.bf16.msra.mxu0 %v3291_v23 }
  0x24   : > { %3266 = vmatpush3.bf16.msra.mxu1 %v3291_v23  ;;  %2745 = vmatprep.subr.bf16.mxu0 %v3292_v27  ;;  %v278_v23 = vmul.f32 %v3455_v16, %v239_v17 }
  0x25   : > { %3259 = vmatprep.subr.bf16.mxu1 %v3292_v27  ;;  %v464_v27 = vsel %vm412_vm0, %v461_v37, %v463_v14 }
  0x26   : > { %v317_v36 = vadd.f32 %v3462_v20, %v278_v23  ;;  %v3607_v37 = vpack.c.bf16 %v466_v29, %v464_v27 }
  0x27   : > { %2746 = vmatpush3.bf16.msra.mxu0 %v3293_v33 }
  0x28   : > { %3267 = vmatpush3.bf16.msra.mxu1 %v3293_v33  ;;  %2747 = vmatprep.subr.bf16.mxu0 %v3294_v34  ;;  %v3307_v33 = vld [vmem:[%s4891_s3 + $0x108] sm:$0xff]   ;;  %v3619_v45 = vmax.f32 %v317_v36, 0.0 }
  0x29   : > { %3260 = vmatprep.subr.bf16.mxu1 %v3294_v34  ;;  %v279_v34 = vmul.f32 %v3455_v16, %v240_v18 }
  0x2a   : > { %v419_v58 = vrot.slane %v3619_v45, 7 }
  0x2b   : > { %2748 = vmatpush3.bf16.msra.mxu0 %v3295_v47  ;;  %v318_v44 = vadd.f32 %v3462_v20, %v279_v34  ;;  %v344_v34 = vadd.f32 %v3462_v20, %v305_v8  ;;  %v3734_v8 = vrot.slane %v3363_v12, 1  ;;  %v3321_v12 = vld [vmem:[%s4891_s3 + $0x118] sm:$0xff]  }
  0x2c   : > { %3268 = vmatpush3.bf16.msra.mxu1 %v3295_v47  ;;  %2957 = vmatprep.subr.bf16.mxu0 %v3297_v56  ;;  %v568_v47 = vsel %vm516_vm2, %v565_v55, %v567_v31  ;;  %v281_v55 = vmul.f32 %v3455_v16, %v242_v51  ;;  %v420_v14 = vsel %vm412_vm0, %v417_v9, %v419_v58 }
  0x2d   : > { %2845 = vmatprep.subr.bf16.mxu1 %v3296_v52  ;;  %v280_v52 = vmul.f32 %v3455_v16, %v241_v46  ;;  %v3632_v56 = vpack.c.bf16 %v568_v47, %v566_v0  ;;  %v3634_v57 = vmax.f32 %v318_v44, 0.0  ;;  %v3696_v44 = vmax.f32 %v344_v34, 0.0  ;;  %4917 = vst [vmem:[#allocation6_spill] sm:$0xff] %v3734_v8  ;;  %v246_v34 = vld [vmem:[%s3439_s16 + $0x48] sm:$0xff] }
  0x2e   : > { %2443 = vmatmul.mubr.msk.bf16.vlgmr.msra.gmra.mrb[0].mxu0 %vm3546_vm4, %v2442_v3  ;;  %v3642_v3 = vmax.f32 %v341_v49, 0.0  ;;  %v320_v18 = vadd.f32 %v3462_v20, %v281_v55  ;;  %v3709_v51 = vsel %vm516_vm2, %v567_v31, %v4897_v48  ;;  %v3329_v48 = vld [vmem:[%s4891_s3 + $0x190] sm:$0xff]  }
  0x2f   : > { %2479 = vmatmul.mubr.msk.bf16.vlgmr.msra.gmra.mrb[0].mxu1 %vm3546_vm4, %v3552_v4  ;;  %2958 = vmatpush3.bf16.msra.mxu0 %v3299_v61  ;;  %v3304_v61 = vld [vmem:[%s4891_s3 + $0xd8] sm:$0xff]   ;;  %v319_v0 = vadd.f32 %v3462_v20, %v280_v52  ;;  %v421_v17 = vrot.slane %v3634_v57, 7  ;;  %v3309_v52 = vld [vmem:[%s4891_s3 + $0xa0] sm:$0xff]   ;;  %v4895_v5 = vrot.slane %v3696_v44, 7 }
  0x30   : > { %2846 = vmatpush3.bf16.msra.mxu1 %v3298_v60  ;;  %1366 = vmatprep.mubr.bf16.mxu0 %v3568_v11  ;;  %v304_v60 = vmul.f32 %v3455_v16, %v265_v53  ;;  %v467_v9 = vrot.slane %v3642_v3, 7  ;;  %v3680_v29 = vmax.f32 %v320_v18, 0.0  ;;  %v3310_v53 = vld [vmem:[%s4891_s3 + $0xe8] sm:$0xff]  }
  0x31   : > { %2847 = vmatprep.subr.bf16.mxu1 %v3300_v7  ;;  %1462 = vmatprep.mubr.bf16.mxu1 %v3576_v19  ;;  %v3644_v7 = vmax.f32 %v342_v50, 0.0  ;;  %v3670_v24 = vmax.f32 %v319_v0, 0.0  ;;  %v422_v27 = vsel %vm412_vm0, %v419_v58, %v421_v17  ;;  %v244_v50 = vld [vmem:[%s3439_s16 + $0x38] sm:$0xff] }
  0x32   : > { %2959 = vmatprep.subr.bf16.mxu0 %v3305_v10  ;;  %v3650_v10 = vpack.c.bf16 %v3634_v57, %v3619_v45  ;;  %v468_v36 = vsel %vm412_vm0, %v465_v15, %v467_v9  ;;  %v3692_v42 = vpack.c.bf16 %v422_v27, %v420_v14  ;;  %v425_v49 = vrot.slane %v3680_v29, 7  ;;  %v243_v15 = vld [vmem:[%s3439_s16 + $0x30] sm:$0xff]  ;;  %v3320_v0 = vld [vmem:[%s4891_s3 + $0x158] sm:$0xff]  }
  0x33   : > { %2960 = vmatpush3.bf16.msra.mxu0 %v3307_v33  ;;  %v3666_v22 = vpack.c.bf16 %v3644_v7, %v3642_v3  ;;  %v469_v23 = vrot.slane %v3644_v7, 7  ;;  %v343_v33 = vadd.f32 %v3462_v20, %v304_v60  ;;  %v423_v47 = vrot.slane %v3670_v24, 7  ;;  %v3312_v27 = vld [vmem:[%s4891_s3 + $0xf0] sm:$0xff]  }
  0x34   : > { %2848 = vmatpush3.bf16.msra.mxu1 %v3301_v26  ;;  %v3306_v26 = vld [vmem:[%s4891_s3 + $0x98] sm:$0xff]   ;;  %2961 = vmatprep.subr.bf16.mxu0 %v3313_v21  ;;  %v3719_v54 = vpack.c.bf16 %v3680_v29, %v3670_v24  ;;  %v282_v31 = vmul.f32 %v3455_v16, %v243_v15  ;;  %v283_v60 = vmul.f32 %v3455_v16, %v244_v50  ;;  %v3314_v15 = vld [vmem:[%s4891_s3 + $0xb0] sm:$0xff]  }
  0x35   : > { %2849 = vmatprep.subr.bf16.mxu1 %v3302_v39  ;;  %4915 = vst [vmem:[#allocation4_spill] sm:$0xff] %v3666_v22  ;;  %v470_v39 = vsel %vm412_vm0, %v467_v9, %v469_v23  ;;  %v424_v14 = vsel %vm412_vm0, %v421_v17, %v423_v47  ;;  %v426_v18 = vsel %vm412_vm0, %v423_v47, %v425_v49  ;;  %v245_v9 = vld [vmem:[%s3439_s16 + $0x40] sm:$0xff]  ;;  %v519_v47 = vrot.slane %v3538_v62, 1 }
  0x36   : > { %2446 = vmatmul.mubr.msk.bf16.gmra.mrb[4].mxu0 %vm3546_vm4, %v3598_v30  ;;  %v3698_v46 = vpack.c.bf16 %v470_v39, %v468_v36  ;;  %v322_v21 = vadd.f32 %v3462_v20, %v283_v60  ;;  %v284_v36 = vmul.f32 %v3455_v16, %v245_v9  ;;  %v3777_v50 = vpack.c.bf16 %v426_v18, %v424_v14  ;;  %v3316_v14 = vld [vmem:[%s4891_s3 + $0xf8] sm:$0xff]  }
  0x37   : > { %2482 = vmatmul.mubr.msk.bf16.gmra.mrb[4].mxu1 %vm3546_vm4, %v3607_v37  ;;  %1374 = vmatprep.mubr.bf16.mxu0 %v3650_v10  ;;  %v622_v18 = vadd.s32 8, %v3478_v28  ;;  %v520_v9 = vsel %vm516_vm2, %v3734_v8, %v519_v47 }
  0x38   : > { %2850 = vmatpush3.bf16.msra.mxu1 %v3303_v43  ;;  %1470 = vmatprep.mubr.bf16.mxu1 %v3666_v22  ;;  %v3694_v43 = vmax.f32 %v343_v33, 0.0  ;;  %v3767_v39 = vmax.f32 %v322_v21, 0.0 }
  0x39   : > { %2851 = vmatprep.subr.bf16.mxu1 %v3304_v61  ;;  %2962 = vmatpush3.bf16.msra.mxu0 %v3315_v25  ;;  %v321_v61 = vadd.f32 %v3462_v20, %v282_v31  ;;  %v3311_v25 = vld [vmem:[%s4891_s3 + $0xa8] sm:$0xff]   ;;  %vm626_vm5 = vcmp.lt.s32.totalorder %v622_v18, 15 }
  0x3a   : > { %v471_v58 = vrot.slane %v3694_v43, 7  ;;  %v3726_v55 = vpack.c.bf16 %v3696_v44, %v3694_v43  ;;  %2963 = vmatprep.subr.bf16.mxu0 %v3320_v0  ;;  %v429_v60 = vrot.slane %v3767_v39, 7  ;;  %v248_v0 = vld [vmem:[%s3439_s16 + $0x58] sm:$0xff]  ;;  %vm3843_vm6 = vmpackc.low %vm626_vm5, %vm3364_vm3 }
  0x3b   : > { %v3762_v33 = vmax.f32 %v321_v61, 0.0  ;;  %v323_v61 = vadd.f32 %v3462_v20, %v284_v36  ;;  %v287_v28 = vmul.f32 %v3455_v16, %v248_v0  ;;  %v250_v0 = vld [vmem:[%s3439_s16 + $0x68] sm:$0xff] }
  0x3c   : > { %2852 = vmatpush3.bf16.msra.mxu1 %v3306_v26  ;;  %4916 = vst [vmem:[#allocation5_spill] sm:$0xff] %v3726_v55  ;;  %v472_v17 = vsel %vm412_vm0, %v469_v23, %v471_v58  ;;  %v474_v26 = vsel %vm412_vm0, %v471_v58, %v4895_v5  ;;  %v285_v23 = vmul.f32 %v3455_v16, %v246_v34  ;;  %v247_v58 = vld [vmem:[%s3439_s16 + $0x50] sm:$0xff] }
  0x3d   : > { %2853 = vmatprep.subr.bf16.mxu1 %v3308_v40  ;;  %v3322_v40 = vld [vmem:[%s4891_s3 + $0x160] sm:$0xff]   ;;  %2964 = vmatpush3.bf16.msra.mxu0 %v3321_v12  ;;  %v3785_v31 = vpack.c.bf16 %v3767_v39, %v3762_v33  ;;  %v3821_v36 = vmax.f32 %v323_v61, 0.0  ;;  %v2493_v61 = vpack.c.bf16 %v520_v9, %v3734_v8  ;;  %v326_v9 = vadd.f32 %v3462_v20, %v287_v28 }
  0x3e   : > { %2449 = vmatmul.mubr.msk.bf16.gmra.mrb[8].mxu0 %vm3546_vm4, %v3692_v42  ;;  %v324_v21 = vadd.f32 %v3462_v20, %v285_v23  ;;  %2965 = vmatprep.subr.bf16.mxu0 %v3322_v40  ;;  %v3324_v12 = vld [vmem:[%s4891_s3 + $0x120] sm:$0xff]  }
  0x3f   : > { %2485 = vmatmul.mubr.msk.bf16.gmra.mrb[8].mxu1 %vm3546_vm4, %v3698_v46  ;;  %1382 = vmatprep.mubr.bf16.mxu0 %v3719_v54  ;;  %v3318_v40 = vld [vmem:[%s4891_s3 + $0x1c0] sm:$0xff]   ;;  %v3886_v62 = vmax.f32 %v326_v9, 0.0  ;;  %v252_v9 = vld [vmem:[%s3439_s16 + $0x78] sm:$0xff] }
  0x40   : > { %2854 = vmatpush3.bf16.msra.mxu1 %v3309_v52  ;;  %1478 = vmatprep.mubr.bf16.mxu1 %v3726_v55  ;;  %v3779_v52 = vpack.c.bf16 %v474_v26, %v472_v17  ;;  %v3326_v17 = vld [vmem:[%s4891_s3 + $0x168] sm:$0xff]   ;;  %v3317_v26 = vld [vmem:[%s4891_s3 + $0xb8] sm:$0xff]   ;;  %v3823_v23 = vmax.f32 %v324_v21, 0.0  ;;  %v523_v21 = vrot.slane %v3619_v45, 1  ;;  %v431_v45 = vrot.slane %v3821_v36, 7 }
  0x41   : > { %2855 = vmatprep.subr.bf16.mxu1 %v3310_v53  ;;  %v427_v53 = vrot.slane %v3762_v33, 7  ;;  %2966 = vmatpush3.bf16.msra.mxu0 %v3324_v12 }
  0x42   : > { %2967 = vmatprep.subr.bf16.mxu0 %v3326_v17  ;;  %v3852_v18 = vpack.c.bf16 %v3823_v23, %v3821_v36  ;;  %v433_v12 = vrot.slane %v3823_v23, 7  ;;  %v3325_v17 = vld [vmem:[%s4891_s3 + $0x188] sm:$0xff]  }
  0x43   : > { %v430_v34 = vsel %vm412_vm0, %v427_v53, %v429_v60 }
  0x44   : > { %2856 = vmatpush3.bf16.msra.mxu1 %v3311_v25  ;;  %v286_v25 = vmul.f32 %v3455_v16, %v247_v58  ;;  %v434_v2 = vsel %vm412_vm0, %v431_v45, %v433_v12 }
  0x45   : > { %2857 = vmatprep.subr.bf16.mxu1 %v3312_v27  ;;  %v428_v27 = vsel %vm412_vm0, %v425_v49, %v427_v53  ;;  %v249_v49 = vld [vmem:[%s3439_s16 + $0x60] sm:$0xff]  ;;  %v3327_v53 = vld [vmem:[%s4891_s3 + $0x128] sm:$0xff]  }
  0x46   : > { %2452 = vmatmul.mubr.msk.bf16.gmra.mrb[12].mxu0 %vm3546_vm4, %v3777_v50  ;;  %v3836_v58 = vpack.c.bf16 %v430_v34, %v428_v27  ;;  %v289_v27 = vmul.f32 %v3455_v16, %v250_v0  ;;  %v3330_v34 = vld [vmem:[%s4891_s3 + $0x170] sm:$0xff]   ;;  %v432_v0 = vsel %vm412_vm0, %v429_v60, %v431_v45  ;;  %v525_v60 = vrot.slane %v3634_v57, 1 }
  0x47   : > { %2488 = vmatmul.mubr.msk.bf16.gmra.mrb[12].mxu1 %vm3546_vm4, %v3779_v52  ;;  %1390 = vmatprep.mubr.bf16.mxu0 %v3785_v31  ;;  %v3902_v5 = vpack.c.bf16 %v434_v2, %v432_v0  ;;  %v257_v2 = vld [vmem:[%s3439_s16 + $0xa0] sm:$0xff]  ;;  %v3332_v0 = vld [vmem:[%s4891_s3 + $0x1d8] sm:$0xff]  }
  0x48   : > { %2858 = vmatpush3.bf16.msra.mxu1 %v3314_v15  ;;  %2491 = vmatprep.mubr.msk.bf16.mxu1 %vm3546_vm4, %v3598_v30  ;;  %v521_v15 = vrot.slane %v3540_v63, 1  ;;  %v325_v30 = vadd.f32 %v3462_v20, %v286_v25  ;;  %v3323_v25 = vld [vmem:[%s4891_s3 + $0x1c8] sm:$0xff]   ;;  %v328_v45 = vadd.f32 %v3462_v20, %v289_v27  ;;  %v3335_v27 = vld [vmem:[%s4891_s3 + $0x138] sm:$0xff]  }
  0x49   : > { %2859 = vmatprep.subr.bf16.mxu1 %v3316_v14  ;;  %v3319_v14 = vld [vmem:[%s4891_s3 + $0x180] sm:$0xff]   ;;  %2968 = vmatpush3.bf16.msra.mxu0 %v3327_v53  ;;  %v3331_v53 = vld [vmem:[%s4891_s3 + $0x130] sm:$0xff]  }
  0x4a   : > { %v522_v28 = vsel %vm516_vm2, %v519_v47, %v521_v15  ;;  %v3334_v47 = vld [vmem:[%s4891_s3 + $0x178] sm:$0xff]   ;;  %2969 = vmatprep.subr.bf16.mxu0 %v3330_v34 }
  0x4c   : > { %2860 = vmatpush3.bf16.msra.mxu1 %v3317_v26  ;;  %v288_v26 = vmul.f32 %v3455_v16, %v249_v49  ;;  %v251_v49 = vld [vmem:[%s3439_s16 + $0x70] sm:$0xff] }
  0x4d   : > { %3069 = vmatprep.subr.bf16.mxu1 %v3318_v40  ;;  %v3876_v40 = vmax.f32 %v325_v30, 0.0  ;;  %v3328_v30 = vld [vmem:[%s4891_s3 + $0x1d0] sm:$0xff]   ;;  %2970 = vmatpush3.bf16.msra.mxu0 %v3331_v53  ;;  %v291_v53 = vmul.f32 %v3455_v16, %v252_v9  ;;  %v253_v9 = vld [vmem:[%s3439_s16 + $0x80] sm:$0xff] }
  0x4e   : > { %2455 = vmatmul.mubr.msk.bf16.gmra.mrb[16].mxu0 %vm3546_vm4, %v3836_v58  ;;  %2971 = vmatprep.subr.bf16.mxu0 %v3334_v47  ;;  %v529_v47 = vrot.slane %v3680_v29, 1  ;;  %v3333_v29 = vld [vmem:[%s4891_s3 + $0x198] sm:$0xff]  }
  0x4f   : > { %2494 = vmatmul.mubr.msk.bf16.vlgmr.msra.gmra.mrb[16].mxu1 %vm3843_vm6, %v2493_v61  ;;  %1398 = vmatprep.mubr.bf16.mxu0 %v3852_v18  ;;  %v524_v61 = vsel %vm516_vm2, %v521_v15, %v523_v21  ;;  %v527_v15 = vrot.slane %v3670_v24, 1  ;;  %v3912_v57 = vpack.c.bf16 %v3886_v62, %v3876_v40  ;;  %v437_v24 = vrot.slane %v3886_v62, 7 }
  0x50   : > { %3070 = vmatpush3.bf16.msra.mxu1 %v3319_v14  ;;  %2497 = vmatprep.mubr.msk.bf16.mxu1 %vm3546_vm4, %v3692_v42  ;;  %v327_v14 = vadd.f32 %v3462_v20, %v288_v26  ;;  %v3904_v38 = vpack.c.bf16 %v524_v61, %v522_v28  ;;  %v290_v26 = vmul.f32 %v3455_v16, %v251_v49  ;;  %v3922_v28 = vmax.f32 %v328_v45, 0.0 }
  0x51   : > { %3071 = vmatprep.subr.bf16.mxu1 %v3323_v25  ;;  %v435_v25 = vrot.slane %v3876_v40, 7  ;;  %v526_v49 = vsel %vm516_vm2, %v523_v21, %v525_v60  ;;  %v528_v61 = vsel %vm516_vm2, %v525_v60, %v527_v15  ;;  %2972 = vmatpush3.bf16.msra.mxu0 %v3335_v27  ;;  %v530_v27 = vsel %vm516_vm2, %v527_v15, %v529_v47 }
  0x52   : > { %v3920_v34 = vmax.f32 %v327_v14, 0.0  ;;  %v329_v21 = vadd.f32 %v3462_v20, %v290_v26  ;;  %v3336_v26 = vld [vmem:[%s4891_s3 + $0x1e0] sm:$0xff]   ;;  %v3964_v41 = vpack.c.bf16 %v528_v61, %v526_v49  ;;  %v575_v49 = vrot.slane %v3694_v43, 1 }
  0x53   : > { %v436_v14 = vsel %vm412_vm0, %v433_v12, %v435_v25  ;;  %v438_v45 = vsel %vm412_vm0, %v435_v25, %v437_v24  ;;  %v330_v25 = vadd.f32 %v3462_v20, %v291_v53 }
  0x54   : > { %3072 = vmatpush3.bf16.msra.mxu1 %v3325_v17  ;;  %v3931_v17 = vld [vmem:[%s4891_s3 + $0x200] sm:$0xff]   ;;  %v3972_v53 = vpack.c.bf16 %v3922_v28, %v3920_v34  ;;  %v3977_v55 = vmax.f32 %v329_v21, 0.0  ;;  %v3339_v21 = vld [vmem:[%s4891_s3 + $0x1e8] sm:$0xff]  }
  0x55   : > { %3073 = vmatprep.subr.bf16.mxu1 %v3328_v30  ;;  %v296_v30 = vmul.f32 %v3455_v16, %v257_v2  ;;  %v439_v2 = vrot.slane %v3920_v34, 7  ;;  %3205 = vmatprep.subr.bf16.mxu0 %v3931_v17  ;;  %v3989_v8 = vmax.f32 %v330_v25, 0.0  ;;  %v3341_v25 = vld [vmem:[%s4891_s3 + $0x1a8] sm:$0xff]  }
  0x56   : > { %2458 = vmatmul.mubr.msk.bf16.gmra.mrb[20].mxu0 %vm3546_vm4, %v3902_v5 }
  0x57   : > { %2500 = vmatmul.mubr.msk.bf16.gmra.mrb[20].mxu1 %vm3843_vm6, %v3904_v38  ;;  %1406 = vmatprep.mubr.bf16.mxu0 %v3912_v57  ;;  %v335_v60 = vadd.f32 %v3462_v20, %v296_v30  ;;  %v533_v30 = vrot.slane %v3767_v39, 1  ;;  %v3338_v39 = vld [vmem:[%s4891_s3 + $0x1a0] sm:$0xff]   ;;  %v440_v15 = vsel %vm412_vm0, %v437_v24, %v439_v2 }
  0x58   : > { %2503 = vmatprep.mubr.msk.bf16.mxu1 %vm3546_vm4, %v3777_v50  ;;  %3074 = vmatpush3.bf16.msra.mxu1 %v3329_v48  ;;  %v3962_v48 = vpack.c.bf16 %v438_v45, %v436_v14  ;;  %v4921_v14 = vrot.slane %v3922_v28, 7 }
  0x59   : > { %3075 = vmatprep.subr.bf16.mxu1 %v3332_v0  ;;  %v4920_v0 = vrot.slane %v3762_v33, 1  ;;  %v3980_v61 = vmax.f32 %v335_v60, 0.0  ;;  %v267_v60 = vld [vmem:[%s3439_s16 + $0xf0] sm:$0xff] }
  0x5a   : > { %v442_v45 = vsel %vm412_vm0, %v439_v2, %v4921_v14  ;;  %v293_v2 = vmul.f32 %v3455_v16, %v254_v13  ;;  %v3342_v13 = vld [vmem:[%s4891_s3 + $0x1f0] sm:$0xff]  }
  0x5b   : > { %v532_v12 = vsel %vm516_vm2, %v529_v47, %v4920_v0  ;;  %v292_v47 = vmul.f32 %v3455_v16, %v253_v9  ;;  %v443_v9 = vrot.slane %v3977_v55, 7  ;;  %v4922_v0 = vrot.slane %v3483_v32, 1 }
  0x5c   : > { %3076 = vmatpush3.bf16.msra.mxu1 %v3333_v29  ;;  %v4001_v24 = vpack.c.bf16 %v532_v12, %v530_v27  ;;  %v4905_v29 = vrot.slane %v3980_v61, 1  ;;  %v571_v12 = vrot.slane %v3642_v3, 1  ;;  %v4016_v27 = vpack.c.bf16 %v442_v45, %v440_v15 }
  0x5d   : > { %3077 = vmatprep.subr.bf16.mxu1 %v3336_v26  ;;  %v573_v26 = vrot.slane %v3644_v7, 1  ;;  %v306_v3 = vmul.f32 %v3455_v16, %v267_v60  ;;  %v331_v7 = vadd.f32 %v3462_v20, %v292_v47  ;;  %v4923_v15 = vrot.slane %v3556_v6, 1 }
  0x5e   : > { %2461 = vmatmul.mubr.msk.bf16.gmra.mrb[24].mxu0 %vm3546_vm4, %v3962_v48  ;;  %v562_v14 = vsel %vm516_vm2, %v4905_v29, %v4922_v0  ;;  %v4038_v29 = vpack.c.bf16 %v3989_v8, %v3977_v55 }
  0x5f   : > { %2506 = vmatmul.mubr.msk.bf16.gmra.mrb[24].mxu1 %vm3843_vm6, %v3964_v41  ;;  %1414 = vmatprep.mubr.bf16.mxu0 %v3972_v53  ;;  %v572_v45 = vsel %vm516_vm2, %v4923_v15, %v571_v12  ;;  %v574_v0 = vsel %vm516_vm2, %v571_v12, %v573_v26  ;;  %v576_v60 = vsel %vm516_vm2, %v573_v26, %v575_v49  ;;  %v255_v12 = vld [vmem:[%s3439_s16 + $0x90] sm:$0xff]  ;;  %v256_v15 = vld [vmem:[%s3439_s16 + $0x98] sm:$0xff]  ;;  %v4924_v26 = vrot.slane %v3762_v33, 1 }
  0x60   : > { %2509 = vmatprep.mubr.msk.bf16.mxu1 %vm3546_vm4, %v3836_v58  ;;  %3078 = vmatpush3.bf16.msra.mxu1 %v3338_v39  ;;  %v4030_v39 = vpack.c.bf16 %v3530_v59, %v562_v14  ;;  %v4041_v43 = vpack.c.bf16 %v572_v45, %v3709_v51  ;;  %v345_v47 = vadd.f32 %v3462_v20, %v306_v3  ;;  %v445_v59 = vrot.slane %v3989_v8, 7  ;;  %v3344_v51 = vld [vmem:[%s4891_s3 + $0x1b0] sm:$0xff]  }
  0x61   : > { %3079 = vmatprep.subr.bf16.mxu1 %v3339_v21  ;;  %v332_v21 = vadd.f32 %v3462_v20, %v293_v2  ;;  %v4047_v6 = vpack.c.bf16 %v576_v60, %v574_v0  ;;  %v577_v14 = vrot.slane %v3696_v44, 1  ;;  %v534_v3 = vsel %vm516_vm2, %v4924_v26, %v533_v30  ;;  %v3345_v20 = vld [vmem:[%s4891_s3 + $0x1f8] sm:$0xff]  }
  0x62   : > { %v4055_v45 = vmax.f32 %v345_v47, 0.0  ;;  %v4076_v60 = vmax.f32 %v331_v7, 0.0  ;;  %v446_v47 = vsel %vm412_vm0, %v443_v9, %v445_v59  ;;  %v295_v22 = vmul.f32 %v3455_v16, %v256_v15 }
  0x63   : > { %v578_v2 = vsel %vm516_vm2, %v575_v49, %v577_v14  ;;  %v4084_v26 = vmax.f32 %v332_v21, 0.0 }
  0x64   : > { %3080 = vmatpush3.bf16.msra.mxu1 %v3341_v25  ;;  %v4925_v25 = vrot.slane %v3922_v28, 7  ;;  %v4910_v49 = vrot.slane %v4055_v45, 1  ;;  %v447_v21 = vrot.slane %v4076_v60, 7 }
  0x65   : > { %3081 = vmatprep.subr.bf16.mxu1 %v3342_v13  ;;  %v4926_v13 = vrot.slane %v3821_v36, 1  ;;  %v4105_v15 = vpack.c.bf16 %v4084_v26, %v4076_v60 }
  0x66   : > { %2464 = vmatmul.mubr.msk.bf16.gmra.mrb[28].mxu0 %vm3546_vm4, %v4016_v27  ;;  %v444_v33 = vsel %vm412_vm0, %v4925_v25, %v443_v9  ;;  %v294_v25 = vmul.f32 %v3455_v16, %v255_v12  ;;  %v580_v7 = vsel %vm516_vm2, %v577_v14, %v4910_v49  ;;  %v537_v16 = vrot.slane %v3823_v23, 1  ;;  %v3352_v14 = vld [vmem:[%s4890_s2] ss:$0 sm:$0xff] }
  0x67   : > { %2512 = vmatmul.mubr.msk.bf16.gmra.mrb[28].mxu1 %vm3843_vm6, %v4001_v24  ;;  %v536_v0 = vsel %vm516_vm2, %v533_v30, %v4926_v13  ;;  %1422 = vmatprep.mubr.bf16.mxu0 %v4038_v29  ;;  %v3347_v30 = vld [vmem:[%s4891_s3 + $0x1b8] sm:$0xff]   ;;  %v4096_v19 = vpack.c.bf16 %v580_v7, %v578_v2  ;;  %v4098_v9 = vpack.c.bf16 %v446_v47, %v444_v33  ;;  %v539_v12 = vrot.slane %v3876_v40, 1 }
  0x68   : > { %2515 = vmatprep.mubr.msk.bf16.mxu1 %vm3546_vm4, %v3902_v5  ;;  %3082 = vmatpush3.bf16.msra.mxu1 %v3344_v51  ;;  %v4094_v13 = vpack.c.bf16 %v536_v0, %v534_v3  ;;  %v449_v51 = vrot.slane %v4084_v26, 7  ;;  %v333_v3 = vadd.f32 %v3352_v14, %v294_v25  ;;  %v4927_v23 = vrot.slane %v3821_v36, 1 }
  0x69   : > { %3083 = vmatprep.subr.bf16.mxu1 %v3345_v20  ;;  %v334_v20 = vadd.f32 %v3352_v14, %v295_v22  ;;  %v540_v2 = vsel %vm516_vm2, %v537_v16, %v539_v12  ;;  %v448_v22 = vsel %vm412_vm0, %v445_v59, %v447_v21  ;;  %v4168_v49 = vpack.c.bf16 %v3483_v32, %v3980_v61 }
  0x6a   : > { %v538_v40 = vsel %vm516_vm2, %v4927_v23, %v537_v16  ;;  %v450_v33 = vsel %vm412_vm0, %v447_v21, %v449_v51  ;;  %v4127_v0 = vmax.f32 %v333_v3, 0.0  ;;  %v543_v21 = vrot.slane %v3920_v34, 1  ;;  %v268_v23 = vld [vmem:[%s3439_s16 + $0xf8] sm:$0xff] }
  0x6b   : > { %v4129_v47 = vmax.f32 %v334_v20, 0.0  ;;  %v4131_v36 = vpack.c.bf16 %v450_v33, %v448_v22  ;;  %v4133_v25 = vpack.c.bf16 %v540_v2, %v538_v40  ;;  %v545_v22 = vrot.slane %v3922_v28, 1 }
  0x6c   : > { %3084 = vmatpush3.bf16.msra.mxu1 %v3347_v30  ;;  %v541_v30 = vrot.slane %v3886_v62, 1  ;;  %v451_v16 = vrot.slane %v4127_v0, 7 }
  0x6d   : > { %v4138_v7 = vpack.c.bf16 %v4129_v47, %v4127_v0  ;;  %v453_v59 = vrot.slane %v4129_v47, 7  ;;  %v546_v28 = vsel %vm516_vm2, %v543_v21, %v545_v22 }
  0x6e   : > { %2467 = vmatmul.mubr.msk.bf16.gmra.mrb[32].mxu0 %vm3546_vm4, %v4098_v9  ;;  %v542_v62 = vsel %vm516_vm2, %v539_v12, %v541_v30  ;;  %v452_v3 = vsel %vm412_vm0, %v449_v51, %v451_v16  ;;  %v544_v20 = vsel %vm516_vm2, %v541_v30, %v543_v21  ;;  %v3353_v12 = vld [vmem:[%s4889_s1] ss:$0 sm:$0xff]  ;;  %v455_v51 = vrot.slane %v3980_v61, 7 }
  0x6f   : > { %2518 = vmatmul.mubr.msk.bf16.gmra.mrb[32].mxu1 %vm3843_vm6, %v4094_v13  ;;  %1430 = vmatprep.mubr.bf16.mxu0 %v4105_v15  ;;  %v454_v34 = vsel %vm412_vm0, %v451_v16, %v453_v59  ;;  %v4160_v2 = vpack.c.bf16 %v544_v20, %v542_v62  ;;  %v307_v33 = vmul.f32 %v3353_v12, %v268_v23  ;;  %v547_v30 = vrot.slane %v3977_v55, 1 }
  0x70   : > { %2521 = vmatprep.mubr.msk.bf16.mxu1 %vm3546_vm4, %v3962_v48  ;;  %v4158_v40 = vpack.c.bf16 %v454_v34, %v452_v3  ;;  %v456_v62 = vsel %vm412_vm0, %v453_v59, %v455_v51  ;;  %v4928_v55 = vrot.slane %v3483_v32, 7  ;;  %v551_v12 = vrot.slane %v4076_v60, 1 }
  0x71   : > { %v346_v16 = vadd.f32 %v3352_v14, %v307_v33  ;;  %v548_v34 = vsel %vm516_vm2, %v545_v22, %v547_v30  ;;  %v549_v14 = vrot.slane %v3989_v8, 1  ;;  %v553_v59 = vrot.slane %v4084_v26, 1 }
  0x72   : > { %v458_v3 = vsel %vm412_vm0, %v455_v51, %v4928_v55  ;;  %v4190_v23 = vpack.c.bf16 %v548_v34, %v546_v28  ;;  %v555_v22 = vrot.slane %v4127_v0, 1  ;;  %v3340_v51 = vld [vmem:[%s4891_s3 + $0x208] sm:$0xff]   ;;  %v3343_v0 = vld [vmem:[%s4891_s3 + $0x210] sm:$0xff]   ;;  %v4929_v28 = vrot.slane %v3980_v61, 1  ;;  %v3351_v34 = vld [vmem:[%s4891_s3 + $0x238] sm:$0xff]  }
  0x73   : > { %v4188_v20 = vpack.c.bf16 %v458_v3, %v456_v62  ;;  %v4192_v21 = vmax.f32 %v346_v16, 0.0  ;;  %v550_v32 = vsel %vm516_vm2, %v547_v30, %v549_v14  ;;  %v552_v8 = vsel %vm516_vm2, %v549_v14, %v551_v12  ;;  %v3346_v30 = vld [vmem:[%s4891_s3 + $0x218] sm:$0xff]   ;;  %v3348_v62 = vld [vmem:[%s4891_s3 + $0x220] sm:$0xff]   ;;  %v3349_v3 = vld [vmem:[%s4891_s3 + $0x228] sm:$0xff]  }
  0x74   : > { %v4214_v60 = vpack.c.bf16 %v552_v8, %v550_v32  ;;  %v556_v26 = vsel %vm516_vm2, %v553_v59, %v555_v22  ;;  %v3350_v61 = vld [vmem:[%s4891_s3 + $0x230] sm:$0xff]   ;;  %v475_v14 = vrot.slane %v4055_v45, 7  ;;  %v4930_v32 = vrot.slane %v3696_v44, 7 }
  0x75   : > { %v4198_v33 = vpack.c.bf16 %v4192_v21, %v4055_v45  ;;  %v4932_v44 = vld [vmem:[#allocation4_spill] sm:$0xff] }
  0x76   : > { %2470 = vmatmul.mubr.msk.bf16.gmra.mrb[36].mxu0 %vm3546_vm4, %v4131_v36  ;;  %v476_v8 = vsel %vm412_vm0, %v4930_v32, %v475_v14 }
  0x77   : > { %2524 = vmatmul.mubr.msk.bf16.gmra.mrb[36].mxu1 %vm3843_vm6, %v4133_v25  ;;  %1438 = vmatprep.mubr.bf16.mxu0 %v4138_v7 }
  0x78   : > { %2527 = vmatprep.mubr.msk.bf16.mxu1 %vm3546_vm4, %v4016_v27 }
  0x7e   : > { %2473 = vmatmul.mubr.msk.bf16.gmra.mrb[40].mxu0 %vm3546_vm4, %v4158_v40 }
  0x7f   : > { %2530 = vmatmul.mubr.msk.bf16.gmra.mrb[40].mxu1 %vm3843_vm6, %v4160_v2  ;;  %1446 = vmatprep.mubr.bf16.mxu0 %v4168_v49 }
  0x80   : > { %2533 = vmatprep.mubr.msk.bf16.mxu1 %vm3546_vm4, %v4098_v9 }
  0x86   : > { %2476 = vmatmul.mubr.msk.bf16.gmra.mrb[44].mxu0 %vm3546_vm4, %v4188_v20 }
  0x87   : > { %2536 = vmatmul.mubr.msk.bf16.gmra.mrb[44].mxu1 %vm3843_vm6, %v4190_v23  ;;  %2587 = vmatprep.mubr.msk.bf16.mxu0 %vm3843_vm6, %v3904_v38  ;;  %v554_v38 = vsel %vm516_vm2, %v551_v12, %v553_v59  ;;  %v477_v12 = vrot.slane %v4192_v21, 7 }
  0x88   : > { %2539 = vmatprep.mubr.msk.bf16.mxu1 %vm3546_vm4, %v4131_v36 }
  0x89   : > { %v478_v59 = vsel %vm412_vm0, %v475_v14, %v477_v12 }
  0x8e   : > { %1681 = vmatmul.mubr.bf16.vlgmr.msra.gmra.mrb[48].mxu0 %v3568_v11  ;;  %v4237_v11 = vpack.c.bf16 %v556_v26, %v554_v38 }
  0x8f   : > { %2542 = vmatmul.mubr.msk.bf16.gmra.mrb[48].mxu1 %vm3843_vm6, %v4214_v60  ;;  %3206 = vmatpush3.bf16.msra.mxu0 %v3931_v17  ;;  %v557_v17 = vrot.slane %v4129_v47, 1 }
  0x90   : > { %2545 = vmatprep.mubr.msk.bf16.mxu1 %vm3546_vm4, %v4158_v40  ;;  %2590 = vmatprep.mubr.msk.bf16.mxu0 %vm3843_vm6, %v3964_v41 }
  0x91   : > { %3207 = vmatprep.subr.bf16.mxu0 %v3340_v51  ;;  %v558_v47 = vsel %vm516_vm2, %v555_v22, %v557_v17  ;;  %v560_v16 = vsel %vm516_vm2, %v557_v17, %v4929_v28  ;;  %v4319_v22 = vpack.c.bf16 %v478_v59, %v476_v8 }
  0x92   : > { %v4260_v55 = vpack.c.bf16 %v560_v16, %v558_v47 }
  0x93   : > { %3208 = vmatpush3.bf16.msra.mxu0 %v3340_v51 }
  0x94   : > { %3209 = vmatprep.subr.bf16.mxu0 %v3343_v0 }
  0x96   : > { %1689 = vmatmul.mubr.bf16.gmra.mrb[52].mxu0 %v3650_v10 }
  0x97   : > { %2548 = vmatmul.mubr.msk.bf16.gmra.mrb[52].mxu1 %vm3843_vm6, %v4237_v11  ;;  %2593 = vmatprep.mubr.msk.bf16.mxu0 %vm3843_vm6, %v4001_v24 }
  0x98   : > { %2551 = vmatprep.mubr.msk.bf16.mxu1 %vm3546_vm4, %v4188_v20  ;;  %3210 = vmatpush3.bf16.msra.mxu0 %v3343_v0 }
  0x99   : > { %3211 = vmatprep.subr.bf16.mxu0 %v3346_v30 }
  0x9c   : > { %3212 = vmatpush3.bf16.msra.mxu0 %v3346_v30 }
  0x9d   : > { %3213 = vmatprep.subr.bf16.mxu0 %v3348_v62 }
  0x9e   : > { %1697 = vmatmul.mubr.bf16.gmra.mrb[56].mxu0 %v3719_v54 }
  0x9f   : > { %2554 = vmatmul.mubr.msk.bf16.gmra.mrb[56].mxu1 %vm3843_vm6, %v4260_v55  ;;  %2596 = vmatprep.mubr.msk.bf16.mxu0 %vm3843_vm6, %v4094_v13 }
  0xa0   : > { %2557 = vmatprep.mubr.msk.bf16.mxu1 %vm3546_vm4, %v3552_v4  ;;  %3214 = vmatpush3.bf16.msra.mxu0 %v3348_v62 }
  0xa1   : > { %3215 = vmatprep.subr.bf16.mxu0 %v3349_v3 }
  0xa4   : > { %3216 = vmatpush3.bf16.msra.mxu0 %v3349_v3 }
  0xa5   : > { %3217 = vmatprep.subr.bf16.mxu0 %v3350_v61 }
  0xa6   : > { %1705 = vmatmul.mubr.bf16.gmra.mrb[60].mxu0 %v3785_v31 }
  0xa7   : > { %2560 = vmatmul.mubr.msk.bf16.gmra.mrb[60].mxu1 %vm3843_vm6, %v4030_v39  ;;  %2599 = vmatprep.mubr.msk.bf16.mxu0 %vm3843_vm6, %v4133_v25 }
  0xa8   : > { %2563 = vmatprep.mubr.msk.bf16.mxu1 %vm3546_vm4, %v3607_v37  ;;  %3218 = vmatpush3.bf16.msra.mxu0 %v3350_v61 }
  0xa9   : > { %3219 = vmatprep.subr.bf16.mxu0 %v3351_v34 }
  0xac   : > { %3220 = vmatpush3.bf16.msra.mxu0 %v3351_v34 }
  0xae   : > { %1713 = vmatmul.mubr.bf16.gmra.mrb[64].mxu0 %v3852_v18 }
  0xaf   : > { %2566 = vmatmul.mubr.msk.bf16.gmra.mrb[64].mxu1 %vm3843_vm6, %v3632_v56  ;;  %2602 = vmatprep.mubr.msk.bf16.mxu0 %vm3843_vm6, %v4160_v2 }
  0xb0   : > { %2569 = vmatprep.mubr.msk.bf16.mxu1 %vm3546_vm4, %v3698_v46 }
  0xb6   : > { %1721 = vmatmul.mubr.bf16.gmra.mrb[68].mxu0 %v3912_v57 }
  0xb7   : > { %2572 = vmatmul.mubr.msk.bf16.gmra.mrb[68].mxu1 %vm3843_vm6, %v4041_v43  ;;  %2605 = vmatprep.mubr.msk.bf16.mxu0 %vm3843_vm6, %v4190_v23 }
  0xb8   : > { %2575 = vmatprep.mubr.msk.bf16.mxu1 %vm3546_vm4, %v3779_v52 }
  0xbe   : > { %1729 = vmatmul.mubr.bf16.gmra.mrb[72].mxu0 %v3972_v53 }
  0xbf   : > { %2578 = vmatmul.mubr.msk.bf16.gmra.mrb[72].mxu1 %vm3843_vm6, %v4047_v6  ;;  %2608 = vmatprep.mubr.msk.bf16.mxu0 %vm3843_vm6, %v4214_v60 }
  0xc0   : > { %2581 = vmatprep.mubr.msk.bf16.mxu1 %vm3546_vm4, %v4319_v22 }
  0xc6   : > { %1737 = vmatmul.mubr.bf16.gmra.mrb[76].mxu0 %v4038_v29 }
  0xc7   : > { %2584 = vmatmul.mubr.msk.bf16.gmra.mrb[76].mxu1 %vm3843_vm6, %v4096_v19  ;;  %2611 = vmatprep.mubr.msk.bf16.mxu0 %vm3843_vm6, %v4237_v11 }
  0xc8   : > { %1841 = vmatprep.mubr.bf16.mxu1 %v3650_v10  ;;  %v4931_v10 = vld [vmem:[#allocation3_spill] sm:$0xff] }
  0xce   : > { %1745 = vmatmul.mubr.bf16.gmra.mrb[80].mxu0 %v4105_v15 }
  0xcf   : > { %2635 = vmatmul.mubr.msk.bf16.vlgmr.msra.gmra.mrb[80].mxu1 %vm3546_vm4, %v3692_v42  ;;  %2614 = vmatprep.mubr.msk.bf16.mxu0 %vm3843_vm6, %v4260_v55  ;;  %v581_v42 = vrot.slane %v4192_v21, 1 }
  0xd0   : > { %1849 = vmatprep.mubr.bf16.mxu1 %v3719_v54  ;;  %v4933_v54 = vrot.slane %v4055_v45, 1 }
  0xd6   : > { %1753 = vmatmul.mubr.bf16.gmra.mrb[84].mxu0 %v4138_v7 }
  0xd7   : > { %2638 = vmatmul.mubr.msk.bf16.gmra.mrb[84].mxu1 %vm3546_vm4, %v3777_v50  ;;  %2617 = vmatprep.mubr.msk.bf16.mxu0 %vm3843_vm6, %v4030_v39  ;;  %v4934_v50 = vld [vmem:[#allocation6_spill] sm:$0xff] }
  0xd8   : > { %1857 = vmatprep.mubr.bf16.mxu1 %v3785_v31  ;;  %v583_v31 = vsel %vm516_vm2, %v581_v42, %v4934_v50 }
  0xde   : > { %1761 = vmatmul.mubr.bf16.gmra.mrb[88].mxu0 %v4168_v49 }
  0xdf   : > { %2641 = vmatmul.mubr.msk.bf16.gmra.mrb[88].mxu1 %vm3546_vm4, %v3836_v58  ;;  %2620 = vmatprep.mubr.msk.bf16.mxu0 %vm3843_vm6, %v3632_v56 }
  0xe0   : > { %1865 = vmatprep.mubr.bf16.mxu1 %v3852_v18  ;;  %v4935_v18 = vld [vmem:[#allocation5_spill] sm:$0xff] }
  0xe6   : > { %1769 = vmatmul.mubr.bf16.gmra.mrb[92].mxu0 %v3492_v35 }
  0xe7   : > { %2644 = vmatmul.mubr.msk.bf16.gmra.mrb[92].mxu1 %vm3546_vm4, %v3902_v5  ;;  %2623 = vmatprep.mubr.msk.bf16.mxu0 %vm3843_vm6, %v4041_v43  ;;  %v582_v5 = vsel %vm516_vm2, %v4933_v54, %v581_v42 }
  0xe8   : > { %1873 = vmatprep.mubr.bf16.mxu1 %v3912_v57  ;;  %v4393_v58 = vpack.c.bf16 %v583_v31, %v582_v5 }
  0xee   : > { %1777 = vmatmul.mubr.bf16.gmra.mrb[96].mxu0 %v4931_v10 }
  0xef   : > { %2647 = vmatmul.mubr.msk.bf16.gmra.mrb[96].mxu1 %vm3546_vm4, %v3962_v48  ;;  %2626 = vmatprep.mubr.msk.bf16.mxu0 %vm3843_vm6, %v4047_v6 }
  0xf0   : > { %1881 = vmatprep.mubr.bf16.mxu1 %v3972_v53 }
  0xf6   : > { %1785 = vmatmul.mubr.bf16.gmra.mrb[100].mxu0 %v4932_v44 }
  0xf7   : > { %2650 = vmatmul.mubr.msk.bf16.gmra.mrb[100].mxu1 %vm3546_vm4, %v4016_v27  ;;  %2629 = vmatprep.mubr.msk.bf16.mxu0 %vm3843_vm6, %v4096_v19 }
  0xf8   : > { %1889 = vmatprep.mubr.bf16.mxu1 %v4038_v29 }
  0xfe   : > { %1793 = vmatmul.mubr.bf16.gmra.mrb[104].mxu0 %v4935_v18 }
  0xff   : > { %2653 = vmatmul.mubr.msk.bf16.gmra.mrb[104].mxu1 %vm3546_vm4, %v4098_v9  ;;  %2632 = vmatprep.mubr.msk.bf16.mxu0 %vm3843_vm6, %v4393_v58 }
 0x100   : > { %1897 = vmatprep.mubr.bf16.mxu1 %v4105_v15 }
 0x101   : > { %v2749_v57 = vpop.f32.mrb[0].mxu0 }
 0x102   : > { %v2821_v48 = vpop.f32.mrb[0].mxu1  ;;  %v2750_v53 = vpop.f32.mrb[1].mxu0 }
 0x103   : > { %v2822_v29 = vpop.f32.mrb[1].mxu1  ;;  %v4403_v27 = vadd.f32 %v2750_v53, %v2749_v57  ;;  %v2752_v51 = vpop.f32.mrb[2].mxu0 }
 0x104   : > { %v4405_v45 = vadd.f32 %v2822_v29, %v2821_v48  ;;  %v2824_v38 = vpop.f32.mrb[2].mxu1  ;;  %v2753_v26 = vpop.f32.mrb[3].mxu0 }
 0x105   : > { %v2825_v0 = vpop.f32.mrb[3].mxu1  ;;  %v4407_v17 = vadd.f32 %v2753_v26, %v2752_v51 }
 0x106   : > { %v4409_v9 = vadd.f32 %v2825_v0, %v2824_v38  ;;  %1801 = vmatmul.mubr.bf16.gmra.mrb[108].mxu0 %v4198_v33 }
 0x107   : > { %2656 = vmatmul.mubr.msk.bf16.gmra.mrb[108].mxu1 %vm3546_vm4, %v4131_v36  ;;  %3221 = vmatprep.mubr.msk.bf16.mxu0 %vm3843_vm6, %v3964_v41 }
 0x108   : > { %1905 = vmatprep.mubr.bf16.mxu1 %v4138_v7 }
 0x109   : > { %v2755_v15 = vpop.f32.mrb[4].mxu0 }
 0x10a   : > { %v2827_v30 = vpop.f32.mrb[4].mxu1  ;;  %v2756_v47 = vpop.f32.mrb[5].mxu0 }
 0x10b   : > { %v2828_v28 = vpop.f32.mrb[5].mxu1  ;;  %v4419_v16 = vadd.f32 %v2756_v47, %v2755_v15  ;;  %v2758_v3 = vpop.f32.mrb[6].mxu0 }
 0x10c   : > { %v4421_v62 = vadd.f32 %v2828_v28, %v2827_v30  ;;  %v2830_v61 = vpop.f32.mrb[6].mxu1  ;;  %v2759_v34 = vpop.f32.mrb[7].mxu0 }
 0x10d   : > { %v2831_v14 = vpop.f32.mrb[7].mxu1  ;;  %v4423_v32 = vadd.f32 %v2759_v34, %v2758_v3 }
 0x10e   : > { %v4425_v36 = vadd.f32 %v2831_v14, %v2830_v61  ;;  %3222 = vmatmul.mubr.msk.bf16.vlgmr.msra.gmra.mrb[112].mxu0 %vm3843_vm6, %v4001_v24 }
 0x10f   : > { %2659 = vmatmul.mubr.msk.bf16.gmra.mrb[112].mxu1 %vm3546_vm4, %v4158_v40  ;;  %3225 = vmatprep.mubr.msk.bf16.mxu0 %vm3843_vm6, %v4094_v13 }
 0x110   : > { %1913 = vmatprep.mubr.bf16.mxu1 %v4168_v49 }
 0x111   : > { %v2761_v41 = vpop.f32.mrb[8].mxu0 }
 0x112   : > { %v2833_v7 = vpop.f32.mrb[8].mxu1  ;;  %v2762_v8 = vpop.f32.mrb[9].mxu0 }
 0x113   : > { %v2834_v59 = vpop.f32.mrb[9].mxu1  ;;  %v4437_v42 = vadd.f32 %v2762_v8, %v2761_v41  ;;  %v2764_v5 = vpop.f32.mrb[10].mxu0 }
 0x114   : > { %v4439_v54 = vadd.f32 %v2834_v59, %v2833_v7  ;;  %v2836_v40 = vpop.f32.mrb[10].mxu1  ;;  %v2765_v31 = vpop.f32.mrb[11].mxu0 }
 0x115   : > { %v2837_v57 = vpop.f32.mrb[11].mxu1  ;;  %v4441_v48 = vadd.f32 %v2765_v31, %v2764_v5 }
 0x116   : > { %v4443_v24 = vadd.f32 %v2837_v57, %v2836_v40  ;;  %3226 = vmatmul.mubr.msk.bf16.gmra.mrb[116].mxu0 %vm3843_vm6, %v4133_v25 }
 0x117   : > { %2662 = vmatmul.mubr.msk.bf16.gmra.mrb[116].mxu1 %vm3546_vm4, %v4188_v20  ;;  %3229 = vmatprep.mubr.msk.bf16.mxu0 %vm3843_vm6, %v4160_v2 }
 0x118   : > { %1921 = vmatprep.mubr.bf16.mxu1 %v3492_v35 }
 0x119   : > { %v2767_v49 = vpop.f32.mrb[12].mxu0 }
 0x11a   : > { %v2839_v13 = vpop.f32.mrb[12].mxu1  ;;  %v2768_v53 = vpop.f32.mrb[13].mxu0 }
 0x11b   : > { %v2840_v29 = vpop.f32.mrb[13].mxu1  ;;  %v4455_v51 = vadd.f32 %v2768_v53, %v2767_v49  ;;  %v2770_v26 = vpop.f32.mrb[14].mxu0 }
 0x11c   : > { %v4457_v38 = vadd.f32 %v2840_v29, %v2839_v13  ;;  %v2842_v20 = vpop.f32.mrb[14].mxu1  ;;  %v2771_v0 = vpop.f32.mrb[15].mxu0 }
 0x11d   : > { %v2843_v15 = vpop.f32.mrb[15].mxu1  ;;  %v4459_v30 = vadd.f32 %v2771_v0, %v2770_v26 }
 0x11e   : > { %v4461_v25 = vadd.f32 %v2843_v15, %v2842_v20  ;;  %3230 = vmatmul.mubr.msk.bf16.gmra.mrb[120].mxu0 %vm3843_vm6, %v4190_v23 }
 0x11f   : > { %2665 = vmatmul.mubr.msk.bf16.gmra.mrb[120].mxu1 %vm3546_vm4, %v3552_v4  ;;  %3233 = vmatprep.mubr.msk.bf16.mxu0 %vm3843_vm6, %v4214_v60 }
 0x120   : > { %1929 = vmatprep.mubr.bf16.mxu1 %v4931_v10 }
 0x121   : > { %v2773_v35 = vpop.f32.mrb[16].mxu0 }
 0x122   : > { %v2861_v2 = vpop.f32.mrb[16].mxu1  ;;  %v2774_v47 = vpop.f32.mrb[17].mxu0 }
 0x123   : > { %v2862_v28 = vpop.f32.mrb[17].mxu1  ;;  %v4473_v3 = vadd.f32 %v2774_v47, %v2773_v35  ;;  %v2776_v34 = vpop.f32.mrb[18].mxu0 }
 0x124   : > { %v2863_v61 = vadd.f32 %v2862_v28, %v2861_v2  ;;  %v2864_v14 = vpop.f32.mrb[18].mxu1  ;;  %v2777_v4 = vpop.f32.mrb[19].mxu0 }
 0x125   : > { %v2865_v41 = vpop.f32.mrb[19].mxu1  ;;  %v4478_v23 = vadd.f32 %v2777_v4, %v2776_v34 }
 0x126   : > { %v4476_v7 = vadd.f32 %v2863_v61, %v4403_v27  ;;  %v2866_v10 = vadd.f32 %v2865_v41, %v2864_v14  ;;  %3234 = vmatmul.mubr.msk.bf16.gmra.mrb[124].mxu0 %vm3843_vm6, %v4237_v11 }
 0x127   : > { %2668 = vmatmul.mubr.msk.bf16.gmra.mrb[124].mxu1 %vm3546_vm4, %v3607_v37  ;;  %3237 = vmatprep.mubr.msk.bf16.mxu0 %vm3843_vm6, %v4260_v55 }
 0x128   : > { %v4487_v60 = vadd.f32 %v2866_v10, %v4407_v17  ;;  %1937 = vmatprep.mubr.bf16.mxu1 %v4932_v44 }
 0x129   : > { %v2779_v27 = vpop.f32.mrb[20].mxu0 }
 0x12a   : > { %v2867_v8 = vpop.f32.mrb[20].mxu1  ;;  %v2780_v59 = vpop.f32.mrb[21].mxu0 }
 0x12b   : > { %v2868_v5 = vpop.f32.mrb[21].mxu1  ;;  %v4493_v40 = vadd.f32 %v2780_v59, %v2779_v27  ;;  %v2782_v31 = vpop.f32.mrb[22].mxu0  ;;  %v4936_v27 = vmov 0.0|0.0  }
 0x12c   : > { %v2869_v37 = vadd.f32 %v2868_v5, %v2867_v8  ;;  %v2870_v57 = vpop.f32.mrb[22].mxu1  ;;  %v2783_v49 = vpop.f32.mrb[23].mxu0 }
 0x12d   : > { %v2871_v11 = vpop.f32.mrb[23].mxu1  ;;  %v4498_v13 = vadd.f32 %v2783_v49, %v2782_v31 }
 0x12e   : > { %v4496_v17 = vadd.f32 %v2869_v37, %v4419_v16  ;;  %v2872_v44 = vadd.f32 %v2871_v11, %v2870_v57  ;;  %3238 = vmatmul.mubr.msk.bf16.gmra.mrb[128].mxu0 %vm3843_vm6, %v4030_v39 }
 0x12f   : > { %2671 = vmatmul.mubr.msk.bf16.gmra.mrb[128].mxu1 %vm3546_vm4, %v3698_v46  ;;  %3241 = vmatprep.mubr.msk.bf16.mxu0 %vm3843_vm6, %v3632_v56 }
 0x130   : > { %v4507_v55 = vadd.f32 %v2872_v44, %v4423_v32  ;;  %1945 = vmatprep.mubr.bf16.mxu1 %v4935_v18 }
 0x131   : > { %v2785_v16 = vpop.f32.mrb[24].mxu0 }
 0x132   : > { %v2873_v53 = vpop.f32.mrb[24].mxu1  ;;  %v2786_v29 = vpop.f32.mrb[25].mxu0 }
 0x133   : > { %v2874_v26 = vpop.f32.mrb[25].mxu1  ;;  %v4513_v20 = vadd.f32 %v2786_v29, %v2785_v16  ;;  %v2788_v0 = vpop.f32.mrb[26].mxu0 }
 0x134   : > { %v2875_v46 = vadd.f32 %v2874_v26, %v2873_v53  ;;  %v2876_v15 = vpop.f32.mrb[26].mxu1  ;;  %v2789_v35 = vpop.f32.mrb[27].mxu0 }
 0x135   : > { %v2877_v39 = vpop.f32.mrb[27].mxu1  ;;  %v4518_v2 = vadd.f32 %v2789_v35, %v2788_v0 }
 0x136   : > { %v4516_v32 = vadd.f32 %v2875_v46, %v4437_v42  ;;  %v2878_v18 = vadd.f32 %v2877_v39, %v2876_v15  ;;  %3242 = vmatmul.mubr.msk.bf16.gmra.mrb[132].mxu0 %vm3843_vm6, %v4041_v43 }
 0x137   : > { %2674 = vmatmul.mubr.msk.bf16.gmra.mrb[132].mxu1 %vm3546_vm4, %v3779_v52  ;;  %3245 = vmatprep.mubr.msk.bf16.mxu0 %vm3843_vm6, %v4047_v6 }
 0x138   : > { %v4527_v56 = vadd.f32 %v2878_v18, %v4441_v48  ;;  %1953 = vmatprep.mubr.bf16.mxu1 %v4198_v33 }
 0x139   : > { %v2791_v42 = vpop.f32.mrb[28].mxu0 }
 0x13a   : > { %v2879_v47 = vpop.f32.mrb[28].mxu1  ;;  %v2792_v28 = vpop.f32.mrb[29].mxu0 }
 0x13b   : > { %v2880_v61 = vpop.f32.mrb[29].mxu1  ;;  %v4533_v34 = vadd.f32 %v2792_v28, %v2791_v42  ;;  %v2794_v14 = vpop.f32.mrb[30].mxu0 }
 0x13c   : > { %v2881_v52 = vadd.f32 %v2880_v61, %v2879_v47  ;;  %v2882_v4 = vpop.f32.mrb[30].mxu1  ;;  %v2795_v41 = vpop.f32.mrb[31].mxu0 }
 0x13d   : > { %v2883_v43 = vpop.f32.mrb[31].mxu1  ;;  %v4538_v10 = vadd.f32 %v2795_v41, %v2794_v14 }
 0x13e   : > { %v4536_v48 = vadd.f32 %v2881_v52, %v4455_v51  ;;  %v2884_v33 = vadd.f32 %v2883_v43, %v2882_v4  ;;  %3246 = vmatmul.mubr.msk.bf16.gmra.mrb[136].mxu0 %vm3843_vm6, %v4096_v19  ;;  %v4937_v51 = vld [vmem:[#allocation2_spill] sm:$0xff] }
 0x13f   : > { %2677 = vmatmul.mubr.msk.bf16.gmra.mrb[136].mxu1 %vm3546_vm4, %v4319_v22  ;;  %3249 = vmatprep.mubr.msk.bf16.mxu0 %vm3843_vm6, %v4393_v58  ;;  %v479_v8 = vsel %vm412_vm0, %v477_v12, %v4937_v51  ;;  %v619_v22 = vsel %vm516_vm2, %v4934_v50, 0.0 }
 0x140   : > { %v4547_v6 = vadd.f32 %v2884_v33, %v4459_v30  ;;  %1961 = vmatprep.mubr.bf16.mxu1 %v4936_v27  ;;  %v2679_v30 = vpack.c.bf16 %v4937_v51, %v479_v8  ;;  %v2727_v31 = vpack.c.bf16 %v619_v22, %v4934_v50 }
 0x141   : > { %v2797_v59 = vpop.f32.mrb[32].mxu0 }
 0x142   : > { %v2885_v5 = vpop.f32.mrb[32].mxu1  ;;  %v2798_v19 = vpop.f32.mrb[33].mxu0 }
 0x143   : > { %v2886_v37 = vpop.f32.mrb[33].mxu1  ;;  %v4561_v57 = vadd.f32 %v2798_v19, %v2797_v59  ;;  %v2800_v58 = vpop.f32.mrb[34].mxu0 }
 0x144   : > { %v2887_v49 = vadd.f32 %v2886_v37, %v2885_v5  ;;  %v2888_v11 = vpop.f32.mrb[34].mxu1  ;;  %v2801_v44 = vpop.f32.mrb[35].mxu0 }
 0x145   : > { %v2889_v21 = vpop.f32.mrb[35].mxu1  ;;  %v2802_v16 = vadd.f32 %v2801_v44, %v2800_v58 }
 0x146   : > { %v4564_v12 = vadd.f32 %v2887_v49, %v4473_v3  ;;  %v2890_v53 = vadd.f32 %v2889_v21, %v2888_v11  ;;  %3250 = vmatmul.mubr.msk.bf16.gmra.mrb[140].mxu0 %vm3843_vm6, %v2727_v31 }
 0x147   : > { %2680 = vmatmul.mubr.msk.bf16.gmra.mrb[140].mxu1 %vm3546_vm4, %v2679_v30 }
 0x148   : > { %v4571_v50 = vadd.f32 %v2890_v53, %v4478_v23 }
 0x149   : > { %v2803_v29 = vpop.f32.mrb[36].mxu0 }
 0x14a   : > { %v2891_v26 = vpop.f32.mrb[36].mxu1  ;;  %v2804_v46 = vpop.f32.mrb[37].mxu0 }
 0x14b   : > { %v2892_v0 = vpop.f32.mrb[37].mxu1  ;;  %v4573_v15 = vadd.f32 %v2804_v46, %v2803_v29  ;;  %v2806_v3 = vpop.f32.mrb[38].mxu0 }
 0x14c   : > { %v2893_v35 = vadd.f32 %v2892_v0, %v2891_v26  ;;  %v2894_v39 = vpop.f32.mrb[38].mxu1  ;;  %v2807_v18 = vpop.f32.mrb[39].mxu0 }
 0x14d   : > { %v2895_v42 = vpop.f32.mrb[39].mxu1  ;;  %v2808_v47 = vadd.f32 %v2807_v18, %v2806_v3 }
 0x14e   : > { %v4576_v1 = vadd.f32 %v2893_v35, %v4493_v40  ;;  %v2896_v63 = vadd.f32 %v2895_v42, %v2894_v39 }
 0x150   : > { %v4579_v28 = vadd.f32 %v2896_v63, %v4498_v13 }
 0x151   : > { %v2809_v23 = vpop.f32.mrb[40].mxu0 }
 0x152   : > { %v2897_v61 = vpop.f32.mrb[40].mxu1  ;;  %v2810_v52 = vpop.f32.mrb[41].mxu0 }
 0x153   : > { %v2898_v14 = vpop.f32.mrb[41].mxu1  ;;  %v4581_v4 = vadd.f32 %v2810_v52, %v2809_v23  ;;  %v2812_v43 = vpop.f32.mrb[42].mxu0 }
 0x154   : > { %v2899_v41 = vadd.f32 %v2898_v14, %v2897_v61  ;;  %v2900_v33 = vpop.f32.mrb[42].mxu1  ;;  %v2813_v27 = vpop.f32.mrb[43].mxu0 }
 0x155   : > { %v2901_v51 = vpop.f32.mrb[43].mxu1  ;;  %v4586_v40 = vadd.f32 %v2813_v27, %v2812_v43 }
 0x156   : > { %v4584_v8 = vadd.f32 %v2899_v41, %v4513_v20  ;;  %v2902_v22 = vadd.f32 %v2901_v51, %v2900_v33 }
 0x158   : > { %v4589_v13 = vadd.f32 %v2902_v22, %v4518_v2 }
 0x159   : > { %v2815_v59 = vpop.f32.mrb[44].mxu0 }
 0x15a   : > { %v2903_v5 = vpop.f32.mrb[44].mxu1  ;;  %v2816_v19 = vpop.f32.mrb[45].mxu0 }
 0x15b   : > { %v2904_v37 = vpop.f32.mrb[45].mxu1  ;;  %v4591_v30 = vadd.f32 %v2816_v19, %v2815_v59  ;;  %v2818_v49 = vpop.f32.mrb[46].mxu0 }
 0x15c   : > { %v2905_v31 = vadd.f32 %v2904_v37, %v2903_v5  ;;  %v2906_v58 = vpop.f32.mrb[46].mxu1  ;;  %v2819_v11 = vpop.f32.mrb[47].mxu0 }
 0x15d   : > { %v2907_v44 = vpop.f32.mrb[47].mxu1  ;;  %v4596_v21 = vadd.f32 %v2819_v11, %v2818_v49 }
 0x15e   : > { %v4594_v20 = vadd.f32 %v2905_v31, %v4533_v34  ;;  %v2908_v53 = vadd.f32 %v2907_v44, %v2906_v58 }
 0x160   : > { %v4599_v2 = vadd.f32 %v2908_v53, %v4538_v10 }
 0x161   : > { %v2973_v26 = vpop.f32.mrb[48].mxu0 }
 0x162   : > { %v2909_v29 = vpop.f32.mrb[48].mxu1  ;;  %v2974_v0 = vpop.f32.mrb[49].mxu0 }
 0x163   : > { %v2910_v46 = vpop.f32.mrb[49].mxu1  ;;  %v2975_v3 = vadd.f32 %v2974_v0, %v2973_v26  ;;  %v2976_v18 = vpop.f32.mrb[50].mxu0 }
 0x164   : > { %v2911_v35 = vadd.f32 %v2910_v46, %v2909_v29  ;;  %v2912_v39 = vpop.f32.mrb[50].mxu1  ;;  %v2977_v63 = vpop.f32.mrb[51].mxu0 }
 0x165   : > { %v2913_v42 = vpop.f32.mrb[51].mxu1  ;;  %v4605_v34 = vadd.f32 %v2975_v3, %v4476_v7  ;;  %v2978_v52 = vadd.f32 %v2977_v63, %v2976_v18 }
 0x166   : > { %v4602_v23 = vadd.f32 %v2911_v35, %v4561_v57  ;;  %v2914_v61 = vadd.f32 %v2913_v42, %v2912_v39 }
 0x167   : > { %v4610_v14 = vadd.f32 %v2978_v52, %v4487_v60 }
 0x168   : > { %v4607_v10 = vadd.f32 %v2914_v61, %v2802_v16 }
 0x169   : > { %v2979_v43 = vpop.f32.mrb[52].mxu0 }
 0x16a   : > { %v2915_v41 = vpop.f32.mrb[52].mxu1  ;;  %v2980_v27 = vpop.f32.mrb[53].mxu0 }
 0x16b   : > { %v2916_v33 = vpop.f32.mrb[53].mxu1  ;;  %v2981_v22 = vadd.f32 %v2980_v27, %v2979_v43  ;;  %v2982_v5 = vpop.f32.mrb[54].mxu0 }
 0x16c   : > { %v2917_v51 = vadd.f32 %v2916_v33, %v2915_v41  ;;  %v2918_v59 = vpop.f32.mrb[54].mxu1  ;;  %v2983_v19 = vpop.f32.mrb[55].mxu0 }
 0x16d   : > { %v2919_v57 = vpop.f32.mrb[55].mxu1  ;;  %v4616_v37 = vadd.f32 %v2981_v22, %v4496_v17  ;;  %v2984_v31 = vadd.f32 %v2983_v19, %v2982_v5 }
 0x16e   : > { %v4613_v7 = vadd.f32 %v2917_v51, %v4573_v15  ;;  %v2920_v16 = vadd.f32 %v2919_v57, %v2918_v59 }
 0x16f   : > { %v4621_v49 = vadd.f32 %v2984_v31, %v4507_v55 }
 0x170   : > { %v4618_v60 = vadd.f32 %v2920_v16, %v2808_v47 }
 0x171   : > { %v2985_v11 = vpop.f32.mrb[56].mxu0 }
 0x172   : > { %v2921_v58 = vpop.f32.mrb[56].mxu1  ;;  %v2986_v53 = vpop.f32.mrb[57].mxu0 }
 0x173   : > { %v2922_v44 = vpop.f32.mrb[57].mxu1  ;;  %v2987_v26 = vadd.f32 %v2986_v53, %v2985_v11  ;;  %v2988_v0 = vpop.f32.mrb[58].mxu0 }
 0x174   : > { %v2923_v29 = vadd.f32 %v2922_v44, %v2921_v58  ;;  %v2924_v46 = vpop.f32.mrb[58].mxu1  ;;  %v2989_v35 = vpop.f32.mrb[59].mxu0 }
 0x175   : > { %v2925_v15 = vpop.f32.mrb[59].mxu1  ;;  %v4627_v3 = vadd.f32 %v2987_v26, %v4516_v32  ;;  %v2990_v39 = vadd.f32 %v2989_v35, %v2988_v0 }
 0x176   : > { %v4624_v17 = vadd.f32 %v2923_v29, %v4581_v4  ;;  %v2926_v47 = vadd.f32 %v2925_v15, %v2924_v46 }
 0x177   : > { %v4633_v18 = vadd.f32 %v2990_v39, %v4527_v56 }
 0x178   : > { %v4630_v55 = vadd.f32 %v2926_v47, %v4586_v40 }
 0x179   : > { %v2991_v63 = vpop.f32.mrb[60].mxu0 }
 0x17a   : > { %v2927_v42 = vpop.f32.mrb[60].mxu1  ;;  %v2992_v52 = vpop.f32.mrb[61].mxu0 }
 0x17b   : > { %v2928_v61 = vpop.f32.mrb[61].mxu1  ;;  %v2993_v43 = vadd.f32 %v2992_v52, %v2991_v63  ;;  %v2994_v4 = vpop.f32.mrb[62].mxu0 }
 0x17c   : > { %v2929_v41 = vadd.f32 %v2928_v61, %v2927_v42  ;;  %v2930_v33 = vpop.f32.mrb[62].mxu1  ;;  %v2995_v51 = vpop.f32.mrb[63].mxu0 }
 0x17d   : > { %v2931_v27 = vpop.f32.mrb[63].mxu1  ;;  %v4639_v22 = vadd.f32 %v2993_v43, %v4536_v48  ;;  %v2996_v59 = vadd.f32 %v2995_v51, %v2994_v4 }
 0x17e   : > { %v4636_v32 = vadd.f32 %v2929_v41, %v4591_v30  ;;  %v2932_v40 = vadd.f32 %v2931_v27, %v2930_v33 }
 0x17f   : > { %v4645_v5 = vadd.f32 %v2996_v59, %v4547_v6 }
 0x180   : > { %v4642_v56 = vadd.f32 %v2932_v40, %v4596_v21 }
 0x181   : > { %v2997_v19 = vpop.f32.mrb[64].mxu0 }
 0x182   : > { %v2933_v57 = vpop.f32.mrb[64].mxu1  ;;  %v2998_v31 = vpop.f32.mrb[65].mxu0 }
 0x183   : > { %v2934_v16 = vpop.f32.mrb[65].mxu1  ;;  %v2999_v11 = vadd.f32 %v2998_v31, %v2997_v19  ;;  %v3000_v30 = vpop.f32.mrb[66].mxu0 }
 0x184   : > { %v2935_v58 = vadd.f32 %v2934_v16, %v2933_v57  ;;  %v2936_v44 = vpop.f32.mrb[66].mxu1  ;;  %v3001_v29 = vpop.f32.mrb[67].mxu0 }
 0x185   : > { %v2937_v53 = vpop.f32.mrb[67].mxu1  ;;  %v4651_v26 = vadd.f32 %v2999_v11, %v4564_v12  ;;  %v3002_v46 = vadd.f32 %v3001_v29, %v3000_v30 }
 0x186   : > { %v4648_v48 = vadd.f32 %v2935_v58, %v4405_v45  ;;  %v2938_v21 = vadd.f32 %v2937_v53, %v2936_v44 }
 0x187   : > { %v4657_v0 = vadd.f32 %v3002_v46, %v4571_v50 }
 0x188   : > { %v4654_v6 = vadd.f32 %v2938_v21, %v4409_v9 }
 0x189   : > { %v3003_v35 = vpop.f32.mrb[68].mxu0 }
 0x18a   : > { %v2939_v15 = vpop.f32.mrb[68].mxu1  ;;  %v3004_v39 = vpop.f32.mrb[69].mxu0 }
 0x18b   : > { %v2940_v47 = vpop.f32.mrb[69].mxu1  ;;  %v3005_v63 = vadd.f32 %v3004_v39, %v3003_v35  ;;  %v3006_v45 = vpop.f32.mrb[70].mxu0 }
 0x18c   : > { %v2941_v42 = vadd.f32 %v2940_v47, %v2939_v15  ;;  %v2942_v61 = vpop.f32.mrb[70].mxu1  ;;  %v3007_v41 = vpop.f32.mrb[71].mxu0 }
 0x18d   : > { %v2943_v52 = vpop.f32.mrb[71].mxu1  ;;  %v4663_v43 = vadd.f32 %v3005_v63, %v4576_v1  ;;  %v3008_v33 = vadd.f32 %v3007_v41, %v3006_v45 }
 0x18e   : > { %v4660_v12 = vadd.f32 %v2941_v42, %v4421_v62  ;;  %v2944_v9 = vadd.f32 %v2943_v52, %v2942_v61 }
 0x18f   : > { %v4669_v4 = vadd.f32 %v3008_v33, %v4579_v28 }
 0x190   : > { %v4666_v50 = vadd.f32 %v2944_v9, %v4425_v36 }
 0x191   : > { %v3009_v51 = vpop.f32.mrb[72].mxu0 }
 0x192   : > { %v2945_v27 = vpop.f32.mrb[72].mxu1  ;;  %v3010_v59 = vpop.f32.mrb[73].mxu0 }
 0x193   : > { %v2946_v40 = vpop.f32.mrb[73].mxu1  ;;  %v3011_v19 = vadd.f32 %v3010_v59, %v3009_v51  ;;  %v3012_v62 = vpop.f32.mrb[74].mxu0 }
 0x194   : > { %v2947_v57 = vadd.f32 %v2946_v40, %v2945_v27  ;;  %v2948_v16 = vpop.f32.mrb[74].mxu1  ;;  %v3013_v58 = vpop.f32.mrb[75].mxu0 }
 0x195   : > { %v2949_v31 = vpop.f32.mrb[75].mxu1  ;;  %v4675_v11 = vadd.f32 %v3011_v19, %v4584_v8  ;;  %v3014_v44 = vadd.f32 %v3013_v58, %v3012_v62 }
 0x196   : > { %v4672_v1 = vadd.f32 %v2947_v57, %v4439_v54  ;;  %v2950_v36 = vadd.f32 %v2949_v31, %v2948_v16 }
 0x197   : > { %v4681_v30 = vadd.f32 %v3014_v44, %v4589_v13 }
 0x198   : > { %v4678_v28 = vadd.f32 %v2950_v36, %v4443_v24 }
 0x199   : > { %v3015_v29 = vpop.f32.mrb[76].mxu0 }
 0x19a   : > { %v2951_v53 = vpop.f32.mrb[76].mxu1  ;;  %v3016_v46 = vpop.f32.mrb[77].mxu0 }
 0x19b   : > { %v2952_v21 = vpop.f32.mrb[77].mxu1  ;;  %v3017_v35 = vadd.f32 %v3016_v46, %v3015_v29  ;;  %v3018_v54 = vpop.f32.mrb[78].mxu0 }
 0x19c   : > { %v2953_v15 = vadd.f32 %v2952_v21, %v2951_v53  ;;  %v2954_v47 = vpop.f32.mrb[78].mxu1  ;;  %v3019_v42 = vpop.f32.mrb[79].mxu0 }
 0x19d   : > { %v2955_v39 = vpop.f32.mrb[79].mxu1  ;;  %v4687_v63 = vadd.f32 %v3017_v35, %v4594_v20  ;;  %v3020_v61 = vadd.f32 %v3019_v42, %v3018_v54 }
 0x19e   : > { %v4684_v8 = vadd.f32 %v2953_v15, %v4457_v38  ;;  %v2956_v24 = vadd.f32 %v2955_v39, %v2954_v47 }
 0x19f   : > { %v4693_v45 = vadd.f32 %v3020_v61, %v4599_v2 }
 0x1a0   : > { %v4690_v13 = vadd.f32 %v2956_v24, %v4461_v25 }
 0x1a1   : > { %v3021_v52 = vpop.f32.mrb[80].mxu0 }
 0x1a2   : > { %v3085_v41 = vpop.f32.mrb[80].mxu1  ;;  %v3022_v9 = vpop.f32.mrb[81].mxu0 }
 0x1a3   : > { %v3086_v33 = vpop.f32.mrb[81].mxu1  ;;  %v3023_v27 = vadd.f32 %v3022_v9, %v3021_v52  ;;  %v3024_v40 = vpop.f32.mrb[82].mxu0 }
 0x1a4   : > { %v3087_v51 = vadd.f32 %v3086_v33, %v3085_v41  ;;  %v3088_v38 = vpop.f32.mrb[82].mxu1  ;;  %v3025_v59 = vpop.f32.mrb[83].mxu0 }
 0x1a5   : > { %v3089_v57 = vpop.f32.mrb[83].mxu1  ;;  %v4696_v20 = vadd.f32 %v3023_v27, %v4602_v23  ;;  %v3026_v19 = vadd.f32 %v3025_v59, %v3024_v40 }
 0x1a6   : > { %v3090_v16 = vadd.f32 %v3089_v57, %v3088_v38  ;;  %v4699_v25 = vadd.f32 %v3087_v51, %v4605_v34 }
 0x1a7   : > { %v4702_v2 = vadd.f32 %v3026_v19, %v4607_v10 }
 0x1a8   : > { %v4705_v62 = vadd.f32 %v3090_v16, %v4610_v14 }
 0x1a9   : > { %v3027_v31 = vpop.f32.mrb[84].mxu0 }
 0x1aa   : > { %v3091_v58 = vpop.f32.mrb[84].mxu1  ;;  %v3028_v36 = vpop.f32.mrb[85].mxu0 }
 0x1ab   : > { %v3092_v44 = vpop.f32.mrb[85].mxu1  ;;  %v3029_v53 = vadd.f32 %v3028_v36, %v3027_v31  ;;  %v3030_v21 = vpop.f32.mrb[86].mxu0 }
 0x1ac   : > { %v3093_v29 = vadd.f32 %v3092_v44, %v3091_v58  ;;  %v3094_v23 = vpop.f32.mrb[86].mxu1  ;;  %v3031_v46 = vpop.f32.mrb[87].mxu0 }
 0x1ad   : > { %v3095_v15 = vpop.f32.mrb[87].mxu1  ;;  %v4708_v35 = vadd.f32 %v3029_v53, %v4613_v7  ;;  %v3032_v34 = vadd.f32 %v3031_v46, %v3030_v21 }
 0x1ae   : > { %v3096_v47 = vadd.f32 %v3095_v15, %v3094_v23  ;;  %v4711_v10 = vadd.f32 %v3093_v29, %v4616_v37 }
 0x1af   : > { %v4714_v14 = vadd.f32 %v3032_v34, %v4618_v60 }
 0x1b0   : > { %v4717_v54 = vadd.f32 %v3096_v47, %v4621_v49 }
 0x1b1   : > { %v3033_v39 = vpop.f32.mrb[88].mxu0 }
 0x1b2   : > { %v3097_v42 = vpop.f32.mrb[88].mxu1  ;;  %v3034_v24 = vpop.f32.mrb[89].mxu0 }
 0x1b3   : > { %v3098_v61 = vpop.f32.mrb[89].mxu1  ;;  %v3035_v52 = vadd.f32 %v3034_v24, %v3033_v39  ;;  %v3036_v9 = vpop.f32.mrb[90].mxu0 }
 0x1b4   : > { %v3099_v41 = vadd.f32 %v3098_v61, %v3097_v42  ;;  %v3100_v7 = vpop.f32.mrb[90].mxu1  ;;  %v3037_v33 = vpop.f32.mrb[91].mxu0 }
 0x1b5   : > { %v3101_v27 = vpop.f32.mrb[91].mxu1  ;;  %v4720_v51 = vadd.f32 %v3035_v52, %v4624_v17  ;;  %v3038_v37 = vadd.f32 %v3037_v33, %v3036_v9 }
 0x1b6   : > { %v3102_v40 = vadd.f32 %v3101_v27, %v3100_v7  ;;  %v4723_v60 = vadd.f32 %v3099_v41, %v4627_v3 }
 0x1b7   : > { %v4726_v49 = vadd.f32 %v3038_v37, %v4630_v55 }
 0x1b8   : > { %v4729_v38 = vadd.f32 %v3102_v40, %v4633_v18 }
 0x1b9   : > { %v3039_v59 = vpop.f32.mrb[92].mxu0 }
 0x1ba   : > { %v3103_v57 = vpop.f32.mrb[92].mxu1  ;;  %v3040_v19 = vpop.f32.mrb[93].mxu0 }
 0x1bb   : > { %v3104_v16 = vpop.f32.mrb[93].mxu1  ;;  %v3041_v31 = vadd.f32 %v3040_v19, %v3039_v59  ;;  %v3042_v36 = vpop.f32.mrb[94].mxu0 }
 0x1bc   : > { %v3105_v58 = vadd.f32 %v3104_v16, %v3103_v57  ;;  %v3106_v17 = vpop.f32.mrb[94].mxu1  ;;  %v3043_v44 = vpop.f32.mrb[95].mxu0 }
 0x1bd   : > { %v3107_v53 = vpop.f32.mrb[95].mxu1  ;;  %v4732_v29 = vadd.f32 %v3041_v31, %v4636_v32  ;;  %v3044_v3 = vadd.f32 %v3043_v44, %v3042_v36 }
 0x1be   : > { %v3108_v21 = vadd.f32 %v3107_v53, %v3106_v17  ;;  %v4735_v55 = vadd.f32 %v3105_v58, %v4639_v22 }
 0x1bf   : > { %v4738_v18 = vadd.f32 %v3044_v3, %v4642_v56 }
 0x1c0   : > { %v4741_v23 = vadd.f32 %v3108_v21, %v4645_v5 }
 0x1c1   : > { %v3045_v46 = vpop.f32.mrb[96].mxu0 }
 0x1c2   : > { %v3109_v15 = vpop.f32.mrb[96].mxu1  ;;  %v3046_v34 = vpop.f32.mrb[97].mxu0 }
 0x1c3   : > { %v3110_v47 = vpop.f32.mrb[97].mxu1  ;;  %v3047_v39 = vadd.f32 %v3046_v34, %v3045_v46  ;;  %v3048_v24 = vpop.f32.mrb[98].mxu0 }
 0x1c4   : > { %v3111_v42 = vadd.f32 %v3110_v47, %v3109_v15  ;;  %v3112_v32 = vpop.f32.mrb[98].mxu1  ;;  %v3049_v61 = vpop.f32.mrb[99].mxu0 }
 0x1c5   : > { %v3113_v52 = vpop.f32.mrb[99].mxu1  ;;  %v4744_v41 = vadd.f32 %v3047_v39, %v4648_v48  ;;  %v3050_v22 = vadd.f32 %v3049_v61, %v3048_v24 }
 0x1c6   : > { %v3114_v9 = vadd.f32 %v3113_v52, %v3112_v32  ;;  %v4747_v56 = vadd.f32 %v3111_v42, %v4651_v26 }
 0x1c7   : > { %v4750_v5 = vadd.f32 %v3050_v22, %v4654_v6 }
 0x1c8   : > { %v4753_v7 = vadd.f32 %v3114_v9, %v4657_v0 }
 0x1c9   : > { %v3051_v33 = vpop.f32.mrb[100].mxu0 }
 0x1ca   : > { %v3115_v27 = vpop.f32.mrb[100].mxu1  ;;  %v3052_v37 = vpop.f32.mrb[101].mxu0 }
 0x1cb   : > { %v3116_v40 = vpop.f32.mrb[101].mxu1  ;;  %v3053_v59 = vadd.f32 %v3052_v37, %v3051_v33  ;;  %v3054_v19 = vpop.f32.mrb[102].mxu0 }
 0x1cc   : > { %v3117_v57 = vadd.f32 %v3116_v40, %v3115_v27  ;;  %v3118_v48 = vpop.f32.mrb[102].mxu1  ;;  %v3055_v16 = vpop.f32.mrb[103].mxu0 }
 0x1cd   : > { %v3119_v31 = vpop.f32.mrb[103].mxu1  ;;  %v4756_v58 = vadd.f32 %v3053_v59, %v4660_v12  ;;  %v3056_v26 = vadd.f32 %v3055_v16, %v3054_v19 }
 0x1ce   : > { %v3120_v36 = vadd.f32 %v3119_v31, %v3118_v48  ;;  %v4759_v6 = vadd.f32 %v3117_v57, %v4663_v43 }
 0x1cf   : > { %v4762_v0 = vadd.f32 %v3056_v26, %v4666_v50 }
 0x1d0   : > { %v4765_v17 = vadd.f32 %v3120_v36, %v4669_v4 }
 0x1d1   : > { %v3057_v44 = vpop.f32.mrb[104].mxu0 }
 0x1d2   : > { %v3121_v53 = vpop.f32.mrb[104].mxu1  ;;  %v3058_v3 = vpop.f32.mrb[105].mxu0 }
 0x1d3   : > { %v3122_v21 = vpop.f32.mrb[105].mxu1  ;;  %v3059_v46 = vadd.f32 %v3058_v3, %v3057_v44  ;;  %v3060_v34 = vpop.f32.mrb[106].mxu0 }
 0x1d4   : > { %v3123_v15 = vadd.f32 %v3122_v21, %v3121_v53  ;;  %v3124_v12 = vpop.f32.mrb[106].mxu1  ;;  %v3061_v47 = vpop.f32.mrb[107].mxu0 }
 0x1d5   : > { %v3125_v39 = vpop.f32.mrb[107].mxu1  ;;  %v4768_v42 = vadd.f32 %v3059_v46, %v4672_v1  ;;  %v3062_v43 = vadd.f32 %v3061_v47, %v3060_v34 }
 0x1d6   : > { %v3126_v24 = vadd.f32 %v3125_v39, %v3124_v12  ;;  %v4771_v50 = vadd.f32 %v3123_v15, %v4675_v11 }
 0x1d7   : > { %v4774_v4 = vadd.f32 %v3062_v43, %v4678_v28 }
 0x1d8   : > { %v4777_v32 = vadd.f32 %v3126_v24, %v4681_v30 }
 0x1d9   : > { %v3063_v61 = vpop.f32.mrb[108].mxu0 }
 0x1da   : > { %v3127_v52 = vpop.f32.mrb[108].mxu1  ;;  %v3064_v22 = vpop.f32.mrb[109].mxu0 }
 0x1db   : > { %v3128_v9 = vpop.f32.mrb[109].mxu1  ;;  %v3065_v33 = vadd.f32 %v3064_v22, %v3063_v61  ;;  %v3066_v1 = vpop.f32.mrb[110].mxu0 }
 0x1dc   : > { %v3129_v27 = vadd.f32 %v3128_v9, %v3127_v52  ;;  %v3130_v37 = vpop.f32.mrb[110].mxu1  ;;  %v3067_v40 = vpop.f32.mrb[111].mxu0 }
 0x1dd   : > { %v3131_v59 = vpop.f32.mrb[111].mxu1  ;;  %v4780_v11 = vadd.f32 %v3065_v33, %v4684_v8  ;;  %v3068_v57 = vadd.f32 %v3067_v40, %v3066_v1 }
 0x1de   : > { %v3132_v28 = vadd.f32 %v3131_v59, %v3130_v37  ;;  %v4783_v19 = vadd.f32 %v3129_v27, %v4687_v63 }
 0x1df   : > { %v4786_v30 = vadd.f32 %v3068_v57, %v4690_v13 }
 0x1e0   : > { %v4789_v48 = vadd.f32 %v3132_v28, %v4693_v45 }
 0x1e1   : > { %v3223_v8 = vpop.f32.mrb[112].mxu0 }
 0x1e2   : > { %v3133_v16 = vpop.f32.mrb[112].mxu1  ;;  %v2013_v63 = vadd.f32 %v3223_v8, %v4711_v10  ;;  %v2004_v13 = vpop.f32.mrb[113].mxu0 }
 0x1e3   : > { %v3134_v31 = vpop.f32.mrb[113].mxu1  ;;  %v2005_v45 = vadd.f32 %v2004_v13, %v4699_v25  ;;  %v3224_v44 = vpop.f32.mrb[114].mxu0 }
 0x1e4   : > { %v3135_v26 = vadd.f32 %v3134_v31, %v3133_v16  ;;  %v3136_v36 = vpop.f32.mrb[114].mxu1  ;;  %2133 = vst [vmem:[%s4796_s28 + $0x10] sm:$0xff] %v2013_v63  ;;  %v2016_v53 = vadd.f32 %v3224_v44, %v4717_v54  ;;  %v2007_v21 = vpop.f32.mrb[115].mxu0  ;;  %v2202_v39 = vmul.f32 %v2013_v63, %v2013_v63 }
 0x1e5   : > { %v3137_v3 = vpop.f32.mrb[115].mxu1  ;;  %2131 = vst [vmem:[%s4796_s28] sm:$0xff] %v2005_v45  ;;  %v2008_v15 = vadd.f32 %v2007_v21, %v4705_v62  ;;  %v2200_v10 = vmul.f32 %v2005_v45, %v2005_v45 }
 0x1e6   : > { %v3138_v46 = vadd.f32 %v3137_v3, %v3136_v36  ;;  %v4805_v34 = vadd.f32 %v3135_v26, %v4696_v20  ;;  %2134 = vst [vmem:[%s4796_s28 + $0x18] sm:$0xff] %v2016_v53  ;;  %v2203_v52 = vmul.f32 %v2016_v53, %v2016_v53 }
 0x1e7   : > { %2132 = vst [vmem:[%s4796_s28 + $0x8] sm:$0xff] %v2008_v15  ;;  %v2163_v12 = vadd.f32 %v2008_v15, %v2005_v45  ;;  %v2201_v47 = vmul.f32 %v2008_v15, %v2008_v15 }
 0x1e8   : > { %v4810_v25 = vadd.f32 %v3138_v46, %v4702_v2 }
 0x1e9   : > { %v2164_v54 = vadd.f32 %v2163_v12, %v2013_v63  ;;  %v2232_v43 = vadd.f32 %v2201_v47, %v2200_v10  ;;  %v3227_v61 = vpop.f32.mrb[116].mxu0 }
 0x1ea   : > { %v3139_v24 = vpop.f32.mrb[116].mxu1  ;;  %v2029_v62 = vadd.f32 %v3227_v61, %v4735_v55  ;;  %v2020_v22 = vpop.f32.mrb[117].mxu0 }
 0x1eb   : > { %v3140_v20 = vpop.f32.mrb[117].mxu1  ;;  %v2233_v9 = vadd.f32 %v2232_v43, %v2202_v39  ;;  %v2021_v27 = vadd.f32 %v2020_v22, %v4723_v60  ;;  %v2165_v1 = vadd.f32 %v2164_v54, %v2016_v53  ;;  %v3228_v37 = vpop.f32.mrb[118].mxu0 }
 0x1ec   : > { %v3141_v33 = vadd.f32 %v3140_v20, %v3139_v24  ;;  %v3142_v2 = vpop.f32.mrb[118].mxu1  ;;  %2137 = vst [vmem:[%s4796_s28 + $0x30] sm:$0xff] %v2029_v62  ;;  %v2032_v40 = vadd.f32 %v3228_v37, %v4741_v23  ;;  %v2023_v57 = vpop.f32.mrb[119].mxu0  ;;  %v2206_v44 = vmul.f32 %v2029_v62, %v2029_v62 }
 0x1ed   : > { %v3143_v59 = vpop.f32.mrb[119].mxu1  ;;  %2135 = vst [vmem:[%s4796_s28 + $0x20] sm:$0xff] %v2021_v27  ;;  %v2166_v28 = vadd.f32 %v2165_v1, %v2021_v27  ;;  %v2204_v16 = vmul.f32 %v2021_v27, %v2021_v27  ;;  %v2234_v55 = vadd.f32 %v2233_v9, %v2203_v52  ;;  %v2024_v63 = vadd.f32 %v2023_v57, %v4729_v38 }
 0x1ee   : > { %v3144_v8 = vadd.f32 %v3143_v59, %v3142_v2  ;;  %2138 = vst [vmem:[%s4796_s28 + $0x38] sm:$0xff] %v2032_v40  ;;  %v4820_v31 = vadd.f32 %v3141_v33, %v4708_v35  ;;  %v2207_v12 = vmul.f32 %v2032_v40, %v2032_v40 }
 0x1ef   : > { %v2235_v60 = vadd.f32 %v2234_v55, %v2204_v16  ;;  %2136 = vst [vmem:[%s4796_s28 + $0x28] sm:$0xff] %v2024_v63  ;;  %v2167_v26 = vadd.f32 %v2166_v28, %v2024_v63  ;;  %v2205_v23 = vmul.f32 %v2024_v63, %v2024_v63 }
 0x1f0   : > { %v4823_v13 = vadd.f32 %v3144_v8, %v4714_v14 }
 0x1f1   : > { %v3231_v36 = vpop.f32.mrb[120].mxu0  ;;  %v2168_v53 = vadd.f32 %v2167_v26, %v2029_v62  ;;  %v2236_v3 = vadd.f32 %v2235_v60, %v2205_v23 }
 0x1f2   : > { %v3145_v45 = vpop.f32.mrb[120].mxu1  ;;  %v2045_v21 = vadd.f32 %v3231_v36, %v4759_v6  ;;  %v2036_v46 = vpop.f32.mrb[121].mxu0 }
 0x1f3   : > { %v3146_v38 = vpop.f32.mrb[121].mxu1  ;;  %v2037_v15 = vadd.f32 %v2036_v46, %v4747_v56  ;;  %v3232_v14 = vpop.f32.mrb[122].mxu0  ;;  %v2237_v47 = vadd.f32 %v2236_v3, %v2206_v44  ;;  %v2169_v39 = vadd.f32 %v2168_v53, %v2032_v40 }
 0x1f4   : > { %v3147_v35 = vadd.f32 %v3146_v38, %v3145_v45  ;;  %v3148_v10 = vpop.f32.mrb[122].mxu1  ;;  %2141 = vst [vmem:[%s4796_s28 + $0x50] sm:$0xff] %v2045_v21  ;;  %v2048_v54 = vadd.f32 %v3232_v14, %v4765_v17  ;;  %v2039_v24 = vpop.f32.mrb[123].mxu0  ;;  %v2210_v2 = vmul.f32 %v2045_v21, %v2045_v21 }
 0x1f5   : > { %v3149_v43 = vpop.f32.mrb[123].mxu1  ;;  %2139 = vst [vmem:[%s4796_s28 + $0x40] sm:$0xff] %v2037_v15  ;;  %v2208_v61 = vmul.f32 %v2037_v15, %v2037_v15  ;;  %v2040_v52 = vadd.f32 %v2039_v24, %v4753_v7  ;;  %v2170_v56 = vadd.f32 %v2169_v39, %v2037_v15  ;;  %v2238_v20 = vadd.f32 %v2237_v47, %v2207_v12 }
 0x1f6   : > { %v3150_v6 = vadd.f32 %v3149_v43, %v3148_v10  ;;  %v4833_v62 = vadd.f32 %v3147_v35, %v4720_v51  ;;  %2142 = vst [vmem:[%s4796_s28 + $0x58] sm:$0xff] %v2048_v54  ;;  %v2211_v55 = vmul.f32 %v2048_v54, %v2048_v54 }
 0x1f7   : > { %2140 = vst [vmem:[%s4796_s28 + $0x48] sm:$0xff] %v2040_v52  ;;  %v2209_v22 = vmul.f32 %v2040_v52, %v2040_v52  ;;  %v2239_v33 = vadd.f32 %v2238_v20, %v2208_v61  ;;  %v2171_v17 = vadd.f32 %v2170_v56, %v2040_v52 }
 0x1f8   : > { %v4838_v9 = vadd.f32 %v3150_v6, %v4726_v49 }
 0x1f9   : > { %v3235_v1 = vpop.f32.mrb[124].mxu0  ;;  %v2172_v37 = vadd.f32 %v2171_v17, %v2045_v21  ;;  %v2240_v7 = vadd.f32 %v2239_v33, %v2209_v22 }
 0x1fa   : > { %v3151_v27 = vpop.f32.mrb[124].mxu1  ;;  %v2061_v51 = vadd.f32 %v3235_v1, %v4783_v19  ;;  %v2052_v59 = vpop.f32.mrb[125].mxu0 }
 0x1fb   : > { %v3152_v40 = vpop.f32.mrb[125].mxu1  ;;  %v2053_v28 = vadd.f32 %v2052_v59, %v4771_v50  ;;  %v3236_v49 = vpop.f32.mrb[126].mxu0  ;;  %v2241_v8 = vadd.f32 %v2240_v7, %v2210_v2  ;;  %v2173_v63 = vadd.f32 %v2172_v37, %v2048_v54 }
 0x1fc   : > { %v3153_v57 = vadd.f32 %v3152_v40, %v3151_v27  ;;  %v3154_v16 = vpop.f32.mrb[126].mxu1  ;;  %2145 = vst [vmem:[%s4796_s28 + $0x70] sm:$0xff] %v2061_v51  ;;  %v2064_v60 = vadd.f32 %v3236_v49, %v4789_v48  ;;  %v2055_v23 = vpop.f32.mrb[127].mxu0  ;;  %v2214_v15 = vmul.f32 %v2061_v51, %v2061_v51 }
 0x1fd   : > { %v3155_v26 = vpop.f32.mrb[127].mxu1  ;;  %2143 = vst [vmem:[%s4796_s28 + $0x60] sm:$0xff] %v2053_v28  ;;  %v2212_v45 = vmul.f32 %v2053_v28, %v2053_v28  ;;  %v2056_v36 = vadd.f32 %v2055_v23, %v4777_v32  ;;  %v2174_v50 = vadd.f32 %v2173_v63, %v2053_v28  ;;  %v2242_v53 = vadd.f32 %v2241_v8, %v2211_v55 }
 0x1fe   : > { %v3156_v19 = vadd.f32 %v3155_v26, %v3154_v16  ;;  %v1932_v44 = vadd.f32 %v3153_v57, %v4732_v29  ;;  %2146 = vst [vmem:[%s4796_s28 + $0x78] sm:$0xff] %v2064_v60 }
 0x1ff   : > { %2144 = vst [vmem:[%s4796_s28 + $0x68] sm:$0xff] %v2056_v36  ;;  %v2213_v3 = vmul.f32 %v2056_v36, %v2056_v36  ;;  %v2243_v38 = vadd.f32 %v2242_v53, %v2212_v45  ;;  %v2175_v46 = vadd.f32 %v2174_v50, %v2056_v36 }
 0x200   : > { %v1935_v21 = vadd.f32 %v3156_v19, %v4738_v18  ;;  %v2215_v18 = vmul.f32 %v2064_v60, %v2064_v60 }
 0x201   : > { %v3239_v35 = vpop.f32.mrb[128].mxu0  ;;  %v2176_v10 = vadd.f32 %v2175_v46, %v2061_v51  ;;  %v2244_v14 = vadd.f32 %v2243_v38, %v2213_v3 }
 0x202   : > { %v3157_v48 = vpop.f32.mrb[128].mxu1  ;;  %v2077_v32 = vadd.f32 %v3239_v35, %v4820_v31  ;;  %v2068_v29 = vpop.f32.mrb[129].mxu0 }
 0x203   : > { %v3158_v12 = vpop.f32.mrb[129].mxu1  ;;  %v2069_v39 = vadd.f32 %v2068_v29, %v4805_v34  ;;  %v3240_v43 = vpop.f32.mrb[130].mxu0  ;;  %v2245_v24 = vadd.f32 %v2244_v14, %v2214_v15  ;;  %v2177_v61 = vadd.f32 %v2176_v10, %v2064_v60 }
 0x204   : > { %v3159_v47 = vadd.f32 %v3158_v12, %v3157_v48  ;;  %v3160_v54 = vpop.f32.mrb[130].mxu1  ;;  %2149 = vst [vmem:[%s4796_s28 + $0x90] sm:$0xff] %v2077_v32  ;;  %v2080_v6 = vadd.f32 %v3240_v43, %v4823_v13  ;;  %v2071_v56 = vpop.f32.mrb[131].mxu0  ;;  %v2218_v51 = vmul.f32 %v2077_v32, %v2077_v32 }
 0x205   : > { %v3161_v52 = vpop.f32.mrb[131].mxu1  ;;  %2147 = vst [vmem:[%s4796_s28 + $0x80] sm:$0xff] %v2069_v39  ;;  %v2216_v20 = vmul.f32 %v2069_v39, %v2069_v39  ;;  %v2072_v22 = vadd.f32 %v2071_v56, %v4810_v25  ;;  %v2178_v34 = vadd.f32 %v2177_v61, %v2069_v39  ;;  %v2246_v17 = vadd.f32 %v2245_v24, %v2215_v18 }
 0x206   : > { %v3162_v31 = vadd.f32 %v3161_v52, %v3160_v54  ;;  %v1940_v33 = vadd.f32 %v3159_v47, %v4744_v41  ;;  %2150 = vst [vmem:[%s4796_s28 + $0x98] sm:$0xff] %v2080_v6 }
 0x207   : > { %2148 = vst [vmem:[%s4796_s28 + $0x88] sm:$0xff] %v2072_v22  ;;  %v2217_v27 = vmul.f32 %v2072_v22, %v2072_v22  ;;  %v2247_v2 = vadd.f32 %v2246_v17, %v2216_v20  ;;  %v2179_v37 = vadd.f32 %v2178_v34, %v2072_v22 }
 0x208   : > { %v1943_v1 = vadd.f32 %v3162_v31, %v4750_v5  ;;  %v2219_v5 = vmul.f32 %v2080_v6, %v2080_v6 }
 0x209   : > { %v3243_v7 = vpop.f32.mrb[132].mxu0  ;;  %v2180_v40 = vadd.f32 %v2179_v37, %v2077_v32  ;;  %v2248_v59 = vadd.f32 %v2247_v2, %v2217_v27 }
 0x20a   : > { %v3163_v13 = vpop.f32.mrb[132].mxu1  ;;  %v2093_v57 = vadd.f32 %v3243_v7, %v1932_v44  ;;  %v2084_v28 = vpop.f32.mrb[133].mxu0 }
 0x20b   : > { %v3164_v25 = vpop.f32.mrb[133].mxu1  ;;  %v2085_v16 = vadd.f32 %v2084_v28, %v4833_v62  ;;  %v3244_v55 = vpop.f32.mrb[134].mxu0  ;;  %v2249_v8 = vadd.f32 %v2248_v59, %v2218_v51  ;;  %v2181_v63 = vadd.f32 %v2180_v40, %v2080_v6 }
 0x20c   : > { %v3165_v41 = vadd.f32 %v3164_v25, %v3163_v13  ;;  %v3166_v49 = vpop.f32.mrb[134].mxu1  ;;  %2153 = vst [vmem:[%s4796_s28 + $0xb0] sm:$0xff] %v2093_v57  ;;  %v2096_v60 = vadd.f32 %v3244_v55, %v1935_v21  ;;  %v2087_v23 = vpop.f32.mrb[135].mxu0  ;;  %v2222_v35 = vmul.f32 %v2093_v57, %v2093_v57 }
 0x20d   : > { %v3167_v26 = vpop.f32.mrb[135].mxu1  ;;  %2151 = vst [vmem:[%s4796_s28 + $0xa0] sm:$0xff] %v2085_v16  ;;  %v2220_v45 = vmul.f32 %v2085_v16, %v2085_v16  ;;  %v2088_v36 = vadd.f32 %v2087_v23, %v4838_v9  ;;  %v2182_v50 = vadd.f32 %v2181_v63, %v2085_v16  ;;  %v2250_v62 = vadd.f32 %v2249_v8, %v2219_v5 }
 0x20e   : > { %v3168_v19 = vadd.f32 %v3167_v26, %v3166_v49  ;;  %v1948_v44 = vadd.f32 %v3165_v41, %v4756_v58  ;;  %2154 = vst [vmem:[%s4796_s28 + $0xb8] sm:$0xff] %v2096_v60  ;;  %v2223_v39 = vmul.f32 %v2096_v60, %v2096_v60 }
 0x20f   : > { %2152 = vst [vmem:[%s4796_s28 + $0xa8] sm:$0xff] %v2088_v36  ;;  %v2221_v53 = vmul.f32 %v2088_v36, %v2088_v36  ;;  %v2251_v38 = vadd.f32 %v2250_v62, %v2220_v45  ;;  %v2183_v46 = vadd.f32 %v2182_v50, %v2088_v36 }
 0x210   : > { %v1951_v3 = vadd.f32 %v3168_v19, %v4762_v0 }
 0x211   : > { %v3247_v48 = vpop.f32.mrb[136].mxu0  ;;  %v2184_v15 = vadd.f32 %v2183_v46, %v2093_v57  ;;  %v2252_v10 = vadd.f32 %v2251_v38, %v2221_v53 }
 0x212   : > { %v3169_v21 = vpop.f32.mrb[136].mxu1  ;;  %v2109_v14 = vadd.f32 %v3247_v48, %v1948_v44  ;;  %v2100_v32 = vpop.f32.mrb[137].mxu0 }
 0x213   : > { %v3170_v9 = vpop.f32.mrb[137].mxu1  ;;  %v2101_v12 = vadd.f32 %v2100_v32, %v1940_v33  ;;  %v3248_v47 = vpop.f32.mrb[138].mxu0  ;;  %v2253_v0 = vadd.f32 %v2252_v10, %v2222_v35  ;;  %v2185_v54 = vadd.f32 %v2184_v15, %v2096_v60 }
 0x214   : > { %v3171_v58 = vadd.f32 %v3170_v9, %v3169_v21  ;;  %v3172_v29 = vpop.f32.mrb[138].mxu1  ;;  %2157 = vst [vmem:[%s4796_s28 + $0xd0] sm:$0xff] %v2109_v14  ;;  %v2112_v43 = vadd.f32 %v3248_v47, %v1951_v3  ;;  %v2103_v24 = vpop.f32.mrb[139].mxu0  ;;  %v2226_v37 = vmul.f32 %v2109_v14, %v2109_v14 }
 0x215   : > { %v3173_v18 = vpop.f32.mrb[139].mxu1  ;;  %2155 = vst [vmem:[%s4796_s28 + $0xc0] sm:$0xff] %v2101_v12  ;;  %v2224_v61 = vmul.f32 %v2101_v12, %v2101_v12  ;;  %v2104_v52 = vadd.f32 %v2103_v24, %v1943_v1  ;;  %v2186_v20 = vadd.f32 %v2185_v54, %v2101_v12  ;;  %v2254_v31 = vadd.f32 %v2253_v0, %v2223_v39 }
 0x216   : > { %v3174_v6 = vadd.f32 %v3173_v18, %v3172_v29  ;;  %v1956_v56 = vadd.f32 %v3171_v58, %v4768_v42  ;;  %2158 = vst [vmem:[%s4796_s28 + $0xd8] sm:$0xff] %v2112_v43  ;;  %v2227_v25 = vmul.f32 %v2112_v43, %v2112_v43 }
 0x217   : > { %2156 = vst [vmem:[%s4796_s28 + $0xc8] sm:$0xff] %v2104_v52  ;;  %v2225_v22 = vmul.f32 %v2104_v52, %v2104_v52  ;;  %v2255_v34 = vadd.f32 %v2254_v31, %v2224_v61  ;;  %v2187_v17 = vadd.f32 %v2186_v20, %v2104_v52 }
 0x218   : > { %v1959_v33 = vadd.f32 %v3174_v6, %v4774_v4 }
 0x219   : > { %v3251_v2 = vpop.f32.mrb[140].mxu0  ;;  %v2188_v13 = vadd.f32 %v2187_v17, %v2109_v14  ;;  %v2256_v7 = vadd.f32 %v2255_v34, %v2225_v22 }
 0x21a   : > { %v3175_v27 = vpop.f32.mrb[140].mxu1  ;;  %v2116_v40 = vpop.f32.mrb[141].mxu0 }
 0x21b   : > { %v3176_v51 = vpop.f32.mrb[141].mxu1  ;;  %v2117_v59 = vadd.f32 %v2116_v40, %v1956_v56  ;;  %v3252_v57 = vpop.f32.mrb[142].mxu0  ;;  %v2257_v28 = vadd.f32 %v2256_v7, %v2226_v37  ;;  %v2189_v41 = vadd.f32 %v2188_v13, %v2112_v43 }
 0x21c   : > { %v3177_v1 = vadd.f32 %v3176_v51, %v3175_v27  ;;  %v3178_v42 = vpop.f32.mrb[142].mxu1  ;;  %v2119_v16 = vpop.f32.mrb[143].mxu0 }
 0x21d   : > { %v3179_v4 = vpop.f32.mrb[143].mxu1  ;;  %2159 = vst [vmem:[%s4796_s28 + $0xe0] sm:$0xff] %v2117_v59  ;;  %v2228_v55 = vmul.f32 %v2117_v59, %v2117_v59  ;;  %v2120_v8 = vadd.f32 %v2119_v16, %v1959_v33  ;;  %v2190_v63 = vadd.f32 %v2189_v41, %v2117_v59  ;;  %v2258_v60 = vadd.f32 %v2257_v28, %v2227_v25 }
 0x21e   : > { %v1964_v49 = vadd.f32 %v3177_v1, %v4780_v11  ;;  %v3180_v5 = vadd.f32 %v3179_v4, %v3178_v42 }
 0x21f   : > { %2160 = vst [vmem:[%s4796_s28 + $0xe8] sm:$0xff] %v2120_v8  ;;  %v2229_v45 = vmul.f32 %v2120_v8, %v2120_v8  ;;  %v2259_v19 = vadd.f32 %v2258_v60, %v2228_v55  ;;  %v2191_v36 = vadd.f32 %v2190_v63, %v2120_v8 }
 0x220   : > { %v2125_v26 = vadd.f32 %v3251_v2, %v1964_v49  ;;  %v1967_v23 = vadd.f32 %v3180_v5, %v4786_v30 }
 0x221   : > { %v2260_v11 = vadd.f32 %v2259_v19, %v2229_v45 }
 0x222   : > { %2161 = vst [vmem:[%s4796_s28 + $0xf0] sm:$0xff] %v2125_v26  ;;  %v2230_v44 = vmul.f32 %v2125_v26, %v2125_v26  ;;  %v2128_v50 = vadd.f32 %v3252_v57, %v1967_v23  ;;  %v2192_v62 = vadd.f32 %v2191_v36, %v2125_v26 }
 0x224   : > { %2162 = vst [vmem:[%s4796_s28 + $0xf8] sm:$0xff] %v2128_v50  ;;  %v2231_v53 = vmul.f32 %v2128_v50, %v2128_v50  ;;  %v2193_v3 = vadd.f32 %v2192_v62, %v2128_v50  ;;  %v2261_v38 = vadd.f32 %v2260_v11, %v2230_v44 }
 0x226   : > { %v2194_v46 = vrot.slane %v2193_v3, 4  ;;  %v2262_v21 = vadd.f32 %v2261_v38, %v2231_v53 }
 0x228   : > { %v2195_v48 = vadd.f32 %v2194_v46, %v2193_v3  ;;  %v2263_v35 = vrot.slane %v2262_v21, 4 }
 0x22a   : > { %v2196_v15 = vrot.slane %v2195_v48, 2  ;;  %v2264_v30 = vadd.f32 %v2263_v35, %v2262_v21 }
 0x22c   : > { %v2197_v10 = vadd.f32 %v2196_v15, %v2195_v48  ;;  %v2265_v14 = vrot.slane %v2264_v30, 2 }
 0x22e   : > { %v2198_v9 = vrot.slane %v2197_v10, 1  ;;  %v2266_v32 = vadd.f32 %v2265_v14, %v2264_v30 }
 0x230   : > { %v2267_v58 = vrot.slane %v2266_v32, 1  ;;  %v2199_v12 = vadd.f32 %v2198_v9, %v2197_v10 }
 0x232   : > { %v2268_v29 = vadd.f32 %v2267_v58, %v2266_v32 }
 0x234   : > { %v2269_v47 = vsel %vm412_vm0, %v2199_v12, %v2268_v29 }
 0x235   : > { %2270 = vst [vmem:[%s235_s6] sm:$0x3] %v2269_v47 }
 0x236 PF: > { %s16_s18 = sadd.s32 1, %s3360_s18  }
 0x237   : > { %p13_p4 = scmp.ge.s32.totalorder %s16_s18, 4  }
 0x239   :  { %15 = sbr.rel (!%p13_p4) target bundleno = 1 (0x1), region = 78 }

</bundles_post_ra>
